<compile_context>
chip_gen: v5e
topology: v5e:2x2
jax: 0.10.0
libtpu: 0.0.40
codegen_flags: <defaults>
</compile_context>

<pallas_src>
import functools
import math

import jax
import jax.numpy as jnp
from jax import lax
from jax.experimental import pallas as pl
from jax.experimental.pallas import tpu as pltpu


CP = 128                         # padded channel width -> lane-dense tiles
_VMEM_LIMIT = 48 * 1024 * 1024   # explicit budget, fits v7x's 64 MiB VMEM
# TODO(synk): set to jnp.bfloat16 on v6e/v7x for ~2x MXU throughput (tiny
# precision change); kept f32 here to preserve exact forward numerics.
_MXU_DTYPE = jnp.float32


def _round_up(a, b):
    return ((a + b - 1) // b) * b


def _pad_taps(wt):
    """(n_taps, Cin, Cout) -> (n_taps, CP, CP) zero-padded, f32."""
    n, ci, co = wt.shape
    out = jnp.zeros((n, CP, CP), jnp.float32)
    return out.at[:, :ci, :co].set(wt.astype(jnp.float32))


def _pad_bias(b, n=CP):
    out = jnp.zeros((1, n), jnp.float32)
    return out.at[0, : b.shape[0]].set(b.astype(jnp.float32))


def _pad_mat(a, r, c):
    out = jnp.zeros((r, c), jnp.float32)
    return out.at[: a.shape[0], : a.shape[1]].set(a.astype(jnp.float32))


# ---------------------------------------------------------------------------
# Pallas kernels
# ---------------------------------------------------------------------------

def _conv_kernel(x_ref, w_ref, b_ref, o_ref, *, n_taps, stride, TT, relu):
    """Tap-loop conv on a resident phase-deinterleaved slab.

    x_ref: (1, stride, Tphase, CP) resident per batch
    w_ref: (n_taps, CP, CP)   b_ref: (1, CP)   o_ref: (1, TT, CP)
    """
    i = pl.program_id(1)
    t0 = pl.multiple_of(i * TT, TT)
    acc = jnp.zeros((TT, o_ref.shape[-1]), jnp.float32)
    for k in range(n_taps):
        xk = x_ref[0, k % stride, pl.ds(t0 + (k // stride), TT), :]     # (TT, CP)
        acc = acc + jnp.dot(xk.astype(_MXU_DTYPE),
                            w_ref[k].astype(_MXU_DTYPE),
                            preferred_element_type=jnp.float32)
    acc = acc + b_ref[...]
    if relu:
        acc = jnp.maximum(acc, 0.0)
    o_ref[0] = acc


def _resblock_kernel(x_ref, w3_ref, b3_ref, w1_ref, b1_ref, o_ref, *, TT):
    """Fused residual block: x + conv1x1(relu(conv3(relu(x)))) on one tile."""
    i = pl.program_id(1)
    t0 = pl.multiple_of(i * TT, TT)
    acc = jnp.zeros((TT, w3_ref.shape[-1]), jnp.float32)
    for k in range(3):
        xk = jnp.maximum(x_ref[0, pl.ds(t0 + k, TT), :], 0.0)
        acc = acc + jnp.dot(xk.astype(_MXU_DTYPE), w3_ref[k].astype(_MXU_DTYPE),
                            preferred_element_type=jnp.float32)
    h = jnp.maximum(acc + b3_ref[...], 0.0)                              # (TT, CP)
    out = jnp.dot(h.astype(_MXU_DTYPE), w1_ref[...].astype(_MXU_DTYPE),
                  preferred_element_type=jnp.float32) + b1_ref[...]
    o_ref[0] = x_ref[0, pl.ds(t0 + 1, TT), :] + out


def _vq_kernel(z_ref, cb_ref, e2_ref, idx_ref, q_ref, *, n_codes_pad):
    """Nearest-codebook search on a row tile; codebook resident.

    ||z||^2 is dropped (constant per row, does not affect argmin);
    ||e||^2 (with +inf on padded codes) is precomputed outside the kernel.
    """
    z = z_ref[...]                                                       # (TN, CP)
    e = cb_ref[...]                                                      # (KP, CP)
    cross = lax.dot_general(z.astype(_MXU_DTYPE), e.astype(_MXU_DTYPE),
                            (((1,), (1,)), ((), ())),
                            preferred_element_type=jnp.float32)          # (TN, KP)
    dist = e2_ref[...] - 2.0 * cross
    col = lax.broadcasted_iota(jnp.int32, dist.shape, 1)
    min_d = jnp.min(dist, axis=1, keepdims=True)
    # first index achieving the minimum (matches torch.argmin tie-breaking)
    idx = jnp.min(jnp.where(dist <= min_d, col, n_codes_pad), axis=1, keepdims=True)
    idx_ref[...] = idx
    onehot = (col == idx).astype(_MXU_DTYPE)                             # KP <= ~128
    q_ref[...] = jnp.dot(onehot, e.astype(_MXU_DTYPE),
                         preferred_element_type=jnp.float32)


def _behavior_kernel(q_ref, w1_ref, b1_ref, w2_ref, b2_ref, o_ref):
    """Fused behavior head: mean over time -> linear+relu -> linear."""
    nb = q_ref.shape[0]
    rows = [jnp.mean(q_ref[b], axis=0, keepdims=True) for b in range(nb)]
    pooled = jnp.concatenate(rows, axis=0)                               # (B, CP)
    h = jnp.maximum(
        jnp.dot(pooled.astype(_MXU_DTYPE), w1_ref[...].astype(_MXU_DTYPE),
                preferred_element_type=jnp.float32) + b1_ref[...], 0.0)
    o_ref[...] = jnp.dot(h.astype(_MXU_DTYPE), w2_ref[...].astype(_MXU_DTYPE),
                         preferred_element_type=jnp.float32) + b2_ref[...]


# ---------------------------------------------------------------------------
# Kernel wrappers
# ---------------------------------------------------------------------------

def _conv_core(x_cl, w_p, b_p, *, stride, pad_left, out_len, relu):
    """y[t] = act( sum_k x_padded[t*stride + k] @ w_p[k] + b ).

    x_cl: (B, T, CP) channels-last padded.  pad_left may be negative
    (start the window `-pad_left` elements into x).  Returns (B, out_len, CP).
    """
    B, T, _ = x_cl.shape
    n_taps = w_p.shape[0]
    TT = min(512, _round_up(out_len, 8))
    out_pad = _round_up(out_len, TT)
    tphase = out_pad + (n_taps - 1) // stride
    L = tphase * stride
    if pad_left >= 0:
        xp = jnp.pad(x_cl, ((0, 0), (pad_left, 0), (0, 0)))
    else:
        xp = x_cl[:, -pad_left:, :]
    cur = xp.shape[1]
    if cur < L:
        xp = jnp.pad(xp, ((0, 0), (0, L - cur), (0, 0)))
    elif cur > L:
        xp = xp[:, :L, :]
    # phase deinterleave: xph[b, r, j, c] = xp[b, j*stride + r, c]
    xph = xp.reshape(B, tphase, stride, CP).transpose(0, 2, 1, 3)
    n_tiles = out_pad // TT
    y = pl.pallas_call(
        functools.partial(_conv_kernel, n_taps=n_taps, stride=stride, TT=TT,
                          relu=relu),
        out_shape=jax.ShapeDtypeStruct((B, out_pad, CP), jnp.float32),
        grid=(B, n_tiles),
        in_specs=[
            pl.BlockSpec((1, stride, tphase, CP), lambda b, i: (b, 0, 0, 0)),
            pl.BlockSpec((n_taps, CP, CP), lambda b, i: (0, 0, 0)),
            pl.BlockSpec((1, CP), lambda b, i: (0, 0)),
        ],
        out_specs=pl.BlockSpec((1, TT, CP), lambda b, i: (b, i, 0)),
        compiler_params=pltpu.CompilerParams(
            dimension_semantics=("parallel", "parallel"),
            vmem_limit_bytes=_VMEM_LIMIT),
    )(xph, w_p, b_p)
    return y[:, :out_len, :]


def conv1d_cl(x_cl, w, b, *, stride, padding, relu=False):
    """PyTorch Conv1d on channels-last padded slabs. w:(Cout,Cin,K), b:(Cout,)."""
    B, T, _ = x_cl.shape
    Cout, Cin, K = w.shape
    out_len = (T + 2 * padding - K) // stride + 1
    w_p = _pad_taps(jnp.transpose(w.astype(jnp.float32), (2, 1, 0)))    # (K,CP,CP)
    b_p = _pad_bias(b)
    return _conv_core(x_cl, w_p, b_p, stride=stride, pad_left=padding,
                      out_len=out_len, relu=relu)


def conv_transpose1d_cl(x_cl, w, b, *, stride, padding, output_padding,
                        relu=False):
    """PyTorch ConvTranspose1d via polyphase decomposition (no zero-stuffing).

    w:(Cin,Cout,K), b:(Cout,).  x_cl:(B,T,CP) -> (B,Tout,CP).
    """
    B, T, _ = x_cl.shape
    Cin, Cout, K = w.shape
    Tout = (T - 1) * stride - 2 * padding + K + output_padding
    b_p = _pad_bias(b)
    tq = -(-Tout // stride)
    phases = []
    for r in range(stride):
        taps = [k for k in range(K) if k % stride == (r + padding) % stride]
        out_len_r = (Tout - r + stride - 1) // stride
        if not taps:
            y_r = jnp.broadcast_to(b_p[0], (B, out_len_r, CP))
            if relu:
                y_r = jnp.maximum(y_r, 0.0)
        else:
            dks = [(r + padding - k) // stride for k in taps]
            order = sorted(range(len(taps)), key=lambda j: dks[j])
            ks = [taps[j] for j in order]
            dmin = min(dks)
            w_phase = jnp.stack([w[:, :, k] for k in ks], axis=0)       # (n,Cin,Cout)
            w_p = _pad_taps(w_phase)
            y_r = _conv_core(x_cl, w_p, b_p, stride=1, pad_left=-dmin,
                             out_len=out_len_r, relu=relu)
        if y_r.shape[1] < tq:
            y_r = jnp.pad(y_r, ((0, 0), (0, tq - y_r.shape[1]), (0, 0)))
        phases.append(y_r)
    y = jnp.stack(phases, axis=2).reshape(B, tq * stride, CP)
    return y[:, :Tout, :]


def residual_block_cl(x_cl, rb):
    """Fused Sonnet/VQ-VAE residual block: x + conv1x1(relu(conv3(relu(x))))."""
    B, T, _ = x_cl.shape
    TT = min(512, _round_up(T, 8))
    out_pad = _round_up(T, TT)
    L = out_pad + 2
    xp = jnp.pad(x_cl, ((0, 0), (1, L - 1 - T), (0, 0)))
    w3 = _pad_taps(jnp.transpose(rb["w3"].astype(jnp.float32), (2, 1, 0)))
    b3 = _pad_bias(rb["b3"])
    w1 = _pad_taps(jnp.transpose(rb["w1"].astype(jnp.float32), (2, 1, 0)))[0]
    b1 = _pad_bias(rb["b1"])
    n_tiles = out_pad // TT
    y = pl.pallas_call(
        functools.partial(_resblock_kernel, TT=TT),
        out_shape=jax.ShapeDtypeStruct((B, out_pad, CP), jnp.float32),
        grid=(B, n_tiles),
        in_specs=[
            pl.BlockSpec((1, L, CP), lambda b, i: (b, 0, 0)),
            pl.BlockSpec((3, CP, CP), lambda b, i: (0, 0, 0)),
            pl.BlockSpec((1, CP), lambda b, i: (0, 0)),
            pl.BlockSpec((CP, CP), lambda b, i: (0, 0)),
            pl.BlockSpec((1, CP), lambda b, i: (0, 0)),
        ],
        out_specs=pl.BlockSpec((1, TT, CP), lambda b, i: (b, i, 0)),
        compiler_params=pltpu.CompilerParams(
            dimension_semantics=("parallel", "parallel"),
            vmem_limit_bytes=_VMEM_LIMIT),
    )(xp, w3, b3, w1, b1)
    return y[:, :T, :]


def vq_nearest(z_flat, cb_pad, e2):
    """z_flat:(N,CP), cb_pad:(KP,CP), e2:(1,KP) -> (idx:(N,), q:(N,CP))."""
    N, _ = z_flat.shape
    KP = cb_pad.shape[0]
    TN = min(512, _round_up(N, 8))
    NP = _round_up(N, TN)
    if NP != N:
        z_flat = jnp.pad(z_flat, ((0, NP - N), (0, 0)))
    idx, q = pl.pallas_call(
        functools.partial(_vq_kernel, n_codes_pad=KP),
        out_shape=(jax.ShapeDtypeStruct((NP, 1), jnp.int32),
                   jax.ShapeDtypeStruct((NP, CP), jnp.float32)),
        grid=(NP // TN,),
        in_specs=[pl.BlockSpec((TN, CP), lambda i: (i, 0)),
                  pl.BlockSpec((KP, CP), lambda i: (0, 0)),
                  pl.BlockSpec((1, KP), lambda i: (0, 0))],
        out_specs=(pl.BlockSpec((TN, 1), lambda i: (i, 0)),
                   pl.BlockSpec((TN, CP), lambda i: (i, 0))),
        compiler_params=pltpu.CompilerParams(
            dimension_semantics=("parallel",),
            vmem_limit_bytes=_VMEM_LIMIT),
    )(z_flat, cb_pad, e2)
    return idx[:N, 0], q[:N]


def behavior_head_cl(q_cl, w1, b1, w2, b2):
    """Fused mean-pool + 2-layer MLP.  q_cl:(B,Tq,CP) -> (B, out_dim)."""
    B, Tq, _ = q_cl.shape
    H = w1.shape[1]
    O = w2.shape[1]
    HP = _round_up(max(H, 8), 128)
    OP = _round_up(max(O, 8), 128)
    w1p = _pad_mat(w1, CP, HP)
    b1p = _pad_bias(b1, HP)
    w2p = _pad_mat(w2, HP, OP)
    b2p = _pad_bias(b2, OP)
    y = pl.pallas_call(
        _behavior_kernel,
        out_shape=jax.ShapeDtypeStruct((B, OP), jnp.float32),
        grid=(1,),
        in_specs=[pl.BlockSpec((B, Tq, CP), lambda i: (0, 0, 0)),
                  pl.BlockSpec((CP, HP), lambda i: (0, 0)),
                  pl.BlockSpec((1, HP), lambda i: (0, 0)),
                  pl.BlockSpec((HP, OP), lambda i: (0, 0)),
                  pl.BlockSpec((1, OP), lambda i: (0, 0))],
        out_specs=pl.BlockSpec((B, OP), lambda i: (0, 0)),
        compiler_params=pltpu.CompilerParams(
            dimension_semantics=("arbitrary",),
            vmem_limit_bytes=_VMEM_LIMIT),
    )(q_cl, w1p, b1p, w2p, b2p)
    return y[:, :O]


# ---------------------------------------------------------------------------
# Layout / interpolation / pooling glue (plain JAX)
# ---------------------------------------------------------------------------

def to_cl_padded(x_nct):
    B, C, T = x_nct.shape
    assert C <= CP, "channel count must be <= 128 for the padded-lane layout"
    x_cl = jnp.transpose(x_nct, (0, 2, 1)).astype(jnp.float32)
    return jnp.pad(x_cl, ((0, 0), (0, 0), (0, CP - C)))


def from_cl(x_cl, c_true):
    return jnp.transpose(x_cl[:, :, :c_true], (0, 2, 1))


def avg_pool1d(x, k):
    B, C, T = x.shape
    To = T // k
    return x[:, :, : To * k].reshape(B, C, To, k).mean(axis=3)


def interp_linear(x, out_size, axis):
    """F.interpolate(mode='linear', align_corners=False) along `axis`."""
    Tin = x.shape[axis]
    if Tin == out_size:
        return x
    scale = Tin / out_size
    pos = (jnp.arange(out_size, dtype=jnp.float32) + 0.5) * scale - 0.5
    pos = jnp.clip(pos, 0.0, Tin - 1)
    lo = jnp.floor(pos).astype(jnp.int32)
    hi = jnp.minimum(lo + 1, Tin - 1)
    frac = pos - lo.astype(jnp.float32)
    shape = [1] * x.ndim
    shape[axis] = out_size
    frac = frac.reshape(shape)
    xlo = jnp.take(x, lo, axis=axis)
    xhi = jnp.take(x, hi, axis=axis)
    return xlo * (1.0 - frac) + xhi * frac


# ---------------------------------------------------------------------------
# Model pieces
# ---------------------------------------------------------------------------

def vector_quantize_cl(z_cl, codebook, commitment_cost):
    B, Tq, _ = z_cl.shape
    K, D = codebook.shape
    KP = _round_up(max(K, 8), 128)
    cb_pad = jnp.zeros((KP, CP), jnp.float32).at[:K, :D].set(
        codebook.astype(jnp.float32))
    e2 = jnp.sum(cb_pad * cb_pad, axis=1)
    e2 = jnp.where(jnp.arange(KP) < K, e2, 1e30).reshape(1, KP).astype(jnp.float32)
    z_flat = z_cl.reshape(B * Tq, CP)
    idx, q_flat = vq_nearest(z_flat, cb_pad, e2)
    quantized_cl = q_flat.reshape(B, Tq, CP)
    diff = q_flat[:, :D] - z_flat[:, :D]
    mse = jnp.mean(diff * diff)
    # q_latent_loss + commitment_cost * e_latent_loss (identical numerically fwd)
    vq_loss = mse + commitment_cost * mse
    encodings = jax.nn.one_hot(idx, K, dtype=jnp.float32)
    avg_probs = jnp.mean(encodings, axis=0)
    perplexity = jnp.exp(-jnp.sum(avg_probs * jnp.log(avg_probs + 1e-10)))
    return vq_loss, quantized_cl, perplexity, encodings


def calcium_vqvae_forward(p, x, commitment_cost):
    B, Cn, T = x.shape
    x_cl = to_cl_padded(x)
    # ---- encoder (mirror of CalciumDecoder) ----
    z = conv1d_cl(x_cl, p["enc1_w"], p["enc1_b"], stride=2, padding=3, relu=True)
    z = conv1d_cl(z, p["enc2_w"], p["enc2_b"], stride=2, padding=2, relu=True)
    z = conv1d_cl(z, p["enc3_w"], p["enc3_b"], stride=1, padding=1, relu=False)
    for rb in p["enc_res"]:
        z = residual_block_cl(z, rb)
    # ---- pre-quantization 1x1 conv ----
    z = conv1d_cl(z, p["preq_w"], p["preq_b"], stride=1, padding=0, relu=False)
    D = p["codebook"].shape[1]
    # ---- vector quantization ----
    vq_loss, quantized_cl, perplexity, encodings = vector_quantize_cl(
        z, p["codebook"], commitment_cost)
    target_t = T // 4
    if quantized_cl.shape[1] != target_t:
        quantized_cl = interp_linear(quantized_cl, target_t, axis=1)
    # ---- decoder ----
    d = quantized_cl
    for rb in p["dec_res"]:
        d = residual_block_cl(d, rb)
    d = conv_transpose1d_cl(d, p["dect1_w"], p["dect1_b"],
                            stride=2, padding=1, output_padding=1, relu=True)
    d = conv_transpose1d_cl(d, p["dect2_w"], p["dect2_b"],
                            stride=2, padding=2, output_padding=1, relu=True)
    xr_cl = conv1d_cl(d, p["decf_w"], p["decf_b"], stride=1, padding=3, relu=False)
    if xr_cl.shape[1] != T:
        xr_cl = interp_linear(xr_cl, T, axis=1)
    x_recon = from_cl(xr_cl, Cn)
    # ---- behavior head (mean-pool over time + MLP), fused kernel ----
    behavior_pred = behavior_head_cl(quantized_cl, p["bh1_w"], p["bh1_b"],
                                     p["bh2_w"], p["bh2_b"])
    quantized = from_cl(quantized_cl, D)
    return vq_loss, x_recon, perplexity, quantized, encodings, behavior_pred


_forward_jit = jax.jit(calcium_vqvae_forward)


def multiscale_forward(all_params, x, scales, commitment_cost):
    outputs = []
    for p, scale in zip(all_params, scales):
        x_scaled = avg_pool1d(x, scale) if scale > 1 else x
        (vq_loss, x_recon, perplexity, quantized, encodings,
         behavior_pred) = _forward_jit(p, x_scaled, commitment_cost)
        if scale > 1:
            x_recon = interp_linear(x_recon, x.shape[2], axis=2)
        outputs.append({"vq_loss": vq_loss, "x_recon": x_recon,
                        "perplexity": perplexity, "quantized": quantized,
                        "behavior_pred": behavior_pred, "scale": scale})
    return outputs


# ---------------------------------------------------------------------------
# Deterministic parameter construction
# ---------------------------------------------------------------------------

def _uniform(key, shape, bound):
    return jax.random.uniform(key, shape, jnp.float32, -bound, bound)


def build_model_params(key, num_neurons, num_hiddens, num_residual_layers,
                       num_residual_hiddens, num_embeddings, embedding_dim,
                       behavior_dim=4, behavior_hidden=128):
    keys = iter(jax.random.split(key, 64))

    def conv_p(cin, cout, k, bias=True):
        bound = 1.0 / math.sqrt(cin * k)
        w = _uniform(next(keys), (cout, cin, k), bound)
        b = _uniform(next(keys), (cout,), bound) if bias else jnp.zeros(
            (cout,), jnp.float32)
        return w, b

    def convT_p(cin, cout, k):
        bound = 1.0 / math.sqrt(cin * k)
        w = _uniform(next(keys), (cin, cout, k), bound)
        b = _uniform(next(keys), (cout,), bound)
        return w, b

    def linear_p(fin, fout):
        bound = 1.0 / math.sqrt(fin)
        w = _uniform(next(keys), (fin, fout), bound)
        b = _uniform(next(keys), (fout,), bound)
        return w, b

    def res_block(channels, hidden):
        w3, _ = conv_p(channels, hidden, 3, bias=False)
        w1, _ = conv_p(hidden, channels, 1, bias=False)
        return {"w3": w3, "b3": jnp.zeros((hidden,), jnp.float32),
                "w1": w1, "b1": jnp.zeros((channels,), jnp.float32)}

    p = {}
    p["enc1_w"], p["enc1_b"] = conv_p(num_neurons, num_hiddens // 2, 7)
    p["enc2_w"], p["enc2_b"] = conv_p(num_hiddens // 2, num_hiddens, 5)
    p["enc3_w"], p["enc3_b"] = conv_p(num_hiddens, num_hiddens, 3)
    p["enc_res"] = [res_block(num_hiddens, num_residual_hiddens)
                    for _ in range(num_residual_layers)]
    p["preq_w"], p["preq_b"] = conv_p(num_hiddens, embedding_dim, 1)
    p["codebook"] = _uniform(next(keys), (num_embeddings, embedding_dim),
                             1.0 / num_embeddings)
    p["dec_res"] = [res_block(embedding_dim, num_residual_hiddens)
                    for _ in range(num_residual_layers)]
    p["dect1_w"], p["dect1_b"] = convT_p(embedding_dim, num_hiddens, 3)
    p["dect2_w"], p["dect2_b"] = convT_p(num_hiddens, num_hiddens // 2, 5)
    p["decf_w"], p["decf_b"] = conv_p(num_hiddens // 2, num_neurons, 7)
    p["bh1_w"], p["bh1_b"] = linear_p(embedding_dim, behavior_hidden)
    p["bh2_w"], p["bh2_b"] = linear_p(behavior_hidden, behavior_dim)
    return p


def build_multiscale_params(key, num_neurons, base_params, scales):
    all_params = []
    for i, scale in enumerate(scales):
        sub_key = jax.random.fold_in(key, i)
        all_params.append(build_model_params(
            sub_key, num_neurons,
            num_hiddens=base_params["num_hiddens"],
            num_residual_layers=base_params["num_residual_layers"],
            num_residual_hiddens=base_params["num_residual_hiddens"],
            num_embeddings=base_params["num_embeddings"] // scale,
            embedding_dim=base_params["embedding_dim"] // scale,
            behavior_dim=base_params.get("behavior_dim", 4)))
    return all_params


# ---------------------------------------------------------------------------
# Main
# ---------------------------------------------------------------------------

if __name__ == "__main__":
    key = jax.random.PRNGKey(0)

    # small, forward-consistent shapes
    batch = 2
    num_neurons = 8
    time_steps = 32
    scales = [1, 2, 4]
    base_params = dict(num_hiddens=32, num_residual_layers=2,
                       num_residual_hiddens=16, num_embeddings=16,
                       embedding_dim=16, commitment_cost=0.25, behavior_dim=4)

    x = jax.random.normal(jax.random.fold_in(key, 1000),
                          (batch, num_neurons, time_steps), jnp.float32)

    params = build_multiscale_params(key, num_neurons, base_params, scales)
    outputs = multiscale_forward(params, x, scales,
                                 base_params["commitment_cost"])

    for out in outputs:
        jax.block_until_ready(out["vq_loss"])
        jax.block_until_ready(out["x_recon"])
        jax.block_until_ready(out["perplexity"])
        jax.block_until_ready(out["quantized"])
        jax.block_until_ready(out["behavior_pred"])
        assert out["x_recon"].shape == x.shape
        assert out["behavior_pred"].shape == (batch, base_params["behavior_dim"])

    print("KERNEL_OK")
</pallas_src>

<mosaic_0001>
module attributes {stable_mosaic.version = 11 : i64} {
  func.func @_conv_kernel(%arg0: i32, %arg1: i32, %arg2: memref<1x2x19x128xf32, #tpu.memory_space<vmem>>, %arg3: memref<7x128x128xf32, #tpu.memory_space<vmem>>, %arg4: memref<1x128xf32, #tpu.memory_space<vmem>>, %arg5: memref<1x16x128xf32, #tpu.memory_space<vmem>>) attributes {dimension_semantics = [#tpu.dimension_semantics<parallel>, #tpu.dimension_semantics<parallel>], iteration_bounds = array<i64: 2, 1>, scalar_prefetch = 0 : i64, scratch_operands = 0 : i64, tpu.core_type = #tpu.core_type<tc>, window_params = [{transform_indices = @transform_0, window_bounds = array<i64: 1, 2, 19, 128>}, {pipeline_mode = #tpu.pipeline_mode<synchronous>, transform_indices = @transform_1, window_bounds = array<i64: 7, 128, 128>}, {pipeline_mode = #tpu.pipeline_mode<synchronous>, transform_indices = @transform_2, window_bounds = array<i64: 1, 128>}, {transform_indices = @transform_3, window_bounds = array<i64: 1, 16, 128>}]} {
    %c16_i32 = arith.constant 16 : i32
    %0 = arith.muli %arg1, %c16_i32 : i32
    %1 = tpu.assume_multiple %0, 16 : i32
    %cst = arith.constant 0.000000e+00 : f32
    %2 = vector.broadcast %cst : f32 to vector<16x128xf32>
    %c0_i32 = arith.constant 0 : i32
    %3 = arith.addi %1, %c0_i32 : i32
    %c0 = arith.constant 0 : index
    %c0_0 = arith.constant 0 : index
    %4 = arith.index_cast %3 : i32 to index
    %c0_1 = arith.constant 0 : index
    %5 = vector.load %arg2[%c0, %c0_0, %4, %c0_1] : memref<1x2x19x128xf32, #tpu.memory_space<vmem>>, vector<1x1x16x128xf32>
    %6 = vector.shape_cast %5 : vector<1x1x16x128xf32> to vector<16x128xf32>
    %c0_2 = arith.constant 0 : index
    %c0_3 = arith.constant 0 : index
    %c0_4 = arith.constant 0 : index
    %7 = vector.load %arg3[%c0_2, %c0_3, %c0_4] : memref<7x128x128xf32, #tpu.memory_space<vmem>>, vector<1x128x128xf32>
    %8 = vector.shape_cast %7 : vector<1x128x128xf32> to vector<128x128xf32>
    %cst_5 = arith.constant dense<0.000000e+00> : vector<16x128xf32>
    %9 = tpu.matmul %6, %8, %cst_5 {dimension_numbers = #tpu.dot_dimension_numbers<[1], [0], [0], [1], [0, 0, 1, 1], [], []>} : vector<16x128xf32>, vector<128x128xf32>, vector<16x128xf32> -> vector<16x128xf32>
    %10 = arith.addf %2, %9 : vector<16x128xf32>
    %c0_i32_6 = arith.constant 0 : i32
    %11 = arith.addi %1, %c0_i32_6 : i32
    %c0_7 = arith.constant 0 : index
    %c1 = arith.constant 1 : index
    %12 = arith.index_cast %11 : i32 to index
    %c0_8 = arith.constant 0 : index
    %13 = vector.load %arg2[%c0_7, %c1, %12, %c0_8] : memref<1x2x19x128xf32, #tpu.memory_space<vmem>>, vector<1x1x16x128xf32>
    %14 = vector.shape_cast %13 : vector<1x1x16x128xf32> to vector<16x128xf32>
    %c1_9 = arith.constant 1 : index
    %c0_10 = arith.constant 0 : index
    %c0_11 = arith.constant 0 : index
    %15 = vector.load %arg3[%c1_9, %c0_10, %c0_11] : memref<7x128x128xf32, #tpu.memory_space<vmem>>, vector<1x128x128xf32>
    %16 = vector.shape_cast %15 : vector<1x128x128xf32> to vector<128x128xf32>
    %cst_12 = arith.constant dense<0.000000e+00> : vector<16x128xf32>
    %17 = tpu.matmul %14, %16, %cst_12 {dimension_numbers = #tpu.dot_dimension_numbers<[1], [0], [0], [1], [0, 0, 1, 1], [], []>} : vector<16x128xf32>, vector<128x128xf32>, vector<16x128xf32> -> vector<16x128xf32>
    %18 = arith.addf %10, %17 : vector<16x128xf32>
    %c1_i32 = arith.constant 1 : i32
    %19 = arith.addi %1, %c1_i32 : i32
    %c0_13 = arith.constant 0 : index
    %c0_14 = arith.constant 0 : index
    %20 = arith.index_cast %19 : i32 to index
    %c0_15 = arith.constant 0 : index
    %21 = vector.load %arg2[%c0_13, %c0_14, %20, %c0_15] : memref<1x2x19x128xf32, #tpu.memory_space<vmem>>, vector<1x1x16x128xf32>
    %22 = vector.shape_cast %21 : vector<1x1x16x128xf32> to vector<16x128xf32>
    %c2 = arith.constant 2 : index
    %c0_16 = arith.constant 0 : index
    %c0_17 = arith.constant 0 : index
    %23 = vector.load %arg3[%c2, %c0_16, %c0_17] : memref<7x128x128xf32, #tpu.memory_space<vmem>>, vector<1x128x128xf32>
    %24 = vector.shape_cast %23 : vector<1x128x128xf32> to vector<128x128xf32>
    %cst_18 = arith.constant dense<0.000000e+00> : vector<16x128xf32>
    %25 = tpu.matmul %22, %24, %cst_18 {dimension_numbers = #tpu.dot_dimension_numbers<[1], [0], [0], [1], [0, 0, 1, 1], [], []>} : vector<16x128xf32>, vector<128x128xf32>, vector<16x128xf32> -> vector<16x128xf32>
    %26 = arith.addf %18, %25 : vector<16x128xf32>
    %c1_i32_19 = arith.constant 1 : i32
    %27 = arith.addi %1, %c1_i32_19 : i32
    %c0_20 = arith.constant 0 : index
    %c1_21 = arith.constant 1 : index
    %28 = arith.index_cast %27 : i32 to index
    %c0_22 = arith.constant 0 : index
    %29 = vector.load %arg2[%c0_20, %c1_21, %28, %c0_22] : memref<1x2x19x128xf32, #tpu.memory_space<vmem>>, vector<1x1x16x128xf32>
    %30 = vector.shape_cast %29 : vector<1x1x16x128xf32> to vector<16x128xf32>
    %c3 = arith.constant 3 : index
    %c0_23 = arith.constant 0 : index
    %c0_24 = arith.constant 0 : index
    %31 = vector.load %arg3[%c3, %c0_23, %c0_24] : memref<7x128x128xf32, #tpu.memory_space<vmem>>, vector<1x128x128xf32>
    %32 = vector.shape_cast %31 : vector<1x128x128xf32> to vector<128x128xf32>
    %cst_25 = arith.constant dense<0.000000e+00> : vector<16x128xf32>
    %33 = tpu.matmul %30, %32, %cst_25 {dimension_numbers = #tpu.dot_dimension_numbers<[1], [0], [0], [1], [0, 0, 1, 1], [], []>} : vector<16x128xf32>, vector<128x128xf32>, vector<16x128xf32> -> vector<16x128xf32>
    %34 = arith.addf %26, %33 : vector<16x128xf32>
    %c2_i32 = arith.constant 2 : i32
    %35 = arith.addi %1, %c2_i32 : i32
    %c0_26 = arith.constant 0 : index
    %c0_27 = arith.constant 0 : index
    %36 = arith.index_cast %35 : i32 to index
    %c0_28 = arith.constant 0 : index
    %37 = vector.load %arg2[%c0_26, %c0_27, %36, %c0_28] : memref<1x2x19x128xf32, #tpu.memory_space<vmem>>, vector<1x1x16x128xf32>
    %38 = vector.shape_cast %37 : vector<1x1x16x128xf32> to vector<16x128xf32>
    %c4 = arith.constant 4 : index
    %c0_29 = arith.constant 0 : index
    %c0_30 = arith.constant 0 : index
    %39 = vector.load %arg3[%c4, %c0_29, %c0_30] : memref<7x128x128xf32, #tpu.memory_space<vmem>>, vector<1x128x128xf32>
    %40 = vector.shape_cast %39 : vector<1x128x128xf32> to vector<128x128xf32>
    %cst_31 = arith.constant dense<0.000000e+00> : vector<16x128xf32>
    %41 = tpu.matmul %38, %40, %cst_31 {dimension_numbers = #tpu.dot_dimension_numbers<[1], [0], [0], [1], [0, 0, 1, 1], [], []>} : vector<16x128xf32>, vector<128x128xf32>, vector<16x128xf32> -> vector<16x128xf32>
    %42 = arith.addf %34, %41 : vector<16x128xf32>
    %c2_i32_32 = arith.constant 2 : i32
    %43 = arith.addi %1, %c2_i32_32 : i32
    %c0_33 = arith.constant 0 : index
    %c1_34 = arith.constant 1 : index
    %44 = arith.index_cast %43 : i32 to index
    %c0_35 = arith.constant 0 : index
    %45 = vector.load %arg2[%c0_33, %c1_34, %44, %c0_35] : memref<1x2x19x128xf32, #tpu.memory_space<vmem>>, vector<1x1x16x128xf32>
    %46 = vector.shape_cast %45 : vector<1x1x16x128xf32> to vector<16x128xf32>
    %c5 = arith.constant 5 : index
    %c0_36 = arith.constant 0 : index
    %c0_37 = arith.constant 0 : index
    %47 = vector.load %arg3[%c5, %c0_36, %c0_37] : memref<7x128x128xf32, #tpu.memory_space<vmem>>, vector<1x128x128xf32>
    %48 = vector.shape_cast %47 : vector<1x128x128xf32> to vector<128x128xf32>
    %cst_38 = arith.constant dense<0.000000e+00> : vector<16x128xf32>
    %49 = tpu.matmul %46, %48, %cst_38 {dimension_numbers = #tpu.dot_dimension_numbers<[1], [0], [0], [1], [0, 0, 1, 1], [], []>} : vector<16x128xf32>, vector<128x128xf32>, vector<16x128xf32> -> vector<16x128xf32>
    %50 = arith.addf %42, %49 : vector<16x128xf32>
    %c3_i32 = arith.constant 3 : i32
    %51 = arith.addi %1, %c3_i32 : i32
    %c0_39 = arith.constant 0 : index
    %c0_40 = arith.constant 0 : index
    %52 = arith.index_cast %51 : i32 to index
    %c0_41 = arith.constant 0 : index
    %53 = vector.load %arg2[%c0_39, %c0_40, %52, %c0_41] : memref<1x2x19x128xf32, #tpu.memory_space<vmem>>, vector<1x1x16x128xf32>
    %54 = vector.shape_cast %53 : vector<1x1x16x128xf32> to vector<16x128xf32>
    %c6 = arith.constant 6 : index
    %c0_42 = arith.constant 0 : index
    %c0_43 = arith.constant 0 : index
    %55 = vector.load %arg3[%c6, %c0_42, %c0_43] : memref<7x128x128xf32, #tpu.memory_space<vmem>>, vector<1x128x128xf32>
    %56 = vector.shape_cast %55 : vector<1x128x128xf32> to vector<128x128xf32>
    %cst_44 = arith.constant dense<0.000000e+00> : vector<16x128xf32>
    %57 = tpu.matmul %54, %56, %cst_44 {dimension_numbers = #tpu.dot_dimension_numbers<[1], [0], [0], [1], [0, 0, 1, 1], [], []>} : vector<16x128xf32>, vector<128x128xf32>, vector<16x128xf32> -> vector<16x128xf32>
    %58 = arith.addf %50, %57 : vector<16x128xf32>
    %c0_45 = arith.constant 0 : index
    %c0_46 = arith.constant 0 : index
    %59 = vector.load %arg4[%c0_45, %c0_46] : memref<1x128xf32, #tpu.memory_space<vmem>>, vector<1x128xf32>
    %60 = vector.broadcast %59 : vector<1x128xf32> to vector<16x128xf32>
    %61 = arith.addf %58, %60 : vector<16x128xf32>
    %cst_47 = arith.constant 0.000000e+00 : f32
    %62 = vector.broadcast %cst_47 : f32 to vector<16x128xf32>
    %63 = arith.maximumf %61, %62 : vector<16x128xf32>
    %c0_48 = arith.constant 0 : index
    %c0_49 = arith.constant 0 : index
    %c0_50 = arith.constant 0 : index
    %64 = vector.load %arg5[%c0_48, %c0_49, %c0_50] : memref<1x16x128xf32, #tpu.memory_space<vmem>>, vector<1x16x128xf32>
    %65 = vector.shape_cast %64 : vector<1x16x128xf32> to vector<16x128xf32>
    %66 = vector.shape_cast %63 : vector<16x128xf32> to vector<1x16x128xf32>
    tpu.vector_store %arg5[%c0_48, %c0_49, %c0_50], %66 {strides = array<i32>} : memref<1x16x128xf32, #tpu.memory_space<vmem>>, vector<1x16x128xf32>,
    return
  }
  func.func @transform_0(%arg0: i32, %arg1: i32) -> (i32, i32, i32, i32) {
    %c0_i32 = arith.constant 0 : i32
    %c0_i32_0 = arith.constant 0 : i32
    %c0_i32_1 = arith.constant 0 : i32
    %c0_i32_2 = arith.constant 0 : i32
    return %arg0, %c0_i32, %c0_i32_0, %c0_i32_1 : i32, i32, i32, i32
  }
  func.func @transform_1(%arg0: i32, %arg1: i32) -> (i32, i32, i32) {
    %c0_i32 = arith.constant 0 : i32
    %c0_i32_0 = arith.constant 0 : i32
    %c0_i32_1 = arith.constant 0 : i32
    %c0_i32_2 = arith.constant 0 : i32
    return %c0_i32, %c0_i32_0, %c0_i32_1 : i32, i32, i32
  }
  func.func @transform_2(%arg0: i32, %arg1: i32) -> (i32, i32) {
    %c0_i32 = arith.constant 0 : i32
    %c0_i32_0 = arith.constant 0 : i32
    %c0_i32_1 = arith.constant 0 : i32
    return %c0_i32, %c0_i32_0 : i32, i32
  }
  func.func @transform_3(%arg0: i32, %arg1: i32) -> (i32, i32, i32) {
    %c0_i32 = arith.constant 0 : i32
    %c0_i32_0 = arith.constant 0 : i32
    return %arg0, %arg1, %c0_i32 : i32, i32, i32
  }
}

module attributes {stable_mosaic.version = 11 : i64} {
  func.func @_conv_kernel(%arg0: i32, %arg1: i32, %arg2: memref<1x2x10x128xf32, #tpu.memory_space<vmem>>, %arg3: memref<5x128x128xf32, #tpu.memory_space<vmem>>, %arg4: memref<1x128xf32, #tpu.memory_space<vmem>>, %arg5: memref<1x8x128xf32, #tpu.memory_space<vmem>>) attributes {dimension_semantics = [#tpu.dimension_semantics<parallel>, #tpu.dimension_semantics<parallel>], iteration_bounds = array<i64: 2, 1>, scalar_prefetch = 0 : i64, scratch_operands = 0 : i64, tpu.core_type = #tpu.core_type<tc>, window_params = [{transform_indices = @transform_0, window_bounds = array<i64: 1, 2, 10, 128>}, {pipeline_mode = #tpu.pipeline_mode<synchronous>, transform_indices = @transform_1, window_bounds = array<i64: 5, 128, 128>}, {pipeline_mode = #tpu.pipeline_mode<synchronous>, transform_indices = @transform_2, window_bounds = array<i64: 1, 128>}, {transform_indices = @transform_3, window_bounds = array<i64: 1, 8, 128>}]} {
    %c8_i32 = arith.constant 8 : i32
    %0 = arith.muli %arg1, %c8_i32 : i32
    %1 = tpu.assume_multiple %0, 8 : i32
    %cst = arith.constant 0.000000e+00 : f32
    %2 = vector.broadcast %cst : f32 to vector<8x128xf32>
    %c0_i32 = arith.constant 0 : i32
    %3 = arith.addi %1, %c0_i32 : i32
    %c0 = arith.constant 0 : index
    %c0_0 = arith.constant 0 : index
    %4 = arith.index_cast %3 : i32 to index
    %c0_1 = arith.constant 0 : index
    %5 = vector.load %arg2[%c0, %c0_0, %4, %c0_1] : memref<1x2x10x128xf32, #tpu.memory_space<vmem>>, vector<1x1x8x128xf32>
    %6 = vector.shape_cast %5 : vector<1x1x8x128xf32> to vector<8x128xf32>
    %c0_2 = arith.constant 0 : index
    %c0_3 = arith.constant 0 : index
    %c0_4 = arith.constant 0 : index
    %7 = vector.load %arg3[%c0_2, %c0_3, %c0_4] : memref<5x128x128xf32, #tpu.memory_space<vmem>>, vector<1x128x128xf32>
    %8 = vector.shape_cast %7 : vector<1x128x128xf32> to vector<128x128xf32>
    %cst_5 = arith.constant dense<0.000000e+00> : vector<8x128xf32>
    %9 = tpu.matmul %6, %8, %cst_5 {dimension_numbers = #tpu.dot_dimension_numbers<[1], [0], [0], [1], [0, 0, 1, 1], [], []>} : vector<8x128xf32>, vector<128x128xf32>, vector<8x128xf32> -> vector<8x128xf32>
    %10 = arith.addf %2, %9 : vector<8x128xf32>
    %c0_i32_6 = arith.constant 0 : i32
    %11 = arith.addi %1, %c0_i32_6 : i32
    %c0_7 = arith.constant 0 : index
    %c1 = arith.constant 1 : index
    %12 = arith.index_cast %11 : i32 to index
    %c0_8 = arith.constant 0 : index
    %13 = vector.load %arg2[%c0_7, %c1, %12, %c0_8] : memref<1x2x10x128xf32, #tpu.memory_space<vmem>>, vector<1x1x8x128xf32>
    %14 = vector.shape_cast %13 : vector<1x1x8x128xf32> to vector<8x128xf32>
    %c1_9 = arith.constant 1 : index
    %c0_10 = arith.constant 0 : index
    %c0_11 = arith.constant 0 : index
    %15 = vector.load %arg3[%c1_9, %c0_10, %c0_11] : memref<5x128x128xf32, #tpu.memory_space<vmem>>, vector<1x128x128xf32>
    %16 = vector.shape_cast %15 : vector<1x128x128xf32> to vector<128x128xf32>
    %cst_12 = arith.constant dense<0.000000e+00> : vector<8x128xf32>
    %17 = tpu.matmul %14, %16, %cst_12 {dimension_numbers = #tpu.dot_dimension_numbers<[1], [0], [0], [1], [0, 0, 1, 1], [], []>} : vector<8x128xf32>, vector<128x128xf32>, vector<8x128xf32> -> vector<8x128xf32>
    %18 = arith.addf %10, %17 : vector<8x128xf32>
    %c1_i32 = arith.constant 1 : i32
    %19 = arith.addi %1, %c1_i32 : i32
    %c0_13 = arith.constant 0 : index
    %c0_14 = arith.constant 0 : index
    %20 = arith.index_cast %19 : i32 to index
    %c0_15 = arith.constant 0 : index
    %21 = vector.load %arg2[%c0_13, %c0_14, %20, %c0_15] : memref<1x2x10x128xf32, #tpu.memory_space<vmem>>, vector<1x1x8x128xf32>
    %22 = vector.shape_cast %21 : vector<1x1x8x128xf32> to vector<8x128xf32>
    %c2 = arith.constant 2 : index
    %c0_16 = arith.constant 0 : index
    %c0_17 = arith.constant 0 : index
    %23 = vector.load %arg3[%c2, %c0_16, %c0_17] : memref<5x128x128xf32, #tpu.memory_space<vmem>>, vector<1x128x128xf32>
    %24 = vector.shape_cast %23 : vector<1x128x128xf32> to vector<128x128xf32>
    %cst_18 = arith.constant dense<0.000000e+00> : vector<8x128xf32>
    %25 = tpu.matmul %22, %24, %cst_18 {dimension_numbers = #tpu.dot_dimension_numbers<[1], [0], [0], [1], [0, 0, 1, 1], [], []>} : vector<8x128xf32>, vector<128x128xf32>, vector<8x128xf32> -> vector<8x128xf32>
    %26 = arith.addf %18, %25 : vector<8x128xf32>
    %c1_i32_19 = arith.constant 1 : i32
    %27 = arith.addi %1, %c1_i32_19 : i32
    %c0_20 = arith.constant 0 : index
    %c1_21 = arith.constant 1 : index
    %28 = arith.index_cast %27 : i32 to index
    %c0_22 = arith.constant 0 : index
    %29 = vector.load %arg2[%c0_20, %c1_21, %28, %c0_22] : memref<1x2x10x128xf32, #tpu.memory_space<vmem>>, vector<1x1x8x128xf32>
    %30 = vector.shape_cast %29 : vector<1x1x8x128xf32> to vector<8x128xf32>
    %c3 = arith.constant 3 : index
    %c0_23 = arith.constant 0 : index
    %c0_24 = arith.constant 0 : index
    %31 = vector.load %arg3[%c3, %c0_23, %c0_24] : memref<5x128x128xf32, #tpu.memory_space<vmem>>, vector<1x128x128xf32>
    %32 = vector.shape_cast %31 : vector<1x128x128xf32> to vector<128x128xf32>
    %cst_25 = arith.constant dense<0.000000e+00> : vector<8x128xf32>
    %33 = tpu.matmul %30, %32, %cst_25 {dimension_numbers = #tpu.dot_dimension_numbers<[1], [0], [0], [1], [0, 0, 1, 1], [], []>} : vector<8x128xf32>, vector<128x128xf32>, vector<8x128xf32> -> vector<8x128xf32>
    %34 = arith.addf %26, %33 : vector<8x128xf32>
    %c2_i32 = arith.constant 2 : i32
    %35 = arith.addi %1, %c2_i32 : i32
    %c0_26 = arith.constant 0 : index
    %c0_27 = arith.constant 0 : index
    %36 = arith.index_cast %35 : i32 to index
    %c0_28 = arith.constant 0 : index
    %37 = vector.load %arg2[%c0_26, %c0_27, %36, %c0_28] : memref<1x2x10x128xf32, #tpu.memory_space<vmem>>, vector<1x1x8x128xf32>
    %38 = vector.shape_cast %37 : vector<1x1x8x128xf32> to vector<8x128xf32>
    %c4 = arith.constant 4 : index
    %c0_29 = arith.constant 0 : index
    %c0_30 = arith.constant 0 : index
    %39 = vector.load %arg3[%c4, %c0_29, %c0_30] : memref<5x128x128xf32, #tpu.memory_space<vmem>>, vector<1x128x128xf32>
    %40 = vector.shape_cast %39 : vector<1x128x128xf32> to vector<128x128xf32>
    %cst_31 = arith.constant dense<0.000000e+00> : vector<8x128xf32>
    %41 = tpu.matmul %38, %40, %cst_31 {dimension_numbers = #tpu.dot_dimension_numbers<[1], [0], [0], [1], [0, 0, 1, 1], [], []>} : vector<8x128xf32>, vector<128x128xf32>, vector<8x128xf32> -> vector<8x128xf32>
    %42 = arith.addf %34, %41 : vector<8x128xf32>
    %c0_32 = arith.constant 0 : index
    %c0_33 = arith.constant 0 : index
    %43 = vector.load %arg4[%c0_32, %c0_33] : memref<1x128xf32, #tpu.memory_space<vmem>>, vector<1x128xf32>
    %44 = vector.broadcast %43 : vector<1x128xf32> to vector<8x128xf32>
    %45 = arith.addf %42, %44 : vector<8x128xf32>
    %cst_34 = arith.constant 0.000000e+00 : f32
    %46 = vector.broadcast %cst_34 : f32 to vector<8x128xf32>
    %47 = arith.maximumf %45, %46 : vector<8x128xf32>
    %c0_35 = arith.constant 0 : index
    %c0_36 = arith.constant 0 : index
    %c0_37 = arith.constant 0 : index
    %48 = vector.load %arg5[%c0_35, %c0_36, %c0_37] : memref<1x8x128xf32, #tpu.memory_space<vmem>>, vector<1x8x128xf32>
    %49 = vector.shape_cast %48 : vector<1x8x128xf32> to vector<8x128xf32>
    %50 = vector.shape_cast %47 : vector<8x128xf32> to vector<1x8x128xf32>
    tpu.vector_store %arg5[%c0_35, %c0_36, %c0_37], %50 {strides = array<i32>} : memref<1x8x128xf32, #tpu.memory_space<vmem>>, vector<1x8x128xf32>,
    return
  }
  func.func @transform_0(%arg0: i32, %arg1: i32) -> (i32, i32, i32, i32) {
    %c0_i32 = arith.constant 0 : i32
    %c0_i32_0 = arith.constant 0 : i32
    %c0_i32_1 = arith.constant 0 : i32
    %c0_i32_2 = arith.constant 0 : i32
    return %arg0, %c0_i32, %c0_i32_0, %c0_i32_1 : i32, i32, i32, i32
  }
  func.func @transform_1(%arg0: i32, %arg1: i32) -> (i32, i32, i32) {
    %c0_i32 = arith.constant 0 : i32
    %c0_i32_0 = arith.constant 0 : i32
    %c0_i32_1 = arith.constant 0 : i32
    %c0_i32_2 = arith.constant 0 : i32
    return %c0_i32, %c0_i32_0, %c0_i32_1 : i32, i32, i32
  }
  func.func @transform_2(%arg0: i32, %arg1: i32) -> (i32, i32) {
    %c0_i32 = arith.constant 0 : i32
    %c0_i32_0 = arith.constant 0 : i32
    %c0_i32_1 = arith.constant 0 : i32
    return %c0_i32, %c0_i32_0 : i32, i32
  }
  func.func @transform_3(%arg0: i32, %arg1: i32) -> (i32, i32, i32) {
    %c0_i32 = arith.constant 0 : i32
    %c0_i32_0 = arith.constant 0 : i32
    return %arg0, %arg1, %c0_i32 : i32, i32, i32
  }
}

module attributes {stable_mosaic.version = 11 : i64} {
  func.func @_conv_kernel(%arg0: i32, %arg1: i32, %arg2: memref<1x1x10x128xf32, #tpu.memory_space<vmem>>, %arg3: memref<3x128x128xf32, #tpu.memory_space<vmem>>, %arg4: memref<1x128xf32, #tpu.memory_space<vmem>>, %arg5: memref<1x8x128xf32, #tpu.memory_space<vmem>>) attributes {dimension_semantics = [#tpu.dimension_semantics<parallel>, #tpu.dimension_semantics<parallel>], iteration_bounds = array<i64: 2, 1>, scalar_prefetch = 0 : i64, scratch_operands = 0 : i64, tpu.core_type = #tpu.core_type<tc>, window_params = [{transform_indices = @transform_0, window_bounds = array<i64: 1, 1, 10, 128>}, {pipeline_mode = #tpu.pipeline_mode<synchronous>, transform_indices = @transform_1, window_bounds = array<i64: 3, 128, 128>}, {pipeline_mode = #tpu.pipeline_mode<synchronous>, transform_indices = @transform_2, window_bounds = array<i64: 1, 128>}, {transform_indices = @transform_3, window_bounds = array<i64: 1, 8, 128>}]} {
    %c8_i32 = arith.constant 8 : i32
    %0 = arith.muli %arg1, %c8_i32 : i32
    %1 = tpu.assume_multiple %0, 8 : i32
    %cst = arith.constant 0.000000e+00 : f32
    %2 = vector.broadcast %cst : f32 to vector<8x128xf32>
    %c0_i32 = arith.constant 0 : i32
    %3 = arith.addi %1, %c0_i32 : i32
    %c0 = arith.constant 0 : index
    %c0_0 = arith.constant 0 : index
    %4 = arith.index_cast %3 : i32 to index
    %c0_1 = arith.constant 0 : index
    %5 = vector.load %arg2[%c0, %c0_0, %4, %c0_1] : memref<1x1x10x128xf32, #tpu.memory_space<vmem>>, vector<1x1x8x128xf32>
    %6 = vector.shape_cast %5 : vector<1x1x8x128xf32> to vector<8x128xf32>
    %c0_2 = arith.constant 0 : index
    %c0_3 = arith.constant 0 : index
    %c0_4 = arith.constant 0 : index
    %7 = vector.load %arg3[%c0_2, %c0_3, %c0_4] : memref<3x128x128xf32, #tpu.memory_space<vmem>>, vector<1x128x128xf32>
    %8 = vector.shape_cast %7 : vector<1x128x128xf32> to vector<128x128xf32>
    %cst_5 = arith.constant dense<0.000000e+00> : vector<8x128xf32>
    %9 = tpu.matmul %6, %8, %cst_5 {dimension_numbers = #tpu.dot_dimension_numbers<[1], [0], [0], [1], [0, 0, 1, 1], [], []>} : vector<8x128xf32>, vector<128x128xf32>, vector<8x128xf32> -> vector<8x128xf32>
    %10 = arith.addf %2, %9 : vector<8x128xf32>
    %c1_i32 = arith.constant 1 : i32
    %11 = arith.addi %1, %c1_i32 : i32
    %c0_6 = arith.constant 0 : index
    %c0_7 = arith.constant 0 : index
    %12 = arith.index_cast %11 : i32 to index
    %c0_8 = arith.constant 0 : index
    %13 = vector.load %arg2[%c0_6, %c0_7, %12, %c0_8] : memref<1x1x10x128xf32, #tpu.memory_space<vmem>>, vector<1x1x8x128xf32>
    %14 = vector.shape_cast %13 : vector<1x1x8x128xf32> to vector<8x128xf32>
    %c1 = arith.constant 1 : index
    %c0_9 = arith.constant 0 : index
    %c0_10 = arith.constant 0 : index
    %15 = vector.load %arg3[%c1, %c0_9, %c0_10] : memref<3x128x128xf32, #tpu.memory_space<vmem>>, vector<1x128x128xf32>
    %16 = vector.shape_cast %15 : vector<1x128x128xf32> to vector<128x128xf32>
    %cst_11 = arith.constant dense<0.000000e+00> : vector<8x128xf32>
    %17 = tpu.matmul %14, %16, %cst_11 {dimension_numbers = #tpu.dot_dimension_numbers<[1], [0], [0], [1], [0, 0, 1, 1], [], []>} : vector<8x128xf32>, vector<128x128xf32>, vector<8x128xf32> -> vector<8x128xf32>
    %18 = arith.addf %10, %17 : vector<8x128xf32>
    %c2_i32 = arith.constant 2 : i32
    %19 = arith.addi %1, %c2_i32 : i32
    %c0_12 = arith.constant 0 : index
    %c0_13 = arith.constant 0 : index
    %20 = arith.index_cast %19 : i32 to index
    %c0_14 = arith.constant 0 : index
    %21 = vector.load %arg2[%c0_12, %c0_13, %20, %c0_14] : memref<1x1x10x128xf32, #tpu.memory_space<vmem>>, vector<1x1x8x128xf32>
    %22 = vector.shape_cast %21 : vector<1x1x8x128xf32> to vector<8x128xf32>
    %c2 = arith.constant 2 : index
    %c0_15 = arith.constant 0 : index
    %c0_16 = arith.constant 0 : index
    %23 = vector.load %arg3[%c2, %c0_15, %c0_16] : memref<3x128x128xf32, #tpu.memory_space<vmem>>, vector<1x128x128xf32>
    %24 = vector.shape_cast %23 : vector<1x128x128xf32> to vector<128x128xf32>
    %cst_17 = arith.constant dense<0.000000e+00> : vector<8x128xf32>
    %25 = tpu.matmul %22, %24, %cst_17 {dimension_numbers = #tpu.dot_dimension_numbers<[1], [0], [0], [1], [0, 0, 1, 1], [], []>} : vector<8x128xf32>, vector<128x128xf32>, vector<8x128xf32> -> vector<8x128xf32>
    %26 = arith.addf %18, %25 : vector<8x128xf32>
    %c0_18 = arith.constant 0 : index
    %c0_19 = arith.constant 0 : index
    %27 = vector.load %arg4[%c0_18, %c0_19] : memref<1x128xf32, #tpu.memory_space<vmem>>, vector<1x128xf32>
    %28 = vector.broadcast %27 : vector<1x128xf32> to vector<8x128xf32>
    %29 = arith.addf %26, %28 : vector<8x128xf32>
    %c0_20 = arith.constant 0 : index
    %c0_21 = arith.constant 0 : index
    %c0_22 = arith.constant 0 : index
    %30 = vector.load %arg5[%c0_20, %c0_21, %c0_22] : memref<1x8x128xf32, #tpu.memory_space<vmem>>, vector<1x8x128xf32>
    %31 = vector.shape_cast %30 : vector<1x8x128xf32> to vector<8x128xf32>
    %32 = vector.shape_cast %29 : vector<8x128xf32> to vector<1x8x128xf32>
    tpu.vector_store %arg5[%c0_20, %c0_21, %c0_22], %32 {strides = array<i32>} : memref<1x8x128xf32, #tpu.memory_space<vmem>>, vector<1x8x128xf32>,
    return
  }
  func.func @transform_0(%arg0: i32, %arg1: i32) -> (i32, i32, i32, i32) {
    %c0_i32 = arith.constant 0 : i32
    %c0_i32_0 = arith.constant 0 : i32
    %c0_i32_1 = arith.constant 0 : i32
    %c0_i32_2 = arith.constant 0 : i32
    return %arg0, %c0_i32, %c0_i32_0, %c0_i32_1 : i32, i32, i32, i32
  }
  func.func @transform_1(%arg0: i32, %arg1: i32) -> (i32, i32, i32) {
    %c0_i32 = arith.constant 0 : i32
    %c0_i32_0 = arith.constant 0 : i32
    %c0_i32_1 = arith.constant 0 : i32
    %c0_i32_2 = arith.constant 0 : i32
    return %c0_i32, %c0_i32_0, %c0_i32_1 : i32, i32, i32
  }
  func.func @transform_2(%arg0: i32, %arg1: i32) -> (i32, i32) {
    %c0_i32 = arith.constant 0 : i32
    %c0_i32_0 = arith.constant 0 : i32
    %c0_i32_1 = arith.constant 0 : i32
    return %c0_i32, %c0_i32_0 : i32, i32
  }
  func.func @transform_3(%arg0: i32, %arg1: i32) -> (i32, i32, i32) {
    %c0_i32 = arith.constant 0 : i32
    %c0_i32_0 = arith.constant 0 : i32
    return %arg0, %arg1, %c0_i32 : i32, i32, i32
  }
}

module attributes {stable_mosaic.version = 11 : i64} {
  func.func @_resblock_kernel(%arg0: i32, %arg1: i32, %arg2: memref<1x10x128xf32, #tpu.memory_space<vmem>>, %arg3: memref<3x128x128xf32, #tpu.memory_space<vmem>>, %arg4: memref<1x128xf32, #tpu.memory_space<vmem>>, %arg5: memref<128x128xf32, #tpu.memory_space<vmem>>, %arg6: memref<1x128xf32, #tpu.memory_space<vmem>>, %arg7: memref<1x8x128xf32, #tpu.memory_space<vmem>>) attributes {dimension_semantics = [#tpu.dimension_semantics<parallel>, #tpu.dimension_semantics<parallel>], iteration_bounds = array<i64: 2, 1>, scalar_prefetch = 0 : i64, scratch_operands = 0 : i64, tpu.core_type = #tpu.core_type<tc>, window_params = [{transform_indices = @transform_0, window_bounds = array<i64: 1, 10, 128>}, {pipeline_mode = #tpu.pipeline_mode<synchronous>, transform_indices = @transform_1, window_bounds = array<i64: 3, 128, 128>}, {pipeline_mode = #tpu.pipeline_mode<synchronous>, transform_indices = @transform_2, window_bounds = array<i64: 1, 128>}, {pipeline_mode = #tpu.pipeline_mode<synchronous>, transform_indices = @transform_3, window_bounds = array<i64: 128, 128>}, {pipeline_mode = #tpu.pipeline_mode<synchronous>, transform_indices = @transform_4, window_bounds = array<i64: 1, 128>}, {transform_indices = @transform_5, window_bounds = array<i64: 1, 8, 128>}]} {
    %c8_i32 = arith.constant 8 : i32
    %0 = arith.muli %arg1, %c8_i32 : i32
    %1 = tpu.assume_multiple %0, 8 : i32
    %cst = arith.constant 0.000000e+00 : f32
    %2 = vector.broadcast %cst : f32 to vector<8x128xf32>
    %c0_i32 = arith.constant 0 : i32
    %3 = arith.addi %1, %c0_i32 : i32
    %c0 = arith.constant 0 : index
    %4 = arith.index_cast %3 : i32 to index
    %c0_0 = arith.constant 0 : index
    %5 = vector.load %arg2[%c0, %4, %c0_0] : memref<1x10x128xf32, #tpu.memory_space<vmem>>, vector<1x8x128xf32>
    %6 = vector.shape_cast %5 : vector<1x8x128xf32> to vector<8x128xf32>
    %cst_1 = arith.constant 0.000000e+00 : f32
    %7 = vector.broadcast %cst_1 : f32 to vector<8x128xf32>
    %8 = arith.maximumf %6, %7 : vector<8x128xf32>
    %c0_2 = arith.constant 0 : index
    %c0_3 = arith.constant 0 : index
    %c0_4 = arith.constant 0 : index
    %9 = vector.load %arg3[%c0_2, %c0_3, %c0_4] : memref<3x128x128xf32, #tpu.memory_space<vmem>>, vector<1x128x128xf32>
    %10 = vector.shape_cast %9 : vector<1x128x128xf32> to vector<128x128xf32>
    %cst_5 = arith.constant dense<0.000000e+00> : vector<8x128xf32>
    %11 = tpu.matmul %8, %10, %cst_5 {dimension_numbers = #tpu.dot_dimension_numbers<[1], [0], [0], [1], [0, 0, 1, 1], [], []>} : vector<8x128xf32>, vector<128x128xf32>, vector<8x128xf32> -> vector<8x128xf32>
    %12 = arith.addf %2, %11 : vector<8x128xf32>
    %c1_i32 = arith.constant 1 : i32
    %13 = arith.addi %1, %c1_i32 : i32
    %c0_6 = arith.constant 0 : index
    %14 = arith.index_cast %13 : i32 to index
    %c0_7 = arith.constant 0 : index
    %15 = vector.load %arg2[%c0_6, %14, %c0_7] : memref<1x10x128xf32, #tpu.memory_space<vmem>>, vector<1x8x128xf32>
    %16 = vector.shape_cast %15 : vector<1x8x128xf32> to vector<8x128xf32>
    %cst_8 = arith.constant 0.000000e+00 : f32
    %17 = vector.broadcast %cst_8 : f32 to vector<8x128xf32>
    %18 = arith.maximumf %16, %17 : vector<8x128xf32>
    %c1 = arith.constant 1 : index
    %c0_9 = arith.constant 0 : index
    %c0_10 = arith.constant 0 : index
    %19 = vector.load %arg3[%c1, %c0_9, %c0_10] : memref<3x128x128xf32, #tpu.memory_space<vmem>>, vector<1x128x128xf32>
    %20 = vector.shape_cast %19 : vector<1x128x128xf32> to vector<128x128xf32>
    %cst_11 = arith.constant dense<0.000000e+00> : vector<8x128xf32>
    %21 = tpu.matmul %18, %20, %cst_11 {dimension_numbers = #tpu.dot_dimension_numbers<[1], [0], [0], [1], [0, 0, 1, 1], [], []>} : vector<8x128xf32>, vector<128x128xf32>, vector<8x128xf32> -> vector<8x128xf32>
    %22 = arith.addf %12, %21 : vector<8x128xf32>
    %c2_i32 = arith.constant 2 : i32
    %23 = arith.addi %1, %c2_i32 : i32
    %c0_12 = arith.constant 0 : index
    %24 = arith.index_cast %23 : i32 to index
    %c0_13 = arith.constant 0 : index
    %25 = vector.load %arg2[%c0_12, %24, %c0_13] : memref<1x10x128xf32, #tpu.memory_space<vmem>>, vector<1x8x128xf32>
    %26 = vector.shape_cast %25 : vector<1x8x128xf32> to vector<8x128xf32>
    %cst_14 = arith.constant 0.000000e+00 : f32
    %27 = vector.broadcast %cst_14 : f32 to vector<8x128xf32>
    %28 = arith.maximumf %26, %27 : vector<8x128xf32>
    %c2 = arith.constant 2 : index
    %c0_15 = arith.constant 0 : index
    %c0_16 = arith.constant 0 : index
    %29 = vector.load %arg3[%c2, %c0_15, %c0_16] : memref<3x128x128xf32, #tpu.memory_space<vmem>>, vector<1x128x128xf32>
    %30 = vector.shape_cast %29 : vector<1x128x128xf32> to vector<128x128xf32>
    %cst_17 = arith.constant dense<0.000000e+00> : vector<8x128xf32>
    %31 = tpu.matmul %28, %30, %cst_17 {dimension_numbers = #tpu.dot_dimension_numbers<[1], [0], [0], [1], [0, 0, 1, 1], [], []>} : vector<8x128xf32>, vector<128x128xf32>, vector<8x128xf32> -> vector<8x128xf32>
    %32 = arith.addf %22, %31 : vector<8x128xf32>
    %c0_18 = arith.constant 0 : index
    %c0_19 = arith.constant 0 : index
    %33 = vector.load %arg4[%c0_18, %c0_19] : memref<1x128xf32, #tpu.memory_space<vmem>>, vector<1x128xf32>
    %34 = vector.broadcast %33 : vector<1x128xf32> to vector<8x128xf32>
    %35 = arith.addf %32, %34 : vector<8x128xf32>
    %cst_20 = arith.constant 0.000000e+00 : f32
    %36 = vector.broadcast %cst_20 : f32 to vector<8x128xf32>
    %37 = arith.maximumf %35, %36 : vector<8x128xf32>
    %c0_21 = arith.constant 0 : index
    %c0_22 = arith.constant 0 : index
    %38 = vector.load %arg5[%c0_21, %c0_22] : memref<128x128xf32, #tpu.memory_space<vmem>>, vector<128x128xf32>
    %cst_23 = arith.constant dense<0.000000e+00> : vector<8x128xf32>
    %39 = tpu.matmul %37, %38, %cst_23 {dimension_numbers = #tpu.dot_dimension_numbers<[1], [0], [0], [1], [0, 0, 1, 1], [], []>} : vector<8x128xf32>, vector<128x128xf32>, vector<8x128xf32> -> vector<8x128xf32>
    %c0_24 = arith.constant 0 : index
    %c0_25 = arith.constant 0 : index
    %40 = vector.load %arg6[%c0_24, %c0_25] : memref<1x128xf32, #tpu.memory_space<vmem>>, vector<1x128xf32>
    %41 = vector.broadcast %40 : vector<1x128xf32> to vector<8x128xf32>
    %42 = arith.addf %39, %41 : vector<8x128xf32>
    %c1_i32_26 = arith.constant 1 : i32
    %43 = arith.addi %1, %c1_i32_26 : i32
    %c0_27 = arith.constant 0 : index
    %44 = arith.index_cast %43 : i32 to index
    %c0_28 = arith.constant 0 : index
    %45 = vector.load %arg2[%c0_27, %44, %c0_28] : memref<1x10x128xf32, #tpu.memory_space<vmem>>, vector<1x8x128xf32>
    %46 = vector.shape_cast %45 : vector<1x8x128xf32> to vector<8x128xf32>
    %47 = arith.addf %46, %42 : vector<8x128xf32>
    %c0_29 = arith.constant 0 : index
    %c0_30 = arith.constant 0 : index
    %c0_31 = arith.constant 0 : index
    %48 = vector.load %arg7[%c0_29, %c0_30, %c0_31] : memref<1x8x128xf32, #tpu.memory_space<vmem>>, vector<1x8x128xf32>
    %49 = vector.shape_cast %48 : vector<1x8x128xf32> to vector<8x128xf32>
    %50 = vector.shape_cast %47 : vector<8x128xf32> to vector<1x8x128xf32>
    tpu.vector_store %arg7[%c0_29, %c0_30, %c0_31], %50 {strides = array<i32>} : memref<1x8x128xf32, #tpu.memory_space<vmem>>, vector<1x8x128xf32>,
    return
  }
  func.func @transform_0(%arg0: i32, %arg1: i32) -> (i32, i32, i32) {
    %c0_i32 = arith.constant 0 : i32
    %c0_i32_0 = arith.constant 0 : i32
    %c0_i32_1 = arith.constant 0 : i32
    return %arg0, %c0_i32, %c0_i32_0 : i32, i32, i32
  }
  func.func @transform_1(%arg0: i32, %arg1: i32) -> (i32, i32, i32) {
    %c0_i32 = arith.constant 0 : i32
    %c0_i32_0 = arith.constant 0 : i32
    %c0_i32_1 = arith.constant 0 : i32
    %c0_i32_2 = arith.constant 0 : i32
    return %c0_i32, %c0_i32_0, %c0_i32_1 : i32, i32, i32
  }
  func.func @transform_2(%arg0: i32, %arg1: i32) -> (i32, i32) {
    %c0_i32 = arith.constant 0 : i32
    %c0_i32_0 = arith.constant 0 : i32
    %c0_i32_1 = arith.constant 0 : i32
    return %c0_i32, %c0_i32_0 : i32, i32
  }
  func.func @transform_3(%arg0: i32, %arg1: i32) -> (i32, i32) {
    %c0_i32 = arith.constant 0 : i32
    %c0_i32_0 = arith.constant 0 : i32
    %c0_i32_1 = arith.constant 0 : i32
    return %c0_i32, %c0_i32_0 : i32, i32
  }
  func.func @transform_4(%arg0: i32, %arg1: i32) -> (i32, i32) {
    %c0_i32 = arith.constant 0 : i32
    %c0_i32_0 = arith.constant 0 : i32
    %c0_i32_1 = arith.constant 0 : i32
    return %c0_i32, %c0_i32_0 : i32, i32
  }
  func.func @transform_5(%arg0: i32, %arg1: i32) -> (i32, i32, i32) {
    %c0_i32 = arith.constant 0 : i32
    %c0_i32_0 = arith.constant 0 : i32
    return %arg0, %arg1, %c0_i32 : i32, i32, i32
  }
}

module attributes {stable_mosaic.version = 11 : i64} {
  func.func @_conv_kernel(%arg0: i32, %arg1: i32, %arg2: memref<1x1x8x128xf32, #tpu.memory_space<vmem>>, %arg3: memref<1x128x128xf32, #tpu.memory_space<vmem>>, %arg4: memref<1x128xf32, #tpu.memory_space<vmem>>, %arg5: memref<1x8x128xf32, #tpu.memory_space<vmem>>) attributes {dimension_semantics = [#tpu.dimension_semantics<parallel>, #tpu.dimension_semantics<parallel>], iteration_bounds = array<i64: 2, 1>, scalar_prefetch = 0 : i64, scratch_operands = 0 : i64, tpu.core_type = #tpu.core_type<tc>, window_params = [{transform_indices = @transform_0, window_bounds = array<i64: 1, 1, 8, 128>}, {pipeline_mode = #tpu.pipeline_mode<synchronous>, transform_indices = @transform_1, window_bounds = array<i64: 1, 128, 128>}, {pipeline_mode = #tpu.pipeline_mode<synchronous>, transform_indices = @transform_2, window_bounds = array<i64: 1, 128>}, {transform_indices = @transform_3, window_bounds = array<i64: 1, 8, 128>}]} {
    %c8_i32 = arith.constant 8 : i32
    %0 = arith.muli %arg1, %c8_i32 : i32
    %1 = tpu.assume_multiple %0, 8 : i32
    %cst = arith.constant 0.000000e+00 : f32
    %2 = vector.broadcast %cst : f32 to vector<8x128xf32>
    %c0_i32 = arith.constant 0 : i32
    %3 = arith.addi %1, %c0_i32 : i32
    %c0 = arith.constant 0 : index
    %c0_0 = arith.constant 0 : index
    %4 = arith.index_cast %3 : i32 to index
    %c0_1 = arith.constant 0 : index
    %5 = vector.load %arg2[%c0, %c0_0, %4, %c0_1] : memref<1x1x8x128xf32, #tpu.memory_space<vmem>>, vector<1x1x8x128xf32>
    %6 = vector.shape_cast %5 : vector<1x1x8x128xf32> to vector<8x128xf32>
    %c0_2 = arith.constant 0 : index
    %c0_3 = arith.constant 0 : index
    %c0_4 = arith.constant 0 : index
    %7 = vector.load %arg3[%c0_2, %c0_3, %c0_4] : memref<1x128x128xf32, #tpu.memory_space<vmem>>, vector<1x128x128xf32>
    %8 = vector.shape_cast %7 : vector<1x128x128xf32> to vector<128x128xf32>
    %cst_5 = arith.constant dense<0.000000e+00> : vector<8x128xf32>
    %9 = tpu.matmul %6, %8, %cst_5 {dimension_numbers = #tpu.dot_dimension_numbers<[1], [0], [0], [1], [0, 0, 1, 1], [], []>} : vector<8x128xf32>, vector<128x128xf32>, vector<8x128xf32> -> vector<8x128xf32>
    %10 = arith.addf %2, %9 : vector<8x128xf32>
    %c0_6 = arith.constant 0 : index
    %c0_7 = arith.constant 0 : index
    %11 = vector.load %arg4[%c0_6, %c0_7] : memref<1x128xf32, #tpu.memory_space<vmem>>, vector<1x128xf32>
    %12 = vector.broadcast %11 : vector<1x128xf32> to vector<8x128xf32>
    %13 = arith.addf %10, %12 : vector<8x128xf32>
    %c0_8 = arith.constant 0 : index
    %c0_9 = arith.constant 0 : index
    %c0_10 = arith.constant 0 : index
    %14 = vector.load %arg5[%c0_8, %c0_9, %c0_10] : memref<1x8x128xf32, #tpu.memory_space<vmem>>, vector<1x8x128xf32>
    %15 = vector.shape_cast %14 : vector<1x8x128xf32> to vector<8x128xf32>
    %16 = vector.shape_cast %13 : vector<8x128xf32> to vector<1x8x128xf32>
    tpu.vector_store %arg5[%c0_8, %c0_9, %c0_10], %16 {strides = array<i32>} : memref<1x8x128xf32, #tpu.memory_space<vmem>>, vector<1x8x128xf32>,
    return
  }
  func.func @transform_0(%arg0: i32, %arg1: i32) -> (i32, i32, i32, i32) {
    %c0_i32 = arith.constant 0 : i32
    %c0_i32_0 = arith.constant 0 : i32
    %c0_i32_1 = arith.constant 0 : i32
    %c0_i32_2 = arith.constant 0 : i32
    return %arg0, %c0_i32, %c0_i32_0, %c0_i32_1 : i32, i32, i32, i32
  }
  func.func @transform_1(%arg0: i32, %arg1: i32) -> (i32, i32, i32) {
    %c0_i32 = arith.constant 0 : i32
    %c0_i32_0 = arith.constant 0 : i32
    %c0_i32_1 = arith.constant 0 : i32
    %c0_i32_2 = arith.constant 0 : i32
    return %c0_i32, %c0_i32_0, %c0_i32_1 : i32, i32, i32
  }
  func.func @transform_2(%arg0: i32, %arg1: i32) -> (i32, i32) {
    %c0_i32 = arith.constant 0 : i32
    %c0_i32_0 = arith.constant 0 : i32
    %c0_i32_1 = arith.constant 0 : i32
    return %c0_i32, %c0_i32_0 : i32, i32
  }
  func.func @transform_3(%arg0: i32, %arg1: i32) -> (i32, i32, i32) {
    %c0_i32 = arith.constant 0 : i32
    %c0_i32_0 = arith.constant 0 : i32
    return %arg0, %arg1, %c0_i32 : i32, i32, i32
  }
}

module attributes {stable_mosaic.version = 11 : i64} {
  func.func @_vq_kernel(%arg0: i32, %arg1: memref<16x128xf32, #tpu.memory_space<vmem>>, %arg2: memref<128x128xf32, #tpu.memory_space<vmem>>, %arg3: memref<1x128xf32, #tpu.memory_space<vmem>>, %arg4: memref<16x1xi32, #tpu.memory_space<vmem>>, %arg5: memref<16x128xf32, #tpu.memory_space<vmem>>) attributes {dimension_semantics = [#tpu.dimension_semantics<parallel>], iteration_bounds = array<i64: 1>, scalar_prefetch = 0 : i64, scratch_operands = 0 : i64, tpu.core_type = #tpu.core_type<tc>, window_params = [{transform_indices = @transform_0, window_bounds = array<i64: 16, 128>}, {pipeline_mode = #tpu.pipeline_mode<synchronous>, transform_indices = @transform_1, window_bounds = array<i64: 128, 128>}, {pipeline_mode = #tpu.pipeline_mode<synchronous>, transform_indices = @transform_2, window_bounds = array<i64: 1, 128>}, {transform_indices = @transform_3, window_bounds = array<i64: 16, 1>}, {transform_indices = @transform_4, window_bounds = array<i64: 16, 128>}]} {
    %c0 = arith.constant 0 : index
    %c0_0 = arith.constant 0 : index
    %0 = vector.load %arg1[%c0, %c0_0] : memref<16x128xf32, #tpu.memory_space<vmem>>, vector<16x128xf32>
    %c0_1 = arith.constant 0 : index
    %c0_2 = arith.constant 0 : index
    %1 = vector.load %arg2[%c0_1, %c0_2] : memref<128x128xf32, #tpu.memory_space<vmem>>, vector<128x128xf32>
    %cst = arith.constant dense<0.000000e+00> : vector<16x128xf32>
    %2 = tpu.matmul %0, %1, %cst {dimension_numbers = #tpu.dot_dimension_numbers<[1], [1], [0], [0], [0, 0, 1, 0], [], []>} : vector<16x128xf32>, vector<128x128xf32>, vector<16x128xf32> -> vector<16x128xf32>
    %c0_3 = arith.constant 0 : index
    %c0_4 = arith.constant 0 : index
    %3 = vector.load %arg3[%c0_3, %c0_4] : memref<1x128xf32, #tpu.memory_space<vmem>>, vector<1x128xf32>
    %cst_5 = arith.constant 2.000000e+00 : f32
    %4 = vector.broadcast %cst_5 : f32 to vector<16x128xf32>
    %5 = arith.mulf %4, %2 : vector<16x128xf32>
    %6 = vector.broadcast %3 : vector<1x128xf32> to vector<16x128xf32>
    %7 = arith.subf %6, %5 : vector<16x128xf32>
    %8 = tpu.iota {dimensions = array<i32: 1>} : vector<16x128xi32>
    %cst_6 = arith.constant dense<0x7F800000> : vector<16xf32>
    %9 = vector.multi_reduction <minimumf>, %7, %cst_6 [1] : vector<16x128xf32> to vector<16xf32>
    %10 = vector.shape_cast %9 : vector<16xf32> to vector<16x1xf32>
    %11 = vector.broadcast %10 : vector<16x1xf32> to vector<16x128xf32>
    %12 = arith.cmpf ole, %7, %11 : vector<16x128xf32>
    %c128_i32 = arith.constant 128 : i32
    %13 = vector.broadcast %c128_i32 : i32 to vector<16x128xi32>
    %14 = arith.select %12, %8, %13 : vector<16x128xi1>, vector<16x128xi32>
    %cst_7 = arith.constant dense<2147483647> : vector<16xi32>
    %15 = vector.multi_reduction <minsi>, %14, %cst_7 [1] : vector<16x128xi32> to vector<16xi32>
    %16 = vector.shape_cast %15 : vector<16xi32> to vector<16x1xi32>
    %c0_8 = arith.constant 0 : index
    %c0_9 = arith.constant 0 : index
    %17 = vector.load %arg4[%c0_8, %c0_9] : memref<16x1xi32, #tpu.memory_space<vmem>>, vector<16x1xi32>
    tpu.vector_store %arg4[%c0_8, %c0_9], %16 {strides = array<i32>} : memref<16x1xi32, #tpu.memory_space<vmem>>, vector<16x1xi32>,
    %18 = vector.broadcast %16 : vector<16x1xi32> to vector<16x128xi32>
    %19 = arith.cmpi eq, %8, %18 : vector<16x128xi32>
    %20 = arith.extui %19 : vector<16x128xi1> to vector<16x128xi32>
    %21 = arith.sitofp %20 : vector<16x128xi32> to vector<16x128xf32>
    %cst_10 = arith.constant dense<0.000000e+00> : vector<16x128xf32>
    %22 = tpu.matmul %21, %1, %cst_10 {dimension_numbers = #tpu.dot_dimension_numbers<[1], [0], [0], [1], [0, 0, 1, 1], [], []>} : vector<16x128xf32>, vector<128x128xf32>, vector<16x128xf32> -> vector<16x128xf32>
    %c0_11 = arith.constant 0 : index
    %c0_12 = arith.constant 0 : index
    %23 = vector.load %arg5[%c0_11, %c0_12] : memref<16x128xf32, #tpu.memory_space<vmem>>, vector<16x128xf32>
    tpu.vector_store %arg5[%c0_11, %c0_12], %22 {strides = array<i32>} : memref<16x128xf32, #tpu.memory_space<vmem>>, vector<16x128xf32>,
    return
  }
  func.func @transform_0(%arg0: i32) -> (i32, i32) {
    %c0_i32 = arith.constant 0 : i32
    %c0_i32_0 = arith.constant 0 : i32
    return %arg0, %c0_i32 : i32, i32
  }
  func.func @transform_1(%arg0: i32) -> (i32, i32) {
    %c0_i32 = arith.constant 0 : i32
    %c0_i32_0 = arith.constant 0 : i32
    %c0_i32_1 = arith.constant 0 : i32
    return %c0_i32, %c0_i32_0 : i32, i32
  }
  func.func @transform_2(%arg0: i32) -> (i32, i32) {
    %c0_i32 = arith.constant 0 : i32
    %c0_i32_0 = arith.constant 0 : i32
    %c0_i32_1 = arith.constant 0 : i32
    return %c0_i32, %c0_i32_0 : i32, i32
  }
  func.func @transform_3(%arg0: i32) -> (i32, i32) {
    %c0_i32 = arith.constant 0 : i32
    %c0_i32_0 = arith.constant 0 : i32
    return %arg0, %c0_i32 : i32, i32
  }
  func.func @transform_4(%arg0: i32) -> (i32, i32) {
    %c0_i32 = arith.constant 0 : i32
    %c0_i32_0 = arith.constant 0 : i32
    return %arg0, %c0_i32 : i32, i32
  }
}

module attributes {stable_mosaic.version = 11 : i64} {
  func.func @_conv_kernel(%arg0: i32, %arg1: i32, %arg2: memref<1x1x9x128xf32, #tpu.memory_space<vmem>>, %arg3: memref<2x128x128xf32, #tpu.memory_space<vmem>>, %arg4: memref<1x128xf32, #tpu.memory_space<vmem>>, %arg5: memref<1x8x128xf32, #tpu.memory_space<vmem>>) attributes {dimension_semantics = [#tpu.dimension_semantics<parallel>, #tpu.dimension_semantics<parallel>], iteration_bounds = array<i64: 2, 1>, scalar_prefetch = 0 : i64, scratch_operands = 0 : i64, tpu.core_type = #tpu.core_type<tc>, window_params = [{transform_indices = @transform_0, window_bounds = array<i64: 1, 1, 9, 128>}, {pipeline_mode = #tpu.pipeline_mode<synchronous>, transform_indices = @transform_1, window_bounds = array<i64: 2, 128, 128>}, {pipeline_mode = #tpu.pipeline_mode<synchronous>, transform_indices = @transform_2, window_bounds = array<i64: 1, 128>}, {transform_indices = @transform_3, window_bounds = array<i64: 1, 8, 128>}]} {
    %c8_i32 = arith.constant 8 : i32
    %0 = arith.muli %arg1, %c8_i32 : i32
    %1 = tpu.assume_multiple %0, 8 : i32
    %cst = arith.constant 0.000000e+00 : f32
    %2 = vector.broadcast %cst : f32 to vector<8x128xf32>
    %c0_i32 = arith.constant 0 : i32
    %3 = arith.addi %1, %c0_i32 : i32
    %c0 = arith.constant 0 : index
    %c0_0 = arith.constant 0 : index
    %4 = arith.index_cast %3 : i32 to index
    %c0_1 = arith.constant 0 : index
    %5 = vector.load %arg2[%c0, %c0_0, %4, %c0_1] : memref<1x1x9x128xf32, #tpu.memory_space<vmem>>, vector<1x1x8x128xf32>
    %6 = vector.shape_cast %5 : vector<1x1x8x128xf32> to vector<8x128xf32>
    %c0_2 = arith.constant 0 : index
    %c0_3 = arith.constant 0 : index
    %c0_4 = arith.constant 0 : index
    %7 = vector.load %arg3[%c0_2, %c0_3, %c0_4] : memref<2x128x128xf32, #tpu.memory_space<vmem>>, vector<1x128x128xf32>
    %8 = vector.shape_cast %7 : vector<1x128x128xf32> to vector<128x128xf32>
    %cst_5 = arith.constant dense<0.000000e+00> : vector<8x128xf32>
    %9 = tpu.matmul %6, %8, %cst_5 {dimension_numbers = #tpu.dot_dimension_numbers<[1], [0], [0], [1], [0, 0, 1, 1], [], []>} : vector<8x128xf32>, vector<128x128xf32>, vector<8x128xf32> -> vector<8x128xf32>
    %10 = arith.addf %2, %9 : vector<8x128xf32>
    %c1_i32 = arith.constant 1 : i32
    %11 = arith.addi %1, %c1_i32 : i32
    %c0_6 = arith.constant 0 : index
    %c0_7 = arith.constant 0 : index
    %12 = arith.index_cast %11 : i32 to index
    %c0_8 = arith.constant 0 : index
    %13 = vector.load %arg2[%c0_6, %c0_7, %12, %c0_8] : memref<1x1x9x128xf32, #tpu.memory_space<vmem>>, vector<1x1x8x128xf32>
    %14 = vector.shape_cast %13 : vector<1x1x8x128xf32> to vector<8x128xf32>
    %c1 = arith.constant 1 : index
    %c0_9 = arith.constant 0 : index
    %c0_10 = arith.constant 0 : index
    %15 = vector.load %arg3[%c1, %c0_9, %c0_10] : memref<2x128x128xf32, #tpu.memory_space<vmem>>, vector<1x128x128xf32>
    %16 = vector.shape_cast %15 : vector<1x128x128xf32> to vector<128x128xf32>
    %cst_11 = arith.constant dense<0.000000e+00> : vector<8x128xf32>
    %17 = tpu.matmul %14, %16, %cst_11 {dimension_numbers = #tpu.dot_dimension_numbers<[1], [0], [0], [1], [0, 0, 1, 1], [], []>} : vector<8x128xf32>, vector<128x128xf32>, vector<8x128xf32> -> vector<8x128xf32>
    %18 = arith.addf %10, %17 : vector<8x128xf32>
    %c0_12 = arith.constant 0 : index
    %c0_13 = arith.constant 0 : index
    %19 = vector.load %arg4[%c0_12, %c0_13] : memref<1x128xf32, #tpu.memory_space<vmem>>, vector<1x128xf32>
    %20 = vector.broadcast %19 : vector<1x128xf32> to vector<8x128xf32>
    %21 = arith.addf %18, %20 : vector<8x128xf32>
    %cst_14 = arith.constant 0.000000e+00 : f32
    %22 = vector.broadcast %cst_14 : f32 to vector<8x128xf32>
    %23 = arith.maximumf %21, %22 : vector<8x128xf32>
    %c0_15 = arith.constant 0 : index
    %c0_16 = arith.constant 0 : index
    %c0_17 = arith.constant 0 : index
    %24 = vector.load %arg5[%c0_15, %c0_16, %c0_17] : memref<1x8x128xf32, #tpu.memory_space<vmem>>, vector<1x8x128xf32>
    %25 = vector.shape_cast %24 : vector<1x8x128xf32> to vector<8x128xf32>
    %26 = vector.shape_cast %23 : vector<8x128xf32> to vector<1x8x128xf32>
    tpu.vector_store %arg5[%c0_15, %c0_16, %c0_17], %26 {strides = array<i32>} : memref<1x8x128xf32, #tpu.memory_space<vmem>>, vector<1x8x128xf32>,
    return
  }
  func.func @transform_0(%arg0: i32, %arg1: i32) -> (i32, i32, i32, i32) {
    %c0_i32 = arith.constant 0 : i32
    %c0_i32_0 = arith.constant 0 : i32
    %c0_i32_1 = arith.constant 0 : i32
    %c0_i32_2 = arith.constant 0 : i32
    return %arg0, %c0_i32, %c0_i32_0, %c0_i32_1 : i32, i32, i32, i32
  }
  func.func @transform_1(%arg0: i32, %arg1: i32) -> (i32, i32, i32) {
    %c0_i32 = arith.constant 0 : i32
    %c0_i32_0 = arith.constant 0 : i32
    %c0_i32_1 = arith.constant 0 : i32
    %c0_i32_2 = arith.constant 0 : i32
    return %c0_i32, %c0_i32_0, %c0_i32_1 : i32, i32, i32
  }
  func.func @transform_2(%arg0: i32, %arg1: i32) -> (i32, i32) {
    %c0_i32 = arith.constant 0 : i32
    %c0_i32_0 = arith.constant 0 : i32
    %c0_i32_1 = arith.constant 0 : i32
    return %c0_i32, %c0_i32_0 : i32, i32
  }
  func.func @transform_3(%arg0: i32, %arg1: i32) -> (i32, i32, i32) {
    %c0_i32 = arith.constant 0 : i32
    %c0_i32_0 = arith.constant 0 : i32
    return %arg0, %arg1, %c0_i32 : i32, i32, i32
  }
}

module attributes {stable_mosaic.version = 11 : i64} {
  func.func @_conv_kernel(%arg0: i32, %arg1: i32, %arg2: memref<1x1x8x128xf32, #tpu.memory_space<vmem>>, %arg3: memref<1x128x128xf32, #tpu.memory_space<vmem>>, %arg4: memref<1x128xf32, #tpu.memory_space<vmem>>, %arg5: memref<1x8x128xf32, #tpu.memory_space<vmem>>) attributes {dimension_semantics = [#tpu.dimension_semantics<parallel>, #tpu.dimension_semantics<parallel>], iteration_bounds = array<i64: 2, 1>, scalar_prefetch = 0 : i64, scratch_operands = 0 : i64, tpu.core_type = #tpu.core_type<tc>, window_params = [{transform_indices = @transform_0, window_bounds = array<i64: 1, 1, 8, 128>}, {pipeline_mode = #tpu.pipeline_mode<synchronous>, transform_indices = @transform_1, window_bounds = array<i64: 1, 128, 128>}, {pipeline_mode = #tpu.pipeline_mode<synchronous>, transform_indices = @transform_2, window_bounds = array<i64: 1, 128>}, {transform_indices = @transform_3, window_bounds = array<i64: 1, 8, 128>}]} {
    %c8_i32 = arith.constant 8 : i32
    %0 = arith.muli %arg1, %c8_i32 : i32
    %1 = tpu.assume_multiple %0, 8 : i32
    %cst = arith.constant 0.000000e+00 : f32
    %2 = vector.broadcast %cst : f32 to vector<8x128xf32>
    %c0_i32 = arith.constant 0 : i32
    %3 = arith.addi %1, %c0_i32 : i32
    %c0 = arith.constant 0 : index
    %c0_0 = arith.constant 0 : index
    %4 = arith.index_cast %3 : i32 to index
    %c0_1 = arith.constant 0 : index
    %5 = vector.load %arg2[%c0, %c0_0, %4, %c0_1] : memref<1x1x8x128xf32, #tpu.memory_space<vmem>>, vector<1x1x8x128xf32>
    %6 = vector.shape_cast %5 : vector<1x1x8x128xf32> to vector<8x128xf32>
    %c0_2 = arith.constant 0 : index
    %c0_3 = arith.constant 0 : index
    %c0_4 = arith.constant 0 : index
    %7 = vector.load %arg3[%c0_2, %c0_3, %c0_4] : memref<1x128x128xf32, #tpu.memory_space<vmem>>, vector<1x128x128xf32>
    %8 = vector.shape_cast %7 : vector<1x128x128xf32> to vector<128x128xf32>
    %cst_5 = arith.constant dense<0.000000e+00> : vector<8x128xf32>
    %9 = tpu.matmul %6, %8, %cst_5 {dimension_numbers = #tpu.dot_dimension_numbers<[1], [0], [0], [1], [0, 0, 1, 1], [], []>} : vector<8x128xf32>, vector<128x128xf32>, vector<8x128xf32> -> vector<8x128xf32>
    %10 = arith.addf %2, %9 : vector<8x128xf32>
    %c0_6 = arith.constant 0 : index
    %c0_7 = arith.constant 0 : index
    %11 = vector.load %arg4[%c0_6, %c0_7] : memref<1x128xf32, #tpu.memory_space<vmem>>, vector<1x128xf32>
    %12 = vector.broadcast %11 : vector<1x128xf32> to vector<8x128xf32>
    %13 = arith.addf %10, %12 : vector<8x128xf32>
    %cst_8 = arith.constant 0.000000e+00 : f32
    %14 = vector.broadcast %cst_8 : f32 to vector<8x128xf32>
    %15 = arith.maximumf %13, %14 : vector<8x128xf32>
    %c0_9 = arith.constant 0 : index
    %c0_10 = arith.constant 0 : index
    %c0_11 = arith.constant 0 : index
    %16 = vector.load %arg5[%c0_9, %c0_10, %c0_11] : memref<1x8x128xf32, #tpu.memory_space<vmem>>, vector<1x8x128xf32>
    %17 = vector.shape_cast %16 : vector<1x8x128xf32> to vector<8x128xf32>
    %18 = vector.shape_cast %15 : vector<8x128xf32> to vector<1x8x128xf32>
    tpu.vector_store %arg5[%c0_9, %c0_10, %c0_11], %18 {strides = array<i32>} : memref<1x8x128xf32, #tpu.memory_space<vmem>>, vector<1x8x128xf32>,
    return
  }
  func.func @transform_0(%arg0: i32, %arg1: i32) -> (i32, i32, i32, i32) {
    %c0_i32 = arith.constant 0 : i32
    %c0_i32_0 = arith.constant 0 : i32
    %c0_i32_1 = arith.constant 0 : i32
    %c0_i32_2 = arith.constant 0 : i32
    return %arg0, %c0_i32, %c0_i32_0, %c0_i32_1 : i32, i32, i32, i32
  }
  func.func @transform_1(%arg0: i32, %arg1: i32) -> (i32, i32, i32) {
    %c0_i32 = arith.constant 0 : i32
    %c0_i32_0 = arith.constant 0 : i32
    %c0_i32_1 = arith.constant 0 : i32
    %c0_i32_2 = arith.constant 0 : i32
    return %c0_i32, %c0_i32_0, %c0_i32_1 : i32, i32, i32
  }
  func.func @transform_2(%arg0: i32, %arg1: i32) -> (i32, i32) {
    %c0_i32 = arith.constant 0 : i32
    %c0_i32_0 = arith.constant 0 : i32
    %c0_i32_1 = arith.constant 0 : i32
    return %c0_i32, %c0_i32_0 : i32, i32
  }
  func.func @transform_3(%arg0: i32, %arg1: i32) -> (i32, i32, i32) {
    %c0_i32 = arith.constant 0 : i32
    %c0_i32_0 = arith.constant 0 : i32
    return %arg0, %arg1, %c0_i32 : i32, i32, i32
  }
}

module attributes {stable_mosaic.version = 11 : i64} {
  func.func @_conv_kernel(%arg0: i32, %arg1: i32, %arg2: memref<1x1x17x128xf32, #tpu.memory_space<vmem>>, %arg3: memref<2x128x128xf32, #tpu.memory_space<vmem>>, %arg4: memref<1x128xf32, #tpu.memory_space<vmem>>, %arg5: memref<1x16x128xf32, #tpu.memory_space<vmem>>) attributes {dimension_semantics = [#tpu.dimension_semantics<parallel>, #tpu.dimension_semantics<parallel>], iteration_bounds = array<i64: 2, 1>, scalar_prefetch = 0 : i64, scratch_operands = 0 : i64, tpu.core_type = #tpu.core_type<tc>, window_params = [{transform_indices = @transform_0, window_bounds = array<i64: 1, 1, 17, 128>}, {pipeline_mode = #tpu.pipeline_mode<synchronous>, transform_indices = @transform_1, window_bounds = array<i64: 2, 128, 128>}, {pipeline_mode = #tpu.pipeline_mode<synchronous>, transform_indices = @transform_2, window_bounds = array<i64: 1, 128>}, {transform_indices = @transform_3, window_bounds = array<i64: 1, 16, 128>}]} {
    %c16_i32 = arith.constant 16 : i32
    %0 = arith.muli %arg1, %c16_i32 : i32
    %1 = tpu.assume_multiple %0, 16 : i32
    %cst = arith.constant 0.000000e+00 : f32
    %2 = vector.broadcast %cst : f32 to vector<16x128xf32>
    %c0_i32 = arith.constant 0 : i32
    %3 = arith.addi %1, %c0_i32 : i32
    %c0 = arith.constant 0 : index
    %c0_0 = arith.constant 0 : index
    %4 = arith.index_cast %3 : i32 to index
    %c0_1 = arith.constant 0 : index
    %5 = vector.load %arg2[%c0, %c0_0, %4, %c0_1] : memref<1x1x17x128xf32, #tpu.memory_space<vmem>>, vector<1x1x16x128xf32>
    %6 = vector.shape_cast %5 : vector<1x1x16x128xf32> to vector<16x128xf32>
    %c0_2 = arith.constant 0 : index
    %c0_3 = arith.constant 0 : index
    %c0_4 = arith.constant 0 : index
    %7 = vector.load %arg3[%c0_2, %c0_3, %c0_4] : memref<2x128x128xf32, #tpu.memory_space<vmem>>, vector<1x128x128xf32>
    %8 = vector.shape_cast %7 : vector<1x128x128xf32> to vector<128x128xf32>
    %cst_5 = arith.constant dense<0.000000e+00> : vector<16x128xf32>
    %9 = tpu.matmul %6, %8, %cst_5 {dimension_numbers = #tpu.dot_dimension_numbers<[1], [0], [0], [1], [0, 0, 1, 1], [], []>} : vector<16x128xf32>, vector<128x128xf32>, vector<16x128xf32> -> vector<16x128xf32>
    %10 = arith.addf %2, %9 : vector<16x128xf32>
    %c1_i32 = arith.constant 1 : i32
    %11 = arith.addi %1, %c1_i32 : i32
    %c0_6 = arith.constant 0 : index
    %c0_7 = arith.constant 0 : index
    %12 = arith.index_cast %11 : i32 to index
    %c0_8 = arith.constant 0 : index
    %13 = vector.load %arg2[%c0_6, %c0_7, %12, %c0_8] : memref<1x1x17x128xf32, #tpu.memory_space<vmem>>, vector<1x1x16x128xf32>
    %14 = vector.shape_cast %13 : vector<1x1x16x128xf32> to vector<16x128xf32>
    %c1 = arith.constant 1 : index
    %c0_9 = arith.constant 0 : index
    %c0_10 = arith.constant 0 : index
    %15 = vector.load %arg3[%c1, %c0_9, %c0_10] : memref<2x128x128xf32, #tpu.memory_space<vmem>>, vector<1x128x128xf32>
    %16 = vector.shape_cast %15 : vector<1x128x128xf32> to vector<128x128xf32>
    %cst_11 = arith.constant dense<0.000000e+00> : vector<16x128xf32>
    %17 = tpu.matmul %14, %16, %cst_11 {dimension_numbers = #tpu.dot_dimension_numbers<[1], [0], [0], [1], [0, 0, 1, 1], [], []>} : vector<16x128xf32>, vector<128x128xf32>, vector<16x128xf32> -> vector<16x128xf32>
    %18 = arith.addf %10, %17 : vector<16x128xf32>
    %c0_12 = arith.constant 0 : index
    %c0_13 = arith.constant 0 : index
    %19 = vector.load %arg4[%c0_12, %c0_13] : memref<1x128xf32, #tpu.memory_space<vmem>>, vector<1x128xf32>
    %20 = vector.broadcast %19 : vector<1x128xf32> to vector<16x128xf32>
    %21 = arith.addf %18, %20 : vector<16x128xf32>
    %cst_14 = arith.constant 0.000000e+00 : f32
    %22 = vector.broadcast %cst_14 : f32 to vector<16x128xf32>
    %23 = arith.maximumf %21, %22 : vector<16x128xf32>
    %c0_15 = arith.constant 0 : index
    %c0_16 = arith.constant 0 : index
    %c0_17 = arith.constant 0 : index
    %24 = vector.load %arg5[%c0_15, %c0_16, %c0_17] : memref<1x16x128xf32, #tpu.memory_space<vmem>>, vector<1x16x128xf32>
    %25 = vector.shape_cast %24 : vector<1x16x128xf32> to vector<16x128xf32>
    %26 = vector.shape_cast %23 : vector<16x128xf32> to vector<1x16x128xf32>
    tpu.vector_store %arg5[%c0_15, %c0_16, %c0_17], %26 {strides = array<i32>} : memref<1x16x128xf32, #tpu.memory_space<vmem>>, vector<1x16x128xf32>,
    return
  }
  func.func @transform_0(%arg0: i32, %arg1: i32) -> (i32, i32, i32, i32) {
    %c0_i32 = arith.constant 0 : i32
    %c0_i32_0 = arith.constant 0 : i32
    %c0_i32_1 = arith.constant 0 : i32
    %c0_i32_2 = arith.constant 0 : i32
    return %arg0, %c0_i32, %c0_i32_0, %c0_i32_1 : i32, i32, i32, i32
  }
  func.func @transform_1(%arg0: i32, %arg1: i32) -> (i32, i32, i32) {
    %c0_i32 = arith.constant 0 : i32
    %c0_i32_0 = arith.constant 0 : i32
    %c0_i32_1 = arith.constant 0 : i32
    %c0_i32_2 = arith.constant 0 : i32
    return %c0_i32, %c0_i32_0, %c0_i32_1 : i32, i32, i32
  }
  func.func @transform_2(%arg0: i32, %arg1: i32) -> (i32, i32) {
    %c0_i32 = arith.constant 0 : i32
    %c0_i32_0 = arith.constant 0 : i32
    %c0_i32_1 = arith.constant 0 : i32
    return %c0_i32, %c0_i32_0 : i32, i32
  }
  func.func @transform_3(%arg0: i32, %arg1: i32) -> (i32, i32, i32) {
    %c0_i32 = arith.constant 0 : i32
    %c0_i32_0 = arith.constant 0 : i32
    return %arg0, %arg1, %c0_i32 : i32, i32, i32
  }
}

module attributes {stable_mosaic.version = 11 : i64} {
  func.func @_conv_kernel(%arg0: i32, %arg1: i32, %arg2: memref<1x1x18x128xf32, #tpu.memory_space<vmem>>, %arg3: memref<3x128x128xf32, #tpu.memory_space<vmem>>, %arg4: memref<1x128xf32, #tpu.memory_space<vmem>>, %arg5: memref<1x16x128xf32, #tpu.memory_space<vmem>>) attributes {dimension_semantics = [#tpu.dimension_semantics<parallel>, #tpu.dimension_semantics<parallel>], iteration_bounds = array<i64: 2, 1>, scalar_prefetch = 0 : i64, scratch_operands = 0 : i64, tpu.core_type = #tpu.core_type<tc>, window_params = [{transform_indices = @transform_0, window_bounds = array<i64: 1, 1, 18, 128>}, {pipeline_mode = #tpu.pipeline_mode<synchronous>, transform_indices = @transform_1, window_bounds = array<i64: 3, 128, 128>}, {pipeline_mode = #tpu.pipeline_mode<synchronous>, transform_indices = @transform_2, window_bounds = array<i64: 1, 128>}, {transform_indices = @transform_3, window_bounds = array<i64: 1, 16, 128>}]} {
    %c16_i32 = arith.constant 16 : i32
    %0 = arith.muli %arg1, %c16_i32 : i32
    %1 = tpu.assume_multiple %0, 16 : i32
    %cst = arith.constant 0.000000e+00 : f32
    %2 = vector.broadcast %cst : f32 to vector<16x128xf32>
    %c0_i32 = arith.constant 0 : i32
    %3 = arith.addi %1, %c0_i32 : i32
    %c0 = arith.constant 0 : index
    %c0_0 = arith.constant 0 : index
    %4 = arith.index_cast %3 : i32 to index
    %c0_1 = arith.constant 0 : index
    %5 = vector.load %arg2[%c0, %c0_0, %4, %c0_1] : memref<1x1x18x128xf32, #tpu.memory_space<vmem>>, vector<1x1x16x128xf32>
    %6 = vector.shape_cast %5 : vector<1x1x16x128xf32> to vector<16x128xf32>
    %c0_2 = arith.constant 0 : index
    %c0_3 = arith.constant 0 : index
    %c0_4 = arith.constant 0 : index
    %7 = vector.load %arg3[%c0_2, %c0_3, %c0_4] : memref<3x128x128xf32, #tpu.memory_space<vmem>>, vector<1x128x128xf32>
    %8 = vector.shape_cast %7 : vector<1x128x128xf32> to vector<128x128xf32>
    %cst_5 = arith.constant dense<0.000000e+00> : vector<16x128xf32>
    %9 = tpu.matmul %6, %8, %cst_5 {dimension_numbers = #tpu.dot_dimension_numbers<[1], [0], [0], [1], [0, 0, 1, 1], [], []>} : vector<16x128xf32>, vector<128x128xf32>, vector<16x128xf32> -> vector<16x128xf32>
    %10 = arith.addf %2, %9 : vector<16x128xf32>
    %c1_i32 = arith.constant 1 : i32
    %11 = arith.addi %1, %c1_i32 : i32
    %c0_6 = arith.constant 0 : index
    %c0_7 = arith.constant 0 : index
    %12 = arith.index_cast %11 : i32 to index
    %c0_8 = arith.constant 0 : index
    %13 = vector.load %arg2[%c0_6, %c0_7, %12, %c0_8] : memref<1x1x18x128xf32, #tpu.memory_space<vmem>>, vector<1x1x16x128xf32>
    %14 = vector.shape_cast %13 : vector<1x1x16x128xf32> to vector<16x128xf32>
    %c1 = arith.constant 1 : index
    %c0_9 = arith.constant 0 : index
    %c0_10 = arith.constant 0 : index
    %15 = vector.load %arg3[%c1, %c0_9, %c0_10] : memref<3x128x128xf32, #tpu.memory_space<vmem>>, vector<1x128x128xf32>
    %16 = vector.shape_cast %15 : vector<1x128x128xf32> to vector<128x128xf32>
    %cst_11 = arith.constant dense<0.000000e+00> : vector<16x128xf32>
    %17 = tpu.matmul %14, %16, %cst_11 {dimension_numbers = #tpu.dot_dimension_numbers<[1], [0], [0], [1], [0, 0, 1, 1], [], []>} : vector<16x128xf32>, vector<128x128xf32>, vector<16x128xf32> -> vector<16x128xf32>
    %18 = arith.addf %10, %17 : vector<16x128xf32>
    %c2_i32 = arith.constant 2 : i32
    %19 = arith.addi %1, %c2_i32 : i32
    %c0_12 = arith.constant 0 : index
    %c0_13 = arith.constant 0 : index
    %20 = arith.index_cast %19 : i32 to index
    %c0_14 = arith.constant 0 : index
    %21 = vector.load %arg2[%c0_12, %c0_13, %20, %c0_14] : memref<1x1x18x128xf32, #tpu.memory_space<vmem>>, vector<1x1x16x128xf32>
    %22 = vector.shape_cast %21 : vector<1x1x16x128xf32> to vector<16x128xf32>
    %c2 = arith.constant 2 : index
    %c0_15 = arith.constant 0 : index
    %c0_16 = arith.constant 0 : index
    %23 = vector.load %arg3[%c2, %c0_15, %c0_16] : memref<3x128x128xf32, #tpu.memory_space<vmem>>, vector<1x128x128xf32>
    %24 = vector.shape_cast %23 : vector<1x128x128xf32> to vector<128x128xf32>
    %cst_17 = arith.constant dense<0.000000e+00> : vector<16x128xf32>
    %25 = tpu.matmul %22, %24, %cst_17 {dimension_numbers = #tpu.dot_dimension_numbers<[1], [0], [0], [1], [0, 0, 1, 1], [], []>} : vector<16x128xf32>, vector<128x128xf32>, vector<16x128xf32> -> vector<16x128xf32>
    %26 = arith.addf %18, %25 : vector<16x128xf32>
    %c0_18 = arith.constant 0 : index
    %c0_19 = arith.constant 0 : index
    %27 = vector.load %arg4[%c0_18, %c0_19] : memref<1x128xf32, #tpu.memory_space<vmem>>, vector<1x128xf32>
    %28 = vector.broadcast %27 : vector<1x128xf32> to vector<16x128xf32>
    %29 = arith.addf %26, %28 : vector<16x128xf32>
    %cst_20 = arith.constant 0.000000e+00 : f32
    %30 = vector.broadcast %cst_20 : f32 to vector<16x128xf32>
    %31 = arith.maximumf %29, %30 : vector<16x128xf32>
    %c0_21 = arith.constant 0 : index
    %c0_22 = arith.constant 0 : index
    %c0_23 = arith.constant 0 : index
    %32 = vector.load %arg5[%c0_21, %c0_22, %c0_23] : memref<1x16x128xf32, #tpu.memory_space<vmem>>, vector<1x16x128xf32>
    %33 = vector.shape_cast %32 : vector<1x16x128xf32> to vector<16x128xf32>
    %34 = vector.shape_cast %31 : vector<16x128xf32> to vector<1x16x128xf32>
    tpu.vector_store %arg5[%c0_21, %c0_22, %c0_23], %34 {strides = array<i32>} : memref<1x16x128xf32, #tpu.memory_space<vmem>>, vector<1x16x128xf32>,
    return
  }
  func.func @transform_0(%arg0: i32, %arg1: i32) -> (i32, i32, i32, i32) {
    %c0_i32 = arith.constant 0 : i32
    %c0_i32_0 = arith.constant 0 : i32
    %c0_i32_1 = arith.constant 0 : i32
    %c0_i32_2 = arith.constant 0 : i32
    return %arg0, %c0_i32, %c0_i32_0, %c0_i32_1 : i32, i32, i32, i32
  }
  func.func @transform_1(%arg0: i32, %arg1: i32) -> (i32, i32, i32) {
    %c0_i32 = arith.constant 0 : i32
    %c0_i32_0 = arith.constant 0 : i32
    %c0_i32_1 = arith.constant 0 : i32
    %c0_i32_2 = arith.constant 0 : i32
    return %c0_i32, %c0_i32_0, %c0_i32_1 : i32, i32, i32
  }
  func.func @transform_2(%arg0: i32, %arg1: i32) -> (i32, i32) {
    %c0_i32 = arith.constant 0 : i32
    %c0_i32_0 = arith.constant 0 : i32
    %c0_i32_1 = arith.constant 0 : i32
    return %c0_i32, %c0_i32_0 : i32, i32
  }
  func.func @transform_3(%arg0: i32, %arg1: i32) -> (i32, i32, i32) {
    %c0_i32 = arith.constant 0 : i32
    %c0_i32_0 = arith.constant 0 : i32
    return %arg0, %arg1, %c0_i32 : i32, i32, i32
  }
}

module attributes {stable_mosaic.version = 11 : i64} {
  func.func @_conv_kernel(%arg0: i32, %arg1: i32, %arg2: memref<1x1x38x128xf32, #tpu.memory_space<vmem>>, %arg3: memref<7x128x128xf32, #tpu.memory_space<vmem>>, %arg4: memref<1x128xf32, #tpu.memory_space<vmem>>, %arg5: memref<1x32x128xf32, #tpu.memory_space<vmem>>) attributes {dimension_semantics = [#tpu.dimension_semantics<parallel>, #tpu.dimension_semantics<parallel>], iteration_bounds = array<i64: 2, 1>, scalar_prefetch = 0 : i64, scratch_operands = 0 : i64, tpu.core_type = #tpu.core_type<tc>, window_params = [{transform_indices = @transform_0, window_bounds = array<i64: 1, 1, 38, 128>}, {pipeline_mode = #tpu.pipeline_mode<synchronous>, transform_indices = @transform_1, window_bounds = array<i64: 7, 128, 128>}, {pipeline_mode = #tpu.pipeline_mode<synchronous>, transform_indices = @transform_2, window_bounds = array<i64: 1, 128>}, {transform_indices = @transform_3, window_bounds = array<i64: 1, 32, 128>}]} {
    %c32_i32 = arith.constant 32 : i32
    %0 = arith.muli %arg1, %c32_i32 : i32
    %1 = tpu.assume_multiple %0, 32 : i32
    %cst = arith.constant 0.000000e+00 : f32
    %2 = vector.broadcast %cst : f32 to vector<32x128xf32>
    %c0_i32 = arith.constant 0 : i32
    %3 = arith.addi %1, %c0_i32 : i32
    %c0 = arith.constant 0 : index
    %c0_0 = arith.constant 0 : index
    %4 = arith.index_cast %3 : i32 to index
    %c0_1 = arith.constant 0 : index
    %5 = vector.load %arg2[%c0, %c0_0, %4, %c0_1] : memref<1x1x38x128xf32, #tpu.memory_space<vmem>>, vector<1x1x32x128xf32>
    %6 = vector.shape_cast %5 : vector<1x1x32x128xf32> to vector<32x128xf32>
    %c0_2 = arith.constant 0 : index
    %c0_3 = arith.constant 0 : index
    %c0_4 = arith.constant 0 : index
    %7 = vector.load %arg3[%c0_2, %c0_3, %c0_4] : memref<7x128x128xf32, #tpu.memory_space<vmem>>, vector<1x128x128xf32>
    %8 = vector.shape_cast %7 : vector<1x128x128xf32> to vector<128x128xf32>
    %cst_5 = arith.constant dense<0.000000e+00> : vector<32x128xf32>
    %9 = tpu.matmul %6, %8, %cst_5 {dimension_numbers = #tpu.dot_dimension_numbers<[1], [0], [0], [1], [0, 0, 1, 1], [], []>} : vector<32x128xf32>, vector<128x128xf32>, vector<32x128xf32> -> vector<32x128xf32>
    %10 = arith.addf %2, %9 : vector<32x128xf32>
    %c1_i32 = arith.constant 1 : i32
    %11 = arith.addi %1, %c1_i32 : i32
    %c0_6 = arith.constant 0 : index
    %c0_7 = arith.constant 0 : index
    %12 = arith.index_cast %11 : i32 to index
    %c0_8 = arith.constant 0 : index
    %13 = vector.load %arg2[%c0_6, %c0_7, %12, %c0_8] : memref<1x1x38x128xf32, #tpu.memory_space<vmem>>, vector<1x1x32x128xf32>
    %14 = vector.shape_cast %13 : vector<1x1x32x128xf32> to vector<32x128xf32>
    %c1 = arith.constant 1 : index
    %c0_9 = arith.constant 0 : index
    %c0_10 = arith.constant 0 : index
    %15 = vector.load %arg3[%c1, %c0_9, %c0_10] : memref<7x128x128xf32, #tpu.memory_space<vmem>>, vector<1x128x128xf32>
    %16 = vector.shape_cast %15 : vector<1x128x128xf32> to vector<128x128xf32>
    %cst_11 = arith.constant dense<0.000000e+00> : vector<32x128xf32>
    %17 = tpu.matmul %14, %16, %cst_11 {dimension_numbers = #tpu.dot_dimension_numbers<[1], [0], [0], [1], [0, 0, 1, 1], [], []>} : vector<32x128xf32>, vector<128x128xf32>, vector<32x128xf32> -> vector<32x128xf32>
    %18 = arith.addf %10, %17 : vector<32x128xf32>
    %c2_i32 = arith.constant 2 : i32
    %19 = arith.addi %1, %c2_i32 : i32
    %c0_12 = arith.constant 0 : index
    %c0_13 = arith.constant 0 : index
    %20 = arith.index_cast %19 : i32 to index
    %c0_14 = arith.constant 0 : index
    %21 = vector.load %arg2[%c0_12, %c0_13, %20, %c0_14] : memref<1x1x38x128xf32, #tpu.memory_space<vmem>>, vector<1x1x32x128xf32>
    %22 = vector.shape_cast %21 : vector<1x1x32x128xf32> to vector<32x128xf32>
    %c2 = arith.constant 2 : index
    %c0_15 = arith.constant 0 : index
    %c0_16 = arith.constant 0 : index
    %23 = vector.load %arg3[%c2, %c0_15, %c0_16] : memref<7x128x128xf32, #tpu.memory_space<vmem>>, vector<1x128x128xf32>
    %24 = vector.shape_cast %23 : vector<1x128x128xf32> to vector<128x128xf32>
    %cst_17 = arith.constant dense<0.000000e+00> : vector<32x128xf32>
    %25 = tpu.matmul %22, %24, %cst_17 {dimension_numbers = #tpu.dot_dimension_numbers<[1], [0], [0], [1], [0, 0, 1, 1], [], []>} : vector<32x128xf32>, vector<128x128xf32>, vector<32x128xf32> -> vector<32x128xf32>
    %26 = arith.addf %18, %25 : vector<32x128xf32>
    %c3_i32 = arith.constant 3 : i32
    %27 = arith.addi %1, %c3_i32 : i32
    %c0_18 = arith.constant 0 : index
    %c0_19 = arith.constant 0 : index
    %28 = arith.index_cast %27 : i32 to index
    %c0_20 = arith.constant 0 : index
    %29 = vector.load %arg2[%c0_18, %c0_19, %28, %c0_20] : memref<1x1x38x128xf32, #tpu.memory_space<vmem>>, vector<1x1x32x128xf32>
    %30 = vector.shape_cast %29 : vector<1x1x32x128xf32> to vector<32x128xf32>
    %c3 = arith.constant 3 : index
    %c0_21 = arith.constant 0 : index
    %c0_22 = arith.constant 0 : index
    %31 = vector.load %arg3[%c3, %c0_21, %c0_22] : memref<7x128x128xf32, #tpu.memory_space<vmem>>, vector<1x128x128xf32>
    %32 = vector.shape_cast %31 : vector<1x128x128xf32> to vector<128x128xf32>
    %cst_23 = arith.constant dense<0.000000e+00> : vector<32x128xf32>
    %33 = tpu.matmul %30, %32, %cst_23 {dimension_numbers = #tpu.dot_dimension_numbers<[1], [0], [0], [1], [0, 0, 1, 1], [], []>} : vector<32x128xf32>, vector<128x128xf32>, vector<32x128xf32> -> vector<32x128xf32>
    %34 = arith.addf %26, %33 : vector<32x128xf32>
    %c4_i32 = arith.constant 4 : i32
    %35 = arith.addi %1, %c4_i32 : i32
    %c0_24 = arith.constant 0 : index
    %c0_25 = arith.constant 0 : index
    %36 = arith.index_cast %35 : i32 to index
    %c0_26 = arith.constant 0 : index
    %37 = vector.load %arg2[%c0_24, %c0_25, %36, %c0_26] : memref<1x1x38x128xf32, #tpu.memory_space<vmem>>, vector<1x1x32x128xf32>
    %38 = vector.shape_cast %37 : vector<1x1x32x128xf32> to vector<32x128xf32>
    %c4 = arith.constant 4 : index
    %c0_27 = arith.constant 0 : index
    %c0_28 = arith.constant 0 : index
    %39 = vector.load %arg3[%c4, %c0_27, %c0_28] : memref<7x128x128xf32, #tpu.memory_space<vmem>>, vector<1x128x128xf32>
    %40 = vector.shape_cast %39 : vector<1x128x128xf32> to vector<128x128xf32>
    %cst_29 = arith.constant dense<0.000000e+00> : vector<32x128xf32>
    %41 = tpu.matmul %38, %40, %cst_29 {dimension_numbers = #tpu.dot_dimension_numbers<[1], [0], [0], [1], [0, 0, 1, 1], [], []>} : vector<32x128xf32>, vector<128x128xf32>, vector<32x128xf32> -> vector<32x128xf32>
    %42 = arith.addf %34, %41 : vector<32x128xf32>
    %c5_i32 = arith.constant 5 : i32
    %43 = arith.addi %1, %c5_i32 : i32
    %c0_30 = arith.constant 0 : index
    %c0_31 = arith.constant 0 : index
    %44 = arith.index_cast %43 : i32 to index
    %c0_32 = arith.constant 0 : index
    %45 = vector.load %arg2[%c0_30, %c0_31, %44, %c0_32] : memref<1x1x38x128xf32, #tpu.memory_space<vmem>>, vector<1x1x32x128xf32>
    %46 = vector.shape_cast %45 : vector<1x1x32x128xf32> to vector<32x128xf32>
    %c5 = arith.constant 5 : index
    %c0_33 = arith.constant 0 : index
    %c0_34 = arith.constant 0 : index
    %47 = vector.load %arg3[%c5, %c0_33, %c0_34] : memref<7x128x128xf32, #tpu.memory_space<vmem>>, vector<1x128x128xf32>
    %48 = vector.shape_cast %47 : vector<1x128x128xf32> to vector<128x128xf32>
    %cst_35 = arith.constant dense<0.000000e+00> : vector<32x128xf32>
    %49 = tpu.matmul %46, %48, %cst_35 {dimension_numbers = #tpu.dot_dimension_numbers<[1], [0], [0], [1], [0, 0, 1, 1], [], []>} : vector<32x128xf32>, vector<128x128xf32>, vector<32x128xf32> -> vector<32x128xf32>
    %50 = arith.addf %42, %49 : vector<32x128xf32>
    %c6_i32 = arith.constant 6 : i32
    %51 = arith.addi %1, %c6_i32 : i32
    %c0_36 = arith.constant 0 : index
    %c0_37 = arith.constant 0 : index
    %52 = arith.index_cast %51 : i32 to index
    %c0_38 = arith.constant 0 : index
    %53 = vector.load %arg2[%c0_36, %c0_37, %52, %c0_38] : memref<1x1x38x128xf32, #tpu.memory_space<vmem>>, vector<1x1x32x128xf32>
    %54 = vector.shape_cast %53 : vector<1x1x32x128xf32> to vector<32x128xf32>
    %c6 = arith.constant 6 : index
    %c0_39 = arith.constant 0 : index
    %c0_40 = arith.constant 0 : index
    %55 = vector.load %arg3[%c6, %c0_39, %c0_40] : memref<7x128x128xf32, #tpu.memory_space<vmem>>, vector<1x128x128xf32>
    %56 = vector.shape_cast %55 : vector<1x128x128xf32> to vector<128x128xf32>
    %cst_41 = arith.constant dense<0.000000e+00> : vector<32x128xf32>
    %57 = tpu.matmul %54, %56, %cst_41 {dimension_numbers = #tpu.dot_dimension_numbers<[1], [0], [0], [1], [0, 0, 1, 1], [], []>} : vector<32x128xf32>, vector<128x128xf32>, vector<32x128xf32> -> vector<32x128xf32>
    %58 = arith.addf %50, %57 : vector<32x128xf32>
    %c0_42 = arith.constant 0 : index
    %c0_43 = arith.constant 0 : index
    %59 = vector.load %arg4[%c0_42, %c0_43] : memref<1x128xf32, #tpu.memory_space<vmem>>, vector<1x128xf32>
    %60 = vector.broadcast %59 : vector<1x128xf32> to vector<32x128xf32>
    %61 = arith.addf %58, %60 : vector<32x128xf32>
    %c0_44 = arith.constant 0 : index
    %c0_45 = arith.constant 0 : index
    %c0_46 = arith.constant 0 : index
    %62 = vector.load %arg5[%c0_44, %c0_45, %c0_46] : memref<1x32x128xf32, #tpu.memory_space<vmem>>, vector<1x32x128xf32>
    %63 = vector.shape_cast %62 : vector<1x32x128xf32> to vector<32x128xf32>
    %64 = vector.shape_cast %61 : vector<32x128xf32> to vector<1x32x128xf32>
    tpu.vector_store %arg5[%c0_44, %c0_45, %c0_46], %64 {strides = array<i32>} : memref<1x32x128xf32, #tpu.memory_space<vmem>>, vector<1x32x128xf32>,
    return
  }
  func.func @transform_0(%arg0: i32, %arg1: i32) -> (i32, i32, i32, i32) {
    %c0_i32 = arith.constant 0 : i32
    %c0_i32_0 = arith.constant 0 : i32
    %c0_i32_1 = arith.constant 0 : i32
    %c0_i32_2 = arith.constant 0 : i32
    return %arg0, %c0_i32, %c0_i32_0, %c0_i32_1 : i32, i32, i32, i32
  }
  func.func @transform_1(%arg0: i32, %arg1: i32) -> (i32, i32, i32) {
    %c0_i32 = arith.constant 0 : i32
    %c0_i32_0 = arith.constant 0 : i32
    %c0_i32_1 = arith.constant 0 : i32
    %c0_i32_2 = arith.constant 0 : i32
    return %c0_i32, %c0_i32_0, %c0_i32_1 : i32, i32, i32
  }
  func.func @transform_2(%arg0: i32, %arg1: i32) -> (i32, i32) {
    %c0_i32 = arith.constant 0 : i32
    %c0_i32_0 = arith.constant 0 : i32
    %c0_i32_1 = arith.constant 0 : i32
    return %c0_i32, %c0_i32_0 : i32, i32
  }
  func.func @transform_3(%arg0: i32, %arg1: i32) -> (i32, i32, i32) {
    %c0_i32 = arith.constant 0 : i32
    %c0_i32_0 = arith.constant 0 : i32
    return %arg0, %arg1, %c0_i32 : i32, i32, i32
  }
}

module attributes {stable_mosaic.version = 11 : i64} {
  func.func @_behavior_kernel(%arg0: i32, %arg1: memref<2x8x128xf32, #tpu.memory_space<vmem>>, %arg2: memref<128x128xf32, #tpu.memory_space<vmem>>, %arg3: memref<1x128xf32, #tpu.memory_space<vmem>>, %arg4: memref<128x128xf32, #tpu.memory_space<vmem>>, %arg5: memref<1x128xf32, #tpu.memory_space<vmem>>, %arg6: memref<2x128xf32, #tpu.memory_space<vmem>>) attributes {dimension_semantics = [#tpu.dimension_semantics<arbitrary>], iteration_bounds = array<i64: 1>, scalar_prefetch = 0 : i64, scratch_operands = 0 : i64, tpu.core_type = #tpu.core_type<tc>, window_params = [{pipeline_mode = #tpu.pipeline_mode<synchronous>, transform_indices = @transform_0, window_bounds = array<i64: 2, 8, 128>}, {pipeline_mode = #tpu.pipeline_mode<synchronous>, transform_indices = @transform_1, window_bounds = array<i64: 128, 128>}, {pipeline_mode = #tpu.pipeline_mode<synchronous>, transform_indices = @transform_2, window_bounds = array<i64: 1, 128>}, {pipeline_mode = #tpu.pipeline_mode<synchronous>, transform_indices = @transform_3, window_bounds = array<i64: 128, 128>}, {pipeline_mode = #tpu.pipeline_mode<synchronous>, transform_indices = @transform_4, window_bounds = array<i64: 1, 128>}, {pipeline_mode = #tpu.pipeline_mode<synchronous>, transform_indices = @transform_5, window_bounds = array<i64: 2, 128>}]} {
    %c0 = arith.constant 0 : index
    %c0_0 = arith.constant 0 : index
    %c0_1 = arith.constant 0 : index
    %0 = vector.load %arg1[%c0, %c0_0, %c0_1] : memref<2x8x128xf32, #tpu.memory_space<vmem>>, vector<1x8x128xf32>
    %1 = vector.shape_cast %0 : vector<1x8x128xf32> to vector<8x128xf32>
    %cst = arith.constant dense<0.000000e+00> : vector<128xf32>
    %2 = vector.multi_reduction <add>, %1, %cst [0] : vector<8x128xf32> to vector<128xf32>
    %3 = vector.shape_cast %2 : vector<128xf32> to vector<1x128xf32>
    %cst_2 = arith.constant 8.000000e+00 : f32
    %4 = vector.broadcast %cst_2 : f32 to vector<1x128xf32>
    %5 = arith.divf %3, %4 : vector<1x128xf32>
    %c1 = arith.constant 1 : index
    %c0_3 = arith.constant 0 : index
    %c0_4 = arith.constant 0 : index
    %6 = vector.load %arg1[%c1, %c0_3, %c0_4] : memref<2x8x128xf32, #tpu.memory_space<vmem>>, vector<1x8x128xf32>
    %7 = vector.shape_cast %6 : vector<1x8x128xf32> to vector<8x128xf32>
    %cst_5 = arith.constant dense<0.000000e+00> : vector<128xf32>
    %8 = vector.multi_reduction <add>, %7, %cst_5 [0] : vector<8x128xf32> to vector<128xf32>
    %9 = vector.shape_cast %8 : vector<128xf32> to vector<1x128xf32>
    %cst_6 = arith.constant 8.000000e+00 : f32
    %10 = vector.broadcast %cst_6 : f32 to vector<1x128xf32>
    %11 = arith.divf %9, %10 : vector<1x128xf32>
    %12 = tpu.concatenate %5, %11 in 0 : vector<1x128xf32>, vector<1x128xf32> -> vector<2x128xf32>
    %c0_7 = arith.constant 0 : index
    %c0_8 = arith.constant 0 : index
    %13 = vector.load %arg2[%c0_7, %c0_8] : memref<128x128xf32, #tpu.memory_space<vmem>>, vector<128x128xf32>
    %cst_9 = arith.constant dense<0.000000e+00> : vector<2x128xf32>
    %14 = tpu.matmul %12, %13, %cst_9 {dimension_numbers = #tpu.dot_dimension_numbers<[1], [0], [0], [1], [0, 0, 1, 1], [], []>} : vector<2x128xf32>, vector<128x128xf32>, vector<2x128xf32> -> vector<2x128xf32>
    %c0_10 = arith.constant 0 : index
    %c0_11 = arith.constant 0 : index
    %15 = vector.load %arg3[%c0_10, %c0_11] : memref<1x128xf32, #tpu.memory_space<vmem>>, vector<1x128xf32>
    %16 = vector.broadcast %15 : vector<1x128xf32> to vector<2x128xf32>
    %17 = arith.addf %14, %16 : vector<2x128xf32>
    %cst_12 = arith.constant 0.000000e+00 : f32
    %18 = vector.broadcast %cst_12 : f32 to vector<2x128xf32>
    %19 = arith.maximumf %17, %18 : vector<2x128xf32>
    %c0_13 = arith.constant 0 : index
    %c0_14 = arith.constant 0 : index
    %20 = vector.load %arg4[%c0_13, %c0_14] : memref<128x128xf32, #tpu.memory_space<vmem>>, vector<128x128xf32>
    %cst_15 = arith.constant dense<0.000000e+00> : vector<2x128xf32>
    %21 = tpu.matmul %19, %20, %cst_15 {dimension_numbers = #tpu.dot_dimension_numbers<[1], [0], [0], [1], [0, 0, 1, 1], [], []>} : vector<2x128xf32>, vector<128x128xf32>, vector<2x128xf32> -> vector<2x128xf32>
    %c0_16 = arith.constant 0 : index
    %c0_17 = arith.constant 0 : index
    %22 = vector.load %arg5[%c0_16, %c0_17] : memref<1x128xf32, #tpu.memory_space<vmem>>, vector<1x128xf32>
    %23 = vector.broadcast %22 : vector<1x128xf32> to vector<2x128xf32>
    %24 = arith.addf %21, %23 : vector<2x128xf32>
    %c0_18 = arith.constant 0 : index
    %c0_19 = arith.constant 0 : index
    %25 = vector.load %arg6[%c0_18, %c0_19] : memref<2x128xf32, #tpu.memory_space<vmem>>, vector<2x128xf32>
    tpu.vector_store %arg6[%c0_18, %c0_19], %24 {strides = array<i32>} : memref<2x128xf32, #tpu.memory_space<vmem>>, vector<2x128xf32>,
    return
  }
  func.func @transform_0(%arg0: i32) -> (i32, i32, i32) {
    %c0_i32 = arith.constant 0 : i32
    %c0_i32_0 = arith.constant 0 : i32
    %c0_i32_1 = arith.constant 0 : i32
    %c0_i32_2 = arith.constant 0 : i32
    return %c0_i32, %c0_i32_0, %c0_i32_1 : i32, i32, i32
  }
  func.func @transform_1(%arg0: i32) -> (i32, i32) {
    %c0_i32 = arith.constant 0 : i32
    %c0_i32_0 = arith.constant 0 : i32
    %c0_i32_1 = arith.constant 0 : i32
    return %c0_i32, %c0_i32_0 : i32, i32
  }
  func.func @transform_2(%arg0: i32) -> (i32, i32) {
    %c0_i32 = arith.constant 0 : i32
    %c0_i32_0 = arith.constant 0 : i32
    %c0_i32_1 = arith.constant 0 : i32
    return %c0_i32, %c0_i32_0 : i32, i32
  }
  func.func @transform_3(%arg0: i32) -> (i32, i32) {
    %c0_i32 = arith.constant 0 : i32
    %c0_i32_0 = arith.constant 0 : i32
    %c0_i32_1 = arith.constant 0 : i32
    return %c0_i32, %c0_i32_0 : i32, i32
  }
  func.func @transform_4(%arg0: i32) -> (i32, i32) {
    %c0_i32 = arith.constant 0 : i32
    %c0_i32_0 = arith.constant 0 : i32
    %c0_i32_1 = arith.constant 0 : i32
    return %c0_i32, %c0_i32_0 : i32, i32
  }
  func.func @transform_5(%arg0: i32) -> (i32, i32) {
    %c0_i32 = arith.constant 0 : i32
    %c0_i32_0 = arith.constant 0 : i32
    %c0_i32_1 = arith.constant 0 : i32
    return %c0_i32, %c0_i32_0 : i32, i32
  }
}

</mosaic_0001>

<bundles_post_ra>
// kernel: calcium_vqvae_forward.17
= control target key start
LH: loop header
LB: loop body
LE: loop exit
PB: predicated region body
PF: predicated region fallthrough
CT: control target
= control target key end

     0   :  { %s508_s12 = smov 0   ;;  %s510_s13 = smov 0   ;;  %s696_s0 = inlined_call_operand.vmem [shape: f32[2,1,10,128], index: 0, kind: input, shape index: {}]   ;;  %s697_s1 = inlined_call_operand.vmem [shape: f32[3,128,128], index: 1, kind: input, shape index: {}]   ;;  %s698_s2 = inlined_call_operand.vmem [shape: f32[1,128], index: 2, kind: input, shape index: {}]   ;;  %s699_s3 = inlined_call_operand.vmem [shape: f32[2,8,128], index: 3, kind: output, shape index: {}]  }
   0x1   :  { %s512_s14 = smov 0  }
   0x2 LB: > { %s25_s15 = sadd.s32 1, %s482_s13  ;;  %p398_p0 = scmp.ge.s32.totalorder %s486_s14, 1  ;;  %s486_s14 = sphi %s512_s14, %s13_s14   ;;  %s482_s13 = sphi %s510_s13, %s701_s13   ;;  %s478_s12 = sphi %s508_s12, %s700_s12  }
   0x3   : > { %p27_p1 = scmp.ge.s32.totalorder %s25_s15, 2  ;;  %p151_p2 = scmp.lt.s32.totalorder %s486_s14, 3 }
   0x5   : > { %s703_s15 = smov (%p27_p1, %s25_s15), 0  ;;  %p152_p3 = pnand %p398_p0, %p151_p2 }
   0x6   : > { %p177_p4 = scmp.lt.s32.totalorder (!%p152_p3), %s478_s12, 1 }
   0x7   : > { %155 = sbr.rel (%p152_p3) target bundleno = 181 (0xb5), region = 32 }
   0xc   : > { %v435_v0 = vld [vmem:[%s697_s1 + $0x178] sm:$0xff]  ;;  %v434_v1 = vld [vmem:[%s697_s1 + $0x170] sm:$0xff]  ;;  %v433_v5 = vld [vmem:[%s697_s1 + $0x168] sm:$0xff]  ;;  %s705_s12 = smov (!%p177_p4, %s478_s12), 1 }
   0xd   : > { %v418_v2 = vld [vmem:[%s697_s1 + $0xf8] sm:$0xff]  ;;  %288 = vmatpush.msra.mxu2 %v435_v0  ;;  %v417_v4 = vld [vmem:[%s697_s1 + $0xf0] sm:$0xff]  ;;  %v416_v7 = vld [vmem:[%s697_s1 + $0xe8] sm:$0xff]  ;;  %s438_s25 = sshll.u32 %s705_s12, 4  ;;  %s401_s24 = sshll.u32 %s705_s12, 3 }
   0xe   : > { %228 = vmatpush.msra.mxu0 %v418_v2  ;;  %v207_v3 = vld [vmem:[%s697_s1 + $0x78] sm:$0xff]  ;;  %v206_v6 = vld [vmem:[%s697_s1 + $0x70] sm:$0xff]  ;;  %v205_v8 = vld [vmem:[%s697_s1 + $0x68] sm:$0xff]  ;;  %s181_s9 = scalar_lea.vmem %s696_s0, %s438_s25  ;;  %s188_s29 = scalar_lea.vmem %s699_s3, %s401_s24 }
   0xf   : > { %248 = vmatpush.msra.mxu1 %v207_v3  ;;  %289 = vmatpush.msra.mxu2 %v434_v1  ;;  %v432_v9 = vld [vmem:[%s697_s1 + $0x160] sm:$0xff]  ;;  %v431_v12 = vld [vmem:[%s697_s1 + $0x158] sm:$0xff]  ;;  %v430_v15 = vld [vmem:[%s697_s1 + $0x150] sm:$0xff] }
  0x10   : > { %229 = vmatpush.msra.mxu0 %v417_v4  ;;  %v415_v10 = vld [vmem:[%s697_s1 + $0xe0] sm:$0xff]  ;;  %v414_v13 = vld [vmem:[%s697_s1 + $0xd8] sm:$0xff]  ;;  %v413_v16 = vld [vmem:[%s697_s1 + $0xd0] sm:$0xff] }
  0x11   : > { %249 = vmatpush.msra.mxu1 %v206_v6  ;;  %290 = vmatpush.msra.mxu2 %v433_v5  ;;  %v204_v11 = vld [vmem:[%s697_s1 + $0x60] sm:$0xff]  ;;  %v203_v14 = vld [vmem:[%s697_s1 + $0x58] sm:$0xff]  ;;  %v202_v17 = vld [vmem:[%s697_s1 + $0x50] sm:$0xff] }
  0x12   : > { %230 = vmatpush.msra.mxu0 %v416_v7  ;;  %v429_v18 = vld [vmem:[%s697_s1 + $0x148] sm:$0xff]  ;;  %v428_v21 = vld [vmem:[%s697_s1 + $0x140] sm:$0xff]  ;;  %v427_v24 = vld [vmem:[%s697_s1 + $0x138] sm:$0xff] }
  0x13   : > { %250 = vmatpush.msra.mxu1 %v205_v8  ;;  %291 = vmatpush.msra.mxu2 %v432_v9  ;;  %v412_v19 = vld [vmem:[%s697_s1 + $0xc8] sm:$0xff]  ;;  %v411_v22 = vld [vmem:[%s697_s1 + $0xc0] sm:$0xff]  ;;  %v410_v25 = vld [vmem:[%s697_s1 + $0xb8] sm:$0xff] }
  0x14   : > { %231 = vmatpush.msra.mxu0 %v415_v10  ;;  %v201_v20 = vld [vmem:[%s697_s1 + $0x48] sm:$0xff]  ;;  %v200_v23 = vld [vmem:[%s697_s1 + $0x40] sm:$0xff]  ;;  %v199_v26 = vld [vmem:[%s697_s1 + $0x38] sm:$0xff] }
  0x15   : > { %251 = vmatpush.msra.mxu1 %v204_v11  ;;  %292 = vmatpush.msra.mxu2 %v431_v12  ;;  %v426_v27 = vld [vmem:[%s697_s1 + $0x130] sm:$0xff]  ;;  %v425_v30 = vld [vmem:[%s697_s1 + $0x128] sm:$0xff]  ;;  %v424_v33 = vld [vmem:[%s697_s1 + $0x120] sm:$0xff] }
  0x16   : > { %232 = vmatpush.msra.mxu0 %v414_v13  ;;  %v409_v28 = vld [vmem:[%s697_s1 + $0xb0] sm:$0xff]  ;;  %v408_v31 = vld [vmem:[%s697_s1 + $0xa8] sm:$0xff]  ;;  %v407_v34 = vld [vmem:[%s697_s1 + $0xa0] sm:$0xff] }
  0x17   : > { %252 = vmatpush.msra.mxu1 %v203_v14  ;;  %293 = vmatpush.msra.mxu2 %v430_v15  ;;  %v198_v29 = vld [vmem:[%s697_s1 + $0x30] sm:$0xff]  ;;  %v197_v32 = vld [vmem:[%s697_s1 + $0x28] sm:$0xff]  ;;  %v196_v35 = vld [vmem:[%s697_s1 + $0x20] sm:$0xff] }
  0x18   : > { %233 = vmatpush.msra.mxu0 %v413_v16  ;;  %v423_v36 = vld [vmem:[%s697_s1 + $0x118] sm:$0xff]  ;;  %v422_v39 = vld [vmem:[%s697_s1 + $0x110] sm:$0xff]  ;;  %v421_v42 = vld [vmem:[%s697_s1 + $0x108] sm:$0xff] }
  0x19   : > { %253 = vmatpush.msra.mxu1 %v202_v17  ;;  %294 = vmatpush.msra.mxu2 %v429_v18  ;;  %v406_v37 = vld [vmem:[%s697_s1 + $0x98] sm:$0xff]  ;;  %v405_v40 = vld [vmem:[%s697_s1 + $0x90] sm:$0xff]  ;;  %v404_v43 = vld [vmem:[%s697_s1 + $0x88] sm:$0xff] }
  0x1a   : > { %234 = vmatpush.msra.mxu0 %v412_v19  ;;  %v195_v38 = vld [vmem:[%s697_s1 + $0x18] sm:$0xff]  ;;  %v194_v41 = vld [vmem:[%s697_s1 + $0x10] sm:$0xff]  ;;  %v193_v44 = vld [vmem:[%s697_s1 + $0x8] sm:$0xff] }
  0x1b   : > { %254 = vmatpush.msra.mxu1 %v201_v20  ;;  %295 = vmatpush.msra.mxu2 %v428_v21  ;;  %v420_v45 = vld [vmem:[%s697_s1 + $0x100] sm:$0xff] }
  0x1c   : > { %235 = vmatpush.msra.mxu0 %v411_v22  ;;  %v403_v46 = vld [vmem:[%s697_s1 + $0x80] sm:$0xff] }
  0x1d   : > { %255 = vmatpush.msra.mxu1 %v200_v23  ;;  %296 = vmatpush.msra.mxu2 %v427_v24  ;;  %v419_v47 = vld [vmem:[%s181_s9 + $0x2] sm:$0xff]  ;;  %v463_v54 = vld [vmem:[%s698_s2] ss:$0 sm:$0xff] }
  0x1e   : > { %236 = vmatpush.msra.mxu0 %v410_v25  ;;  %v192_v48 = vld [vmem:[%s697_s1] sm:$0xff] }
  0x1f   : > { %256 = vmatpush.msra.mxu1 %v199_v26  ;;  %297 = vmatpush.msra.mxu2 %v426_v27  ;;  %v402_v49 = vld [vmem:[%s181_s9 + $0x1] sm:$0xff] }
  0x20   : > { %237 = vmatpush.msra.mxu0 %v409_v28  ;;  %v191_v50 = vld [vmem:[%s181_s9] sm:$0xff] }
  0x21   : > { %257 = vmatpush.msra.mxu1 %v198_v29  ;;  %298 = vmatpush.msra.mxu2 %v425_v30 }
  0x22   : > { %238 = vmatpush.msra.mxu0 %v408_v31 }
  0x23   : > { %258 = vmatpush.msra.mxu1 %v197_v32  ;;  %299 = vmatpush.msra.mxu2 %v424_v33 }
  0x24   : > { %239 = vmatpush.msra.mxu0 %v407_v34 }
  0x25   : > { %259 = vmatpush.msra.mxu1 %v196_v35  ;;  %300 = vmatpush.msra.mxu2 %v423_v36 }
  0x26   : > { %240 = vmatpush.msra.mxu0 %v406_v37 }
  0x27   : > { %260 = vmatpush.msra.mxu1 %v195_v38  ;;  %301 = vmatpush.msra.mxu2 %v422_v39 }
  0x28   : > { %241 = vmatpush.msra.mxu0 %v405_v40 }
  0x29   : > { %261 = vmatpush.msra.mxu1 %v194_v41  ;;  %302 = vmatpush.msra.mxu2 %v421_v42 }
  0x2a   : > { %242 = vmatpush.msra.mxu0 %v404_v43 }
  0x2b   : > { %262 = vmatpush.msra.mxu1 %v193_v44  ;;  %303 = vmatpush.msra.mxu2 %v420_v45 }
  0x2c   : > { %243 = vmatpush.msra.mxu0 %v403_v46  ;;  %304 = vmatmul.f32.vlgmr.msra.gmra.mxu2 %v419_v47 }
  0x2d   : > { %263 = vmatpush.msra.mxu1 %v192_v48  ;;  %244 = vmatmul.f32.vlgmr.msra.gmra.mxu0 %v402_v49 }
  0x2e   : > { %264 = vmatmul.f32.vlgmr.msra.gmra.mxu1 %v191_v50 }
  0xaa   : > { %v245_v51 = vpop.f32.mrf.mxu0 }
  0xab   : > { %v265_v52 = vpop.f32.mrf.mxu1 }
  0xac   : > { %v266_v53 = vadd.f32 %v265_v52, %v245_v51 }
  0xaf   : > { %v305_v55 = vpop.f32.mrf.mxu2 }
  0xb0   : > { %v308_v56 = vadd.f32 %v305_v55, %v266_v53 }
  0xb2   : > { %v313_v57 = vadd.f32 %v463_v54, %v308_v56 }
  0xb4   : > { %314 = vst [vmem:[%s188_s29] sm:$0xff] %v313_v57 }
  0xb5 PF: > { %s13_s14 = sadd.s32 1, %s486_s14   ;;  %s700_s12 = smov %s482_s13 }
  0xb6   : > { %p10_p5 = scmp.ge.s32.totalorder %s13_s14, 4   ;;  %s701_s13 = smov %s703_s15 }
  0xb8   :  { %12 = sbr.rel (!%p10_p5) target bundleno = 2 (0x2), region = 67 }

// kernel: calcium_vqvae_forward.16
= control target key start
LH: loop header
LB: loop body
LE: loop exit
PB: predicated region body
PF: predicated region fallthrough
CT: control target
= control target key end

     0   :  { %s631_s12 = smov 0   ;;  %s633_s13 = smov 0   ;;  %s924_s0 = inlined_call_operand.vmem [shape: f32[2,2,10,128], index: 0, kind: input, shape index: {}]   ;;  %s925_s1 = inlined_call_operand.vmem [shape: f32[5,128,128], index: 1, kind: input, shape index: {}]   ;;  %s926_s2 = inlined_call_operand.vmem [shape: f32[1,128], index: 2, kind: input, shape index: {}]   ;;  %s927_s3 = inlined_call_operand.vmem [shape: f32[2,8,128], index: 3, kind: output, shape index: {}]  }
   0x1   :  { %s635_s14 = smov 0  }
   0x2 LB: > { %s25_s15 = sadd.s32 1, %s605_s13  ;;  %p487_p0 = scmp.ge.s32.totalorder %s609_s14, 1  ;;  %s609_s14 = sphi %s635_s14, %s13_s14   ;;  %s605_s13 = sphi %s633_s13, %s929_s13   ;;  %s601_s12 = sphi %s631_s12, %s928_s12  }
   0x3   : > { %p27_p1 = scmp.ge.s32.totalorder %s25_s15, 2  ;;  %p151_p2 = scmp.lt.s32.totalorder %s609_s14, 3 }
   0x5   : > { %s931_s15 = smov (%p27_p1, %s25_s15), 0  ;;  %p152_p3 = pnand %p487_p0, %p151_p2 }
   0x6   : > { %p177_p4 = scmp.lt.s32.totalorder (!%p152_p3), %s601_s12, 1 }
   0x7   : > { %155 = sbr.rel (%p152_p3) target bundleno = 209 (0xd1), region = 32 }
   0xc   : > { %v507_v0 = vld [vmem:[%s925_s1 + $0xf8] sm:$0xff]  ;;  %v506_v1 = vld [vmem:[%s925_s1 + $0xf0] sm:$0xff]  ;;  %v505_v2 = vld [vmem:[%s925_s1 + $0xe8] sm:$0xff]  ;;  %s933_s12 = smov (!%p177_p4, %s601_s12), 1 }
   0xd   : > { %228 = vmatpush.msra.mxu0 %v507_v0  ;;  %v524_v3 = vld [vmem:[%s925_s1 + $0x178] sm:$0xff]  ;;  %v504_v4 = vld [vmem:[%s925_s1 + $0xe0] sm:$0xff]  ;;  %v523_v5 = vld [vmem:[%s925_s1 + $0x170] sm:$0xff]  ;;  %s561_s30 = sshll.u32 %s933_s12, 5  ;;  %s490_s23 = sshll.u32 %s933_s12, 3 }
   0xe   : > { %288 = vmatpush.msra.mxu2 %v524_v3  ;;  %v541_v6 = vld [vmem:[%s925_s1 + $0x1f8] sm:$0xff]  ;;  %v522_v8 = vld [vmem:[%s925_s1 + $0x168] sm:$0xff]  ;;  %v540_v9 = vld [vmem:[%s925_s1 + $0x1f0] sm:$0xff]  ;;  %s838_s22 = scalar_lea.vmem %s924_s0, %s561_s30 }
   0xf   : > { %229 = vmatpush.msra.mxu0 %v506_v1  ;;  %329 = vmatpush.msra.mxu3 %v541_v6  ;;  %v207_v7 = vld [vmem:[%s925_s1 + $0x78] sm:$0xff]  ;;  %v206_v11 = vld [vmem:[%s925_s1 + $0x70] sm:$0xff]  ;;  %v521_v12 = vld [vmem:[%s925_s1 + $0x160] sm:$0xff] }
  0x10   : > { %v503_v10 = vld [vmem:[%s925_s1 + $0xd8] sm:$0xff]  ;;  %289 = vmatpush.msra.mxu2 %v523_v5  ;;  %248 = vmatpush.msra.mxu1 %v207_v7  ;;  %v539_v13 = vld [vmem:[%s925_s1 + $0x1e8] sm:$0xff]  ;;  %v502_v15 = vld [vmem:[%s925_s1 + $0xd0] sm:$0xff] }
  0x11   : > { %230 = vmatpush.msra.mxu0 %v505_v2  ;;  %330 = vmatpush.msra.mxu3 %v540_v9  ;;  %v205_v14 = vld [vmem:[%s925_s1 + $0x68] sm:$0xff]  ;;  %v538_v16 = vld [vmem:[%s925_s1 + $0x1e0] sm:$0xff]  ;;  %v520_v17 = vld [vmem:[%s925_s1 + $0x158] sm:$0xff] }
  0x12   : > { %290 = vmatpush.msra.mxu2 %v522_v8  ;;  %249 = vmatpush.msra.mxu1 %v206_v11  ;;  %v204_v18 = vld [vmem:[%s925_s1 + $0x60] sm:$0xff]  ;;  %v501_v19 = vld [vmem:[%s925_s1 + $0xc8] sm:$0xff]  ;;  %v537_v20 = vld [vmem:[%s925_s1 + $0x1d8] sm:$0xff] }
  0x13   : > { %231 = vmatpush.msra.mxu0 %v504_v4  ;;  %331 = vmatpush.msra.mxu3 %v539_v13  ;;  %v519_v21 = vld [vmem:[%s925_s1 + $0x150] sm:$0xff]  ;;  %v203_v22 = vld [vmem:[%s925_s1 + $0x58] sm:$0xff]  ;;  %v500_v23 = vld [vmem:[%s925_s1 + $0xc0] sm:$0xff] }
  0x14   : > { %291 = vmatpush.msra.mxu2 %v521_v12  ;;  %250 = vmatpush.msra.mxu1 %v205_v14  ;;  %v536_v24 = vld [vmem:[%s925_s1 + $0x1d0] sm:$0xff]  ;;  %v518_v25 = vld [vmem:[%s925_s1 + $0x148] sm:$0xff]  ;;  %v499_v27 = vld [vmem:[%s925_s1 + $0xb8] sm:$0xff] }
  0x15   : > { %232 = vmatpush.msra.mxu0 %v503_v10  ;;  %332 = vmatpush.msra.mxu3 %v538_v16  ;;  %v202_v26 = vld [vmem:[%s925_s1 + $0x50] sm:$0xff]  ;;  %v535_v28 = vld [vmem:[%s925_s1 + $0x1c8] sm:$0xff]  ;;  %v517_v29 = vld [vmem:[%s925_s1 + $0x140] sm:$0xff] }
  0x16   : > { %292 = vmatpush.msra.mxu2 %v520_v17  ;;  %251 = vmatpush.msra.mxu1 %v204_v18  ;;  %v201_v30 = vld [vmem:[%s925_s1 + $0x48] sm:$0xff]  ;;  %v498_v31 = vld [vmem:[%s925_s1 + $0xb0] sm:$0xff]  ;;  %v534_v32 = vld [vmem:[%s925_s1 + $0x1c0] sm:$0xff] }
  0x17   : > { %233 = vmatpush.msra.mxu0 %v502_v15  ;;  %333 = vmatpush.msra.mxu3 %v537_v20  ;;  %v516_v33 = vld [vmem:[%s925_s1 + $0x138] sm:$0xff]  ;;  %v200_v34 = vld [vmem:[%s925_s1 + $0x40] sm:$0xff]  ;;  %v497_v35 = vld [vmem:[%s925_s1 + $0xa8] sm:$0xff] }
  0x18   : > { %293 = vmatpush.msra.mxu2 %v519_v21  ;;  %252 = vmatpush.msra.mxu1 %v203_v22  ;;  %v533_v36 = vld [vmem:[%s925_s1 + $0x1b8] sm:$0xff]  ;;  %v515_v37 = vld [vmem:[%s925_s1 + $0x130] sm:$0xff]  ;;  %v496_v39 = vld [vmem:[%s925_s1 + $0xa0] sm:$0xff] }
  0x19   : > { %234 = vmatpush.msra.mxu0 %v501_v19  ;;  %334 = vmatpush.msra.mxu3 %v536_v24  ;;  %v199_v38 = vld [vmem:[%s925_s1 + $0x38] sm:$0xff]  ;;  %v532_v40 = vld [vmem:[%s925_s1 + $0x1b0] sm:$0xff]  ;;  %v514_v41 = vld [vmem:[%s925_s1 + $0x128] sm:$0xff] }
  0x1a   : > { %294 = vmatpush.msra.mxu2 %v518_v25  ;;  %253 = vmatpush.msra.mxu1 %v202_v26  ;;  %v198_v42 = vld [vmem:[%s925_s1 + $0x30] sm:$0xff]  ;;  %v495_v43 = vld [vmem:[%s925_s1 + $0x98] sm:$0xff]  ;;  %v531_v44 = vld [vmem:[%s925_s1 + $0x1a8] sm:$0xff] }
  0x1b   : > { %235 = vmatpush.msra.mxu0 %v500_v23  ;;  %335 = vmatpush.msra.mxu3 %v535_v28  ;;  %v513_v45 = vld [vmem:[%s925_s1 + $0x120] sm:$0xff]  ;;  %v197_v46 = vld [vmem:[%s925_s1 + $0x28] sm:$0xff]  ;;  %v494_v47 = vld [vmem:[%s925_s1 + $0x90] sm:$0xff] }
  0x1c   : > { %295 = vmatpush.msra.mxu2 %v517_v29  ;;  %254 = vmatpush.msra.mxu1 %v201_v30  ;;  %v530_v48 = vld [vmem:[%s925_s1 + $0x1a0] sm:$0xff]  ;;  %v512_v49 = vld [vmem:[%s925_s1 + $0x118] sm:$0xff]  ;;  %v493_v51 = vld [vmem:[%s925_s1 + $0x88] sm:$0xff] }
  0x1d   : > { %236 = vmatpush.msra.mxu0 %v499_v27  ;;  %336 = vmatpush.msra.mxu3 %v534_v32  ;;  %v196_v50 = vld [vmem:[%s925_s1 + $0x20] sm:$0xff]  ;;  %v529_v52 = vld [vmem:[%s925_s1 + $0x198] sm:$0xff]  ;;  %v511_v53 = vld [vmem:[%s925_s1 + $0x110] sm:$0xff] }
  0x1e   : > { %296 = vmatpush.msra.mxu2 %v516_v33  ;;  %255 = vmatpush.msra.mxu1 %v200_v34  ;;  %v195_v54 = vld [vmem:[%s925_s1 + $0x18] sm:$0xff]  ;;  %v492_v55 = vld [vmem:[%s925_s1 + $0x80] sm:$0xff]  ;;  %v528_v56 = vld [vmem:[%s925_s1 + $0x190] sm:$0xff] }
  0x1f   : > { %237 = vmatpush.msra.mxu0 %v498_v31  ;;  %337 = vmatpush.msra.mxu3 %v533_v36  ;;  %v558_v57 = vld [vmem:[%s925_s1 + $0x278] sm:$0xff]  ;;  %v510_v58 = vld [vmem:[%s925_s1 + $0x108] sm:$0xff]  ;;  %v194_v59 = vld [vmem:[%s925_s1 + $0x10] sm:$0xff] }
  0x20   : > { %297 = vmatpush.msra.mxu2 %v515_v37  ;;  %256 = vmatpush.msra.mxu1 %v199_v38  ;;  %v527_v60 = vld [vmem:[%s925_s1 + $0x188] sm:$0xff]  ;;  %v557_v61 = vld [vmem:[%s925_s1 + $0x270] sm:$0xff]  ;;  %v509_v62 = vld [vmem:[%s925_s1 + $0x100] sm:$0xff] }
  0x21   : > { %238 = vmatpush.msra.mxu0 %v497_v35  ;;  %338 = vmatpush.msra.mxu3 %v532_v40  ;;  %v508_v63 = vld [vmem:[%s838_s22 + $0x1] sm:$0xff]  ;;  %v525_v3 = vld [vmem:[%s838_s22 + $0x11] sm:$0xff]  ;;  %v586_v28 = vld [vmem:[%s926_s2] ss:$0 sm:$0xff] }
  0x22   : > { %298 = vmatpush.msra.mxu2 %v514_v41  ;;  %257 = vmatpush.msra.mxu1 %v198_v42  ;;  %v193_v0 = vld [vmem:[%s925_s1 + $0x8] sm:$0xff]  ;;  %v526_v2 = vld [vmem:[%s925_s1 + $0x180] sm:$0xff]  ;;  %v491_v7 = vld [vmem:[%s838_s22 + $0x10] sm:$0xff] }
  0x23   : > { %239 = vmatpush.msra.mxu0 %v496_v39  ;;  %339 = vmatpush.msra.mxu3 %v531_v44  ;;  %v556_v1 = vld [vmem:[%s925_s1 + $0x268] sm:$0xff]  ;;  %v192_v4 = vld [vmem:[%s925_s1] sm:$0xff]  ;;  %v554_v8 = vld [vmem:[%s925_s1 + $0x258] sm:$0xff] }
  0x24   : > { %299 = vmatpush.msra.mxu2 %v513_v45  ;;  %258 = vmatpush.msra.mxu1 %v197_v46  ;;  %v555_v5 = vld [vmem:[%s925_s1 + $0x260] sm:$0xff]  ;;  %v553_v9 = vld [vmem:[%s925_s1 + $0x250] sm:$0xff]  ;;  %v552_v10 = vld [vmem:[%s925_s1 + $0x248] sm:$0xff] }
  0x25   : > { %240 = vmatpush.msra.mxu0 %v495_v43  ;;  %340 = vmatpush.msra.mxu3 %v530_v48  ;;  %v191_v6 = vld [vmem:[%s838_s22] sm:$0xff]  ;;  %v550_v12 = vld [vmem:[%s925_s1 + $0x238] sm:$0xff]  ;;  %v549_v13 = vld [vmem:[%s925_s1 + $0x230] sm:$0xff] }
  0x26   : > { %300 = vmatpush.msra.mxu2 %v512_v49  ;;  %259 = vmatpush.msra.mxu1 %v196_v50  ;;  %v551_v11 = vld [vmem:[%s925_s1 + $0x240] sm:$0xff]  ;;  %v548_v14 = vld [vmem:[%s925_s1 + $0x228] sm:$0xff]  ;;  %v546_v16 = vld [vmem:[%s925_s1 + $0x218] sm:$0xff] }
  0x27   : > { %241 = vmatpush.msra.mxu0 %v494_v47  ;;  %341 = vmatpush.msra.mxu3 %v529_v52  ;;  %v547_v15 = vld [vmem:[%s925_s1 + $0x220] sm:$0xff]  ;;  %v545_v17 = vld [vmem:[%s925_s1 + $0x210] sm:$0xff]  ;;  %v544_v18 = vld [vmem:[%s925_s1 + $0x208] sm:$0xff] }
  0x28   : > { %301 = vmatpush.msra.mxu2 %v511_v53  ;;  %260 = vmatpush.msra.mxu1 %v195_v54  ;;  %v543_v19 = vld [vmem:[%s925_s1 + $0x200] sm:$0xff] }
  0x29   : > { %242 = vmatpush.msra.mxu0 %v493_v51  ;;  %342 = vmatpush.msra.mxu3 %v528_v56  ;;  %v542_v20 = vld [vmem:[%s838_s22 + $0x2] sm:$0xff]  ;;  %s188_s22 = scalar_lea.vmem %s927_s3, %s490_s23 }
  0x2a   : > { %302 = vmatpush.msra.mxu2 %v510_v58  ;;  %261 = vmatpush.msra.mxu1 %v194_v59 }
  0x2b   : > { %243 = vmatpush.msra.mxu0 %v492_v55  ;;  %343 = vmatpush.msra.mxu3 %v527_v60 }
  0x2c   : > { %303 = vmatpush.msra.mxu2 %v509_v62  ;;  %262 = vmatpush.msra.mxu1 %v193_v0 }
  0x2d   : > { %370 = vmatpush.msrb.mxu0 %v558_v57  ;;  %304 = vmatmul.f32.vlgmr.msra.gmra.mxu2 %v508_v63 }
  0x2e   : > { %344 = vmatpush.msra.mxu3 %v526_v2  ;;  %263 = vmatpush.msra.mxu1 %v192_v4 }
  0x2f   : > { %371 = vmatpush.msrb.mxu0 %v557_v61  ;;  %345 = vmatmul.f32.vlgmr.msra.gmra.mxu3 %v525_v3 }
  0x30   : > { %264 = vmatmul.f32.vlgmr.msra.gmra.mxu1 %v191_v6  ;;  %244 = vmatmul.f32.vlgmr.msra.gmra.mxu0 %v491_v7 }
  0x31   : > { %372 = vmatpush.msrb.mxu0 %v556_v1 }
  0x33   : > { %373 = vmatpush.msrb.mxu0 %v555_v5 }
  0x35   : > { %374 = vmatpush.msrb.mxu0 %v554_v8 }
  0x37   : > { %375 = vmatpush.msrb.mxu0 %v553_v9 }
  0x39   : > { %376 = vmatpush.msrb.mxu0 %v552_v10 }
  0x3b   : > { %377 = vmatpush.msrb.mxu0 %v551_v11 }
  0x3d   : > { %378 = vmatpush.msrb.mxu0 %v550_v12 }
  0x3f   : > { %379 = vmatpush.msrb.mxu0 %v549_v13 }
  0x41   : > { %380 = vmatpush.msrb.mxu0 %v548_v14 }
  0x43   : > { %381 = vmatpush.msrb.mxu0 %v547_v15 }
  0x45   : > { %382 = vmatpush.msrb.mxu0 %v546_v16 }
  0x47   : > { %383 = vmatpush.msrb.mxu0 %v545_v17 }
  0x49   : > { %384 = vmatpush.msrb.mxu0 %v544_v18 }
  0x4b   : > { %385 = vmatpush.msrb.mxu0 %v543_v19 }
  0x4c   : > { %386 = vmatmul.f32.vlgmr.msrb.gmra.mxu0 %v542_v20 }
  0xad   : > { %v245_v21 = vpop.f32.mrf.mxu0  ;;  %v265_v22 = vpop.f32.mrf.mxu1 }
  0xae   : > { %v266_v23 = vadd.f32 %v265_v22, %v245_v21 }
  0xb0   : > { %v305_v24 = vpop.f32.mrf.mxu2 }
  0xb1   : > { %v308_v25 = vadd.f32 %v305_v24, %v266_v23 }
  0xb2   : > { %v346_v26 = vpop.f32.mrf.mxu3 }
  0xb3   : > { %v349_v27 = vadd.f32 %v346_v26, %v308_v25 }
  0xc9   : > { %v387_v29 = vpop.f32.mrf.mxu0 }
  0xca   : > { %v390_v30 = vadd.f32 %v387_v29, %v349_v27 }
  0xcc   : > { %v395_v31 = vadd.f32 %v586_v28, %v390_v30 }
  0xce   : > { %v396_v32 = vmax.f32 %v395_v31, 0.0 }
  0xd0   : > { %397 = vst [vmem:[%s188_s22] sm:$0xff] %v396_v32 }
  0xd1 PF: > { %s13_s14 = sadd.s32 1, %s609_s14   ;;  %s928_s12 = smov %s605_s13 }
  0xd2   : > { %p10_p5 = scmp.ge.s32.totalorder %s13_s14, 4   ;;  %s929_s13 = smov %s931_s15 }
  0xd4   :  { %12 = sbr.rel (!%p10_p5) target bundleno = 2 (0x2), region = 71 }

// kernel: calcium_vqvae_forward.15
= control target key start
LH: loop header
LB: loop body
LE: loop exit
PB: predicated region body
PF: predicated region fallthrough
CT: control target
= control target key end

     0   :  { %s827_s12 = smov 0   ;;  %s829_s13 = smov 0   ;;  %s1225_s0 = inlined_call_operand.vmem [shape: f32[2,2,19,128], index: 0, kind: input, shape index: {}]   ;;  %s1226_s1 = inlined_call_operand.vmem [shape: f32[7,128,128], index: 1, kind: input, shape index: {}]   ;;  %s1227_s2 = inlined_call_operand.vmem [shape: f32[1,128], index: 2, kind: input, shape index: {}]   ;;  %s1228_s3 = inlined_call_operand.vmem [shape: f32[2,16,128], index: 3, kind: output, shape index: {}]  }
   0x1   :  { %s831_s14 = smov 0  }
   0x2 LB: > { %s25_s15 = sadd.s32 1, %s801_s13  ;;  %p626_p0 = scmp.ge.s32.totalorder %s805_s14, 1  ;;  %s805_s14 = sphi %s831_s14, %s13_s14   ;;  %s801_s13 = sphi %s829_s13, %s1230_s13   ;;  %s797_s12 = sphi %s827_s12, %s1229_s12  }
   0x3   : > { %p27_p1 = scmp.ge.s32.totalorder %s25_s15, 2  ;;  %p151_p2 = scmp.lt.s32.totalorder %s805_s14, 3 }
   0x5   : > { %s1232_s15 = smov (%p27_p1, %s25_s15), 0  ;;  %p152_p3 = pnand %p626_p0, %p151_p2 }
   0x6   : > { %p179_p4 = scmp.lt.s32.totalorder (!%p152_p3), %s797_s12, 1 }
   0x7   : > { %155 = sbr.rel (%p152_p3) target bundleno = 230 (0xe6), region = 32 }
   0xc   : > { %v647_v0 = vld [vmem:[%s1226_s1 + $0xf8] sm:$0xff]  ;;  %v646_v4 = vld [vmem:[%s1226_s1 + $0xf0] sm:$0xff]  ;;  %v645_v8 = vld [vmem:[%s1226_s1 + $0xe8] sm:$0xff]  ;;  %s1234_s12 = smov (!%p179_p4, %s797_s12), 1 }
   0xd   : > { %v213_v1 = vld [vmem:[%s1226_s1 + $0x78] sm:$0xff]  ;;  %235 = vmatpush.msra.mxu0 %v647_v0  ;;  %v212_v5 = vld [vmem:[%s1226_s1 + $0x70] sm:$0xff]  ;;  %v211_v9 = vld [vmem:[%s1226_s1 + $0x68] sm:$0xff]  ;;  %s757_s9 = smul.u32 48, %s1234_s12  ;;  %s740_s17 = sshll.u32 %s1234_s12, 4 }
   0xe   : > { %v665_v2 = vld [vmem:[%s1226_s1 + $0x178] sm:$0xff]  ;;  %258 = vmatpush.msra.mxu1 %v213_v1  ;;  %v664_v6 = vld [vmem:[%s1226_s1 + $0x170] sm:$0xff]  ;;  %v663_v10 = vld [vmem:[%s1226_s1 + $0x168] sm:$0xff]  ;;  %s192_s20 = scalar_lea.vmem %s1228_s3, %s740_s17 }
   0xf   : > { %v683_v3 = vld [vmem:[%s1226_s1 + $0x1f8] sm:$0xff]  ;;  %302 = vmatpush.msra.mxu2 %v665_v2  ;;  %v682_v7 = vld [vmem:[%s1226_s1 + $0x1f0] sm:$0xff]  ;;  %236 = vmatpush.msra.mxu0 %v646_v4  ;;  %v681_v11 = vld [vmem:[%s1226_s1 + $0x1e8] sm:$0xff]  ;;  %s1112_s28 = scalar_lea.vmem %s1225_s0, %s757_s9 }
  0x10   : > { %348 = vmatpush.msra.mxu3 %v683_v3  ;;  %259 = vmatpush.msra.mxu1 %v212_v5  ;;  %v644_v12 = vld [vmem:[%s1226_s1 + $0xe0] sm:$0xff]  ;;  %v643_v16 = vld [vmem:[%s1226_s1 + $0xd8] sm:$0xff]  ;;  %v642_v20 = vld [vmem:[%s1226_s1 + $0xd0] sm:$0xff] }
  0x11   : > { %303 = vmatpush.msra.mxu2 %v664_v6  ;;  %v210_v13 = vld [vmem:[%s1226_s1 + $0x60] sm:$0xff]  ;;  %237 = vmatpush.msra.mxu0 %v645_v8  ;;  %v209_v17 = vld [vmem:[%s1226_s1 + $0x58] sm:$0xff]  ;;  %v208_v21 = vld [vmem:[%s1226_s1 + $0x50] sm:$0xff] }
  0x12   : > { %349 = vmatpush.msra.mxu3 %v682_v7  ;;  %260 = vmatpush.msra.mxu1 %v211_v9  ;;  %v662_v14 = vld [vmem:[%s1226_s1 + $0x160] sm:$0xff]  ;;  %v661_v18 = vld [vmem:[%s1226_s1 + $0x158] sm:$0xff]  ;;  %v660_v22 = vld [vmem:[%s1226_s1 + $0x150] sm:$0xff] }
  0x13   : > { %v680_v15 = vld [vmem:[%s1226_s1 + $0x1e0] sm:$0xff]  ;;  %304 = vmatpush.msra.mxu2 %v663_v10  ;;  %238 = vmatpush.msra.mxu0 %v644_v12  ;;  %v679_v19 = vld [vmem:[%s1226_s1 + $0x1d8] sm:$0xff]  ;;  %v678_v23 = vld [vmem:[%s1226_s1 + $0x1d0] sm:$0xff] }
  0x14   : > { %350 = vmatpush.msra.mxu3 %v681_v11  ;;  %261 = vmatpush.msra.mxu1 %v210_v13  ;;  %v641_v24 = vld [vmem:[%s1226_s1 + $0xc8] sm:$0xff]  ;;  %v640_v28 = vld [vmem:[%s1226_s1 + $0xc0] sm:$0xff]  ;;  %v639_v32 = vld [vmem:[%s1226_s1 + $0xb8] sm:$0xff] }
  0x15   : > { %305 = vmatpush.msra.mxu2 %v662_v14  ;;  %239 = vmatpush.msra.mxu0 %v643_v16  ;;  %v207_v25 = vld [vmem:[%s1226_s1 + $0x48] sm:$0xff]  ;;  %v206_v29 = vld [vmem:[%s1226_s1 + $0x40] sm:$0xff]  ;;  %v205_v33 = vld [vmem:[%s1226_s1 + $0x38] sm:$0xff] }
  0x16   : > { %351 = vmatpush.msra.mxu3 %v680_v15  ;;  %262 = vmatpush.msra.mxu1 %v209_v17  ;;  %v659_v26 = vld [vmem:[%s1226_s1 + $0x148] sm:$0xff]  ;;  %v658_v30 = vld [vmem:[%s1226_s1 + $0x140] sm:$0xff]  ;;  %v657_v34 = vld [vmem:[%s1226_s1 + $0x138] sm:$0xff] }
  0x17   : > { %306 = vmatpush.msra.mxu2 %v661_v18  ;;  %240 = vmatpush.msra.mxu0 %v642_v20  ;;  %v677_v27 = vld [vmem:[%s1226_s1 + $0x1c8] sm:$0xff]  ;;  %v676_v31 = vld [vmem:[%s1226_s1 + $0x1c0] sm:$0xff]  ;;  %v675_v35 = vld [vmem:[%s1226_s1 + $0x1b8] sm:$0xff] }
  0x18   : > { %352 = vmatpush.msra.mxu3 %v679_v19  ;;  %263 = vmatpush.msra.mxu1 %v208_v21  ;;  %v638_v36 = vld [vmem:[%s1226_s1 + $0xb0] sm:$0xff]  ;;  %v637_v40 = vld [vmem:[%s1226_s1 + $0xa8] sm:$0xff]  ;;  %v636_v44 = vld [vmem:[%s1226_s1 + $0xa0] sm:$0xff] }
  0x19   : > { %307 = vmatpush.msra.mxu2 %v660_v22  ;;  %241 = vmatpush.msra.mxu0 %v641_v24  ;;  %v204_v37 = vld [vmem:[%s1226_s1 + $0x30] sm:$0xff]  ;;  %v203_v41 = vld [vmem:[%s1226_s1 + $0x28] sm:$0xff]  ;;  %v202_v45 = vld [vmem:[%s1226_s1 + $0x20] sm:$0xff] }
  0x1a   : > { %353 = vmatpush.msra.mxu3 %v678_v23  ;;  %264 = vmatpush.msra.mxu1 %v207_v25  ;;  %v656_v38 = vld [vmem:[%s1226_s1 + $0x130] sm:$0xff]  ;;  %v655_v42 = vld [vmem:[%s1226_s1 + $0x128] sm:$0xff]  ;;  %v654_v46 = vld [vmem:[%s1226_s1 + $0x120] sm:$0xff] }
  0x1b   : > { %308 = vmatpush.msra.mxu2 %v659_v26  ;;  %242 = vmatpush.msra.mxu0 %v640_v28  ;;  %v674_v39 = vld [vmem:[%s1226_s1 + $0x1b0] sm:$0xff]  ;;  %v673_v43 = vld [vmem:[%s1226_s1 + $0x1a8] sm:$0xff]  ;;  %v672_v47 = vld [vmem:[%s1226_s1 + $0x1a0] sm:$0xff] }
  0x1c   : > { %354 = vmatpush.msra.mxu3 %v677_v27  ;;  %265 = vmatpush.msra.mxu1 %v206_v29  ;;  %v635_v48 = vld [vmem:[%s1226_s1 + $0x98] sm:$0xff]  ;;  %v634_v52 = vld [vmem:[%s1226_s1 + $0x90] sm:$0xff]  ;;  %v633_v56 = vld [vmem:[%s1226_s1 + $0x88] sm:$0xff] }
  0x1d   : > { %309 = vmatpush.msra.mxu2 %v658_v30  ;;  %243 = vmatpush.msra.mxu0 %v639_v32  ;;  %v201_v49 = vld [vmem:[%s1226_s1 + $0x18] sm:$0xff]  ;;  %v200_v53 = vld [vmem:[%s1226_s1 + $0x10] sm:$0xff]  ;;  %v199_v57 = vld [vmem:[%s1226_s1 + $0x8] sm:$0xff] }
  0x1e   : > { %355 = vmatpush.msra.mxu3 %v676_v31  ;;  %266 = vmatpush.msra.mxu1 %v205_v33  ;;  %v653_v50 = vld [vmem:[%s1226_s1 + $0x118] sm:$0xff]  ;;  %v652_v54 = vld [vmem:[%s1226_s1 + $0x110] sm:$0xff]  ;;  %v651_v58 = vld [vmem:[%s1226_s1 + $0x108] sm:$0xff] }
  0x1f   : > { %310 = vmatpush.msra.mxu2 %v657_v34  ;;  %244 = vmatpush.msra.mxu0 %v638_v36  ;;  %v671_v51 = vld [vmem:[%s1226_s1 + $0x198] sm:$0xff]  ;;  %v670_v55 = vld [vmem:[%s1226_s1 + $0x190] sm:$0xff]  ;;  %v669_v59 = vld [vmem:[%s1226_s1 + $0x188] sm:$0xff] }
  0x20   : > { %356 = vmatpush.msra.mxu3 %v675_v35  ;;  %267 = vmatpush.msra.mxu1 %v204_v37  ;;  %v632_v60 = vld [vmem:[%s1226_s1 + $0x80] sm:$0xff]  ;;  %v701_v0 = vld [vmem:[%s1226_s1 + $0x278] sm:$0xff]  ;;  %v700_v3 = vld [vmem:[%s1226_s1 + $0x270] sm:$0xff] }
  0x21   : > { %311 = vmatpush.msra.mxu2 %v656_v38  ;;  %245 = vmatpush.msra.mxu0 %v637_v40  ;;  %v198_v61 = vld [vmem:[%s1226_s1] sm:$0xff]  ;;  %v719_v1 = vld [vmem:[%s1226_s1 + $0x2f8] sm:$0xff]  ;;  %v718_v4 = vld [vmem:[%s1226_s1 + $0x2f0] sm:$0xff] }
  0x22   : > { %357 = vmatpush.msra.mxu3 %v674_v39  ;;  %268 = vmatpush.msra.mxu1 %v203_v41  ;;  %v650_v62 = vld [vmem:[%s1226_s1 + $0x100] sm:$0xff]  ;;  %v737_v2 = vld [vmem:[%s1226_s1 + $0x378] sm:$0xff]  ;;  %v736_v5 = vld [vmem:[%s1226_s1 + $0x370] sm:$0xff] }
  0x23   : > { %312 = vmatpush.msra.mxu2 %v655_v42  ;;  %246 = vmatpush.msra.mxu0 %v636_v44  ;;  %v668_v63 = vld [vmem:[%s1226_s1 + $0x180] sm:$0xff]  ;;  %v699_v6 = vld [vmem:[%s1226_s1 + $0x268] sm:$0xff]  ;;  %v697_v12 = vld [vmem:[%s1226_s1 + $0x258] sm:$0xff] }
  0x24   : > { %358 = vmatpush.msra.mxu3 %v673_v43  ;;  %269 = vmatpush.msra.mxu1 %v202_v45  ;;  %v717_v7 = vld [vmem:[%s1226_s1 + $0x2e8] sm:$0xff]  ;;  %v698_v9 = vld [vmem:[%s1226_s1 + $0x260] sm:$0xff]  ;;  %v715_v13 = vld [vmem:[%s1226_s1 + $0x2d8] sm:$0xff] }
  0x25   : > { %313 = vmatpush.msra.mxu2 %v654_v46  ;;  %247 = vmatpush.msra.mxu0 %v635_v48  ;;  %v735_v8 = vld [vmem:[%s1226_s1 + $0x368] sm:$0xff]  ;;  %v716_v10 = vld [vmem:[%s1226_s1 + $0x2e0] sm:$0xff]  ;;  %v733_v14 = vld [vmem:[%s1226_s1 + $0x358] sm:$0xff] }
  0x26   : > { %359 = vmatpush.msra.mxu3 %v672_v47  ;;  %270 = vmatpush.msra.mxu1 %v201_v49  ;;  %v734_v11 = vld [vmem:[%s1226_s1 + $0x360] sm:$0xff]  ;;  %v696_v15 = vld [vmem:[%s1226_s1 + $0x250] sm:$0xff]  ;;  %v695_v18 = vld [vmem:[%s1226_s1 + $0x248] sm:$0xff] }
  0x27   : > { %314 = vmatpush.msra.mxu2 %v653_v50  ;;  %248 = vmatpush.msra.mxu0 %v634_v52  ;;  %v714_v16 = vld [vmem:[%s1226_s1 + $0x2d0] sm:$0xff]  ;;  %v713_v19 = vld [vmem:[%s1226_s1 + $0x2c8] sm:$0xff]  ;;  %v694_v21 = vld [vmem:[%s1226_s1 + $0x240] sm:$0xff] }
  0x28   : > { %360 = vmatpush.msra.mxu3 %v671_v51  ;;  %271 = vmatpush.msra.mxu1 %v200_v53  ;;  %v732_v17 = vld [vmem:[%s1226_s1 + $0x350] sm:$0xff]  ;;  %v731_v20 = vld [vmem:[%s1226_s1 + $0x348] sm:$0xff]  ;;  %v712_v22 = vld [vmem:[%s1226_s1 + $0x2c0] sm:$0xff] }
  0x29   : > { %315 = vmatpush.msra.mxu2 %v652_v54  ;;  %249 = vmatpush.msra.mxu0 %v633_v56  ;;  %v730_v23 = vld [vmem:[%s1226_s1 + $0x340] sm:$0xff]  ;;  %v630_v24 = vld [vmem:[%s1112_s28 + $0x18] sm:$0xff]  ;;  %v692_v31 = vld [vmem:[%s1226_s1 + $0x230] sm:$0xff] }
  0x2a   : > { %361 = vmatpush.msra.mxu3 %v670_v55  ;;  %272 = vmatpush.msra.mxu1 %v199_v57  ;;  %v196_v25 = vld [vmem:[%s1112_s28] sm:$0xff]  ;;  %v693_v28 = vld [vmem:[%s1226_s1 + $0x238] sm:$0xff]  ;;  %v710_v32 = vld [vmem:[%s1226_s1 + $0x2b0] sm:$0xff] }
  0x2b   : > { %316 = vmatpush.msra.mxu2 %v651_v58  ;;  %250 = vmatpush.msra.mxu0 %v632_v60  ;;  %v648_v26 = vld [vmem:[%s1112_s28 + $0x1] sm:$0xff]  ;;  %v666_v27 = vld [vmem:[%s1112_s28 + $0x19] sm:$0xff]  ;;  %v728_v33 = vld [vmem:[%s1226_s1 + $0x330] sm:$0xff] }
  0x2c   : > { %362 = vmatpush.msra.mxu3 %v669_v59  ;;  %273 = vmatpush.msra.mxu1 %v198_v61  ;;  %v711_v29 = vld [vmem:[%s1226_s1 + $0x2b8] sm:$0xff]  ;;  %v691_v34 = vld [vmem:[%s1226_s1 + $0x228] sm:$0xff]  ;;  %v690_v37 = vld [vmem:[%s1226_s1 + $0x220] sm:$0xff] }
  0x2d   : > { %317 = vmatpush.msra.mxu2 %v650_v62  ;;  %394 = vmatpush.msrb.mxu0 %v701_v0  ;;  %v729_v30 = vld [vmem:[%s1226_s1 + $0x338] sm:$0xff]  ;;  %v709_v35 = vld [vmem:[%s1226_s1 + $0x2a8] sm:$0xff]  ;;  %v708_v38 = vld [vmem:[%s1226_s1 + $0x2a0] sm:$0xff] }
  0x2e   : > { %363 = vmatpush.msra.mxu3 %v668_v63  ;;  %440 = vmatpush.msrb.mxu1 %v719_v1  ;;  %v727_v36 = vld [vmem:[%s1226_s1 + $0x328] sm:$0xff]  ;;  %v726_v39 = vld [vmem:[%s1226_s1 + $0x320] sm:$0xff]  ;;  %v689_v44 = vld [vmem:[%s1226_s1 + $0x218] sm:$0xff] }
  0x2f   : > { %486 = vmatpush.msrb.mxu2 %v737_v2  ;;  %395 = vmatpush.msrb.mxu0 %v700_v3  ;;  %v631_v40 = vld [vmem:[%s1112_s28 + $0x20] sm:$0xff]  ;;  %v197_v41 = vld [vmem:[%s1112_s28 + $0x8] sm:$0xff]  ;;  %v707_v45 = vld [vmem:[%s1226_s1 + $0x298] sm:$0xff] }
  0x30   : > { %741 = vmatpush.msrb.mxu3 %v701_v0  ;;  %441 = vmatpush.msrb.mxu1 %v718_v4  ;;  %v649_v42 = vld [vmem:[%s1112_s28 + $0x9] sm:$0xff]  ;;  %v667_v43 = vld [vmem:[%s1112_s28 + $0x21] sm:$0xff]  ;;  %v725_v46 = vld [vmem:[%s1226_s1 + $0x318] sm:$0xff] }
  0x31   : > { %487 = vmatpush.msrb.mxu2 %v736_v5  ;;  %396 = vmatpush.msrb.mxu0 %v699_v6  ;;  %v688_v47 = vld [vmem:[%s1226_s1 + $0x210] sm:$0xff]  ;;  %v687_v50 = vld [vmem:[%s1226_s1 + $0x208] sm:$0xff]  ;;  %v686_v53 = vld [vmem:[%s1226_s1 + $0x200] sm:$0xff] }
  0x32   : > { %742 = vmatpush.msrb.mxu3 %v700_v3  ;;  %442 = vmatpush.msrb.mxu1 %v717_v7  ;;  %v706_v48 = vld [vmem:[%s1226_s1 + $0x290] sm:$0xff]  ;;  %v705_v51 = vld [vmem:[%s1226_s1 + $0x288] sm:$0xff]  ;;  %v704_v54 = vld [vmem:[%s1226_s1 + $0x280] sm:$0xff] }
  0x33   : > { %488 = vmatpush.msrb.mxu2 %v735_v8  ;;  %397 = vmatpush.msrb.mxu0 %v698_v9  ;;  %v724_v49 = vld [vmem:[%s1226_s1 + $0x310] sm:$0xff]  ;;  %v723_v52 = vld [vmem:[%s1226_s1 + $0x308] sm:$0xff]  ;;  %v722_v55 = vld [vmem:[%s1226_s1 + $0x300] sm:$0xff] }
  0x34   : > { %743 = vmatpush.msrb.mxu3 %v699_v6  ;;  %443 = vmatpush.msrb.mxu1 %v716_v10  ;;  %v684_v56 = vld [vmem:[%s1112_s28 + $0x2] sm:$0xff]  ;;  %v685_v57 = vld [vmem:[%s1112_s28 + $0xa] sm:$0xff]  ;;  %v702_v58 = vld [vmem:[%s1112_s28 + $0x1a] sm:$0xff] }
  0x35   : > { %489 = vmatpush.msrb.mxu2 %v734_v11  ;;  %398 = vmatpush.msrb.mxu0 %v697_v12  ;;  %v720_v59 = vld [vmem:[%s1112_s28 + $0x3] sm:$0xff]  ;;  %v721_v61 = vld [vmem:[%s1112_s28 + $0xb] sm:$0xff] }
  0x36   : > { %744 = vmatpush.msrb.mxu3 %v698_v9  ;;  %444 = vmatpush.msrb.mxu1 %v715_v13  ;;  %v703_v60 = vld [vmem:[%s1112_s28 + $0x22] sm:$0xff] }
  0x37   : > { %490 = vmatpush.msrb.mxu2 %v733_v14  ;;  %399 = vmatpush.msrb.mxu0 %v696_v15 }
  0x38   : > { %745 = vmatpush.msrb.mxu3 %v697_v12  ;;  %445 = vmatpush.msrb.mxu1 %v714_v16 }
  0x39   : > { %491 = vmatpush.msrb.mxu2 %v732_v17  ;;  %400 = vmatpush.msrb.mxu0 %v695_v18 }
  0x3a   : > { %746 = vmatpush.msrb.mxu3 %v696_v15  ;;  %446 = vmatpush.msrb.mxu1 %v713_v19  ;;  %v782_v15 = vld [vmem:[%s1227_s2] ss:$0 sm:$0xff] }
  0x3b   : > { %492 = vmatpush.msrb.mxu2 %v731_v20  ;;  %401 = vmatpush.msrb.mxu0 %v694_v21 }
  0x3c   : > { %747 = vmatpush.msrb.mxu3 %v695_v18  ;;  %447 = vmatpush.msrb.mxu1 %v712_v22 }
  0x3d   : > { %493 = vmatpush.msrb.mxu2 %v730_v23  ;;  %251 = vmatmul.f32.vlgmr.msra.gmra.mxu0 %v630_v24 }
  0x3e   : > { %748 = vmatpush.msrb.mxu3 %v694_v21  ;;  %274 = vmatmul.f32.vlgmr.msra.gmra.mxu1 %v196_v25 }
  0x3f   : > { %318 = vmatmul.f32.vlgmr.msra.gmra.mxu2 %v648_v26  ;;  %364 = vmatmul.f32.vlgmr.msra.gmra.mxu3 %v666_v27 }
  0x40   : > { %402 = vmatpush.msrb.mxu0 %v693_v28  ;;  %749 = vmatpush.msrb.mxu3 %v693_v28 }
  0x41   : > { %448 = vmatpush.msrb.mxu1 %v711_v29  ;;  %494 = vmatpush.msrb.mxu2 %v729_v30 }
  0x42   : > { %403 = vmatpush.msrb.mxu0 %v692_v31  ;;  %750 = vmatpush.msrb.mxu3 %v692_v31 }
  0x43   : > { %449 = vmatpush.msrb.mxu1 %v710_v32  ;;  %495 = vmatpush.msrb.mxu2 %v728_v33 }
  0x44   : > { %404 = vmatpush.msrb.mxu0 %v691_v34  ;;  %751 = vmatpush.msrb.mxu3 %v691_v34 }
  0x45   : > { %450 = vmatpush.msrb.mxu1 %v709_v35  ;;  %496 = vmatpush.msrb.mxu2 %v727_v36 }
  0x46   : > { %405 = vmatpush.msrb.mxu0 %v690_v37  ;;  %752 = vmatpush.msrb.mxu3 %v690_v37 }
  0x47   : > { %451 = vmatpush.msrb.mxu1 %v708_v38  ;;  %497 = vmatpush.msrb.mxu2 %v726_v39 }
  0x48   : > { %254 = vmatmul.f32.gmra.mxu0 %v631_v40  ;;  %277 = vmatmul.f32.gmra.mxu1 %v197_v41 }
  0x49   : > { %321 = vmatmul.f32.gmra.mxu2 %v649_v42  ;;  %367 = vmatmul.f32.gmra.mxu3 %v667_v43 }
  0x4a   : > { %406 = vmatpush.msrb.mxu0 %v689_v44  ;;  %753 = vmatpush.msrb.mxu3 %v689_v44 }
  0x4b   : > { %452 = vmatpush.msrb.mxu1 %v707_v45  ;;  %498 = vmatpush.msrb.mxu2 %v725_v46 }
  0x4c   : > { %407 = vmatpush.msrb.mxu0 %v688_v47  ;;  %754 = vmatpush.msrb.mxu3 %v688_v47 }
  0x4d   : > { %453 = vmatpush.msrb.mxu1 %v706_v48  ;;  %499 = vmatpush.msrb.mxu2 %v724_v49 }
  0x4e   : > { %408 = vmatpush.msrb.mxu0 %v687_v50  ;;  %755 = vmatpush.msrb.mxu3 %v687_v50 }
  0x4f   : > { %454 = vmatpush.msrb.mxu1 %v705_v51  ;;  %500 = vmatpush.msrb.mxu2 %v723_v52 }
  0x50   : > { %409 = vmatpush.msrb.mxu0 %v686_v53  ;;  %756 = vmatpush.msrb.mxu3 %v686_v53 }
  0x51   : > { %455 = vmatpush.msrb.mxu1 %v704_v54  ;;  %501 = vmatpush.msrb.mxu2 %v722_v55 }
  0x52   : > { %410 = vmatmul.f32.vlgmr.msrb.gmra.mxu0 %v684_v56  ;;  %413 = vmatmul.f32.vlgmr.msrb.gmra.mxu3 %v685_v57 }
  0x53   : > { %456 = vmatmul.f32.vlgmr.msrb.gmra.mxu1 %v702_v58  ;;  %502 = vmatmul.f32.vlgmr.msrb.gmra.mxu2 %v720_v59 }
  0x5b   : > { %459 = vmatmul.f32.gmra.mxu1 %v703_v60  ;;  %505 = vmatmul.f32.gmra.mxu2 %v721_v61 }
  0xba   : > { %v252_v62 = vpop.f32.mrf.mxu0 }
  0xbb   : > { %v275_v63 = vpop.f32.mrf.mxu1 }
  0xbc   : > { %v276_v4 = vadd.f32 %v275_v63, %v252_v62 }
  0xc2   : > { %v319_v0 = vpop.f32.mrf.mxu2  ;;  %v365_v1 = vpop.f32.mrf.mxu3 }
  0xc3   : > { %v325_v5 = vadd.f32 %v319_v0, %v276_v4 }
  0xc5   : > { %v255_v2 = vpop.f32.mrf.mxu0  ;;  %v278_v3 = vpop.f32.mrf.mxu1  ;;  %v371_v8 = vadd.f32 %v365_v1, %v325_v5 }
  0xc6   : > { %v279_v9 = vadd.f32 %v278_v3, %v255_v2 }
  0xcc   : > { %v322_v6 = vpop.f32.mrf.mxu2  ;;  %v368_v7 = vpop.f32.mrf.mxu3 }
  0xcd   : > { %v326_v13 = vadd.f32 %v322_v6, %v279_v9 }
  0xcf   : > { %v411_v10 = vpop.f32.mrf.mxu0  ;;  %v372_v18 = vadd.f32 %v368_v7, %v326_v13 }
  0xd0   : > { %v457_v11 = vpop.f32.mrf.mxu1  ;;  %v417_v12 = vadd.f32 %v411_v10, %v371_v8 }
  0xd2   : > { %v463_v14 = vadd.f32 %v457_v11, %v417_v12 }
  0xd5   : > { %v414_v16 = vpop.f32.mrf.mxu3 }
  0xd6   : > { %v503_v17 = vpop.f32.mrf.mxu2  ;;  %v418_v20 = vadd.f32 %v414_v16, %v372_v18 }
  0xd7   : > { %v509_v19 = vadd.f32 %v503_v17, %v463_v14 }
  0xd8   : > { %v460_v22 = vpop.f32.mrf.mxu1 }
  0xd9   : > { %v515_v21 = vadd.f32 %v782_v15, %v509_v19  ;;  %v464_v24 = vadd.f32 %v460_v22, %v418_v20 }
  0xdb   : > { %v517_v23 = vmax.f32 %v515_v21, 0.0 }
  0xdd   : > { %519 = vst [vmem:[%s192_s20] sm:$0xff] %v517_v23 }
  0xde   : > { %v506_v25 = vpop.f32.mrf.mxu2 }
  0xdf   : > { %v510_v26 = vadd.f32 %v506_v25, %v464_v24 }
  0xe1   : > { %v516_v27 = vadd.f32 %v782_v15, %v510_v26 }
  0xe3   : > { %v518_v28 = vmax.f32 %v516_v27, 0.0 }
  0xe5   : > { %520 = vst [vmem:[%s192_s20 + $0x8] sm:$0xff] %v518_v28 }
  0xe6 PF: > { %s13_s14 = sadd.s32 1, %s805_s14   ;;  %s1229_s12 = smov %s801_s13 }
  0xe7   : > { %p10_p5 = scmp.ge.s32.totalorder %s13_s14, 4   ;;  %s1230_s13 = smov %s1232_s15 }
  0xe9   :  { %12 = sbr.rel (!%p10_p5) target bundleno = 2 (0x2), region = 75 }

// kernel: calcium_vqvae_forward.18
= control target key start
LH: loop header
LB: loop body
LE: loop exit
PB: predicated region body
PF: predicated region fallthrough
CT: control target
= control target key end

     0   :  { %s618_s18 = smov 0   ;;  %s620_s19 = smov 0   ;;  %s857_s0 = inlined_call_operand.vmem [shape: f32[2,10,128], index: 0, kind: input, shape index: {}]   ;;  %s858_s1 = inlined_call_operand.vmem [shape: f32[3,128,128], index: 1, kind: input, shape index: {}]   ;;  %s859_s2 = inlined_call_operand.vmem [shape: f32[1,128], index: 2, kind: input, shape index: {}]   ;;  %s860_s3 = inlined_call_operand.vmem [shape: f32[128,128], index: 3, kind: input, shape index: {}]   ;;  %s861_s4 = inlined_call_operand.vmem [shape: f32[1,128], index: 4, kind: input, shape index: {}]   ;;  %s862_s5 = inlined_call_operand.vmem [shape: f32[2,8,128], index: 5, kind: output, shape index: {}]  }
   0x1   :  { %s622_s20 = smov 0  }
   0x2 LB: > { %s27_s21 = sadd.s32 1, %s582_s19  ;;  %p497_p0 = scmp.ge.s32.totalorder %s586_s20, 1  ;;  %s586_s20 = sphi %s622_s20, %s15_s20   ;;  %s582_s19 = sphi %s620_s19, %s864_s19   ;;  %s578_s18 = sphi %s618_s18, %s863_s18  }
   0x3   : > { %p29_p1 = scmp.ge.s32.totalorder %s27_s21, 2  ;;  %p201_p2 = scmp.lt.s32.totalorder %s586_s20, 3 }
   0x5   : > { %s866_s21 = smov (%p29_p1, %s27_s21), 0  ;;  %p202_p3 = pnand %p497_p0, %p201_p2 }
   0x6   : > { %p231_p4 = scmp.lt.s32.totalorder (!%p202_p3), %s578_s18, 1 }
   0x7   : > { %205 = sbr.rel (%p202_p3) target bundleno = 319 (0x13f), region = 40 }
   0xc   : > { %v534_v0 = vld [vmem:[%s858_s1 + $0x178] sm:$0xff]  ;;  %v533_v1 = vld [vmem:[%s858_s1 + $0x170] sm:$0xff]  ;;  %v532_v5 = vld [vmem:[%s858_s1 + $0x168] sm:$0xff]  ;;  %s868_s18 = smov (!%p231_p4, %s578_s18), 1 }
   0xd   : > { %v517_v2 = vld [vmem:[%s858_s1 + $0xf8] sm:$0xff]  ;;  %345 = vmatpush.msra.mxu2 %v534_v0  ;;  %v516_v4 = vld [vmem:[%s858_s1 + $0xf0] sm:$0xff]  ;;  %v515_v7 = vld [vmem:[%s858_s1 + $0xe8] sm:$0xff]  ;;  %s537_s29 = sshll.u32 %s868_s18, 4  ;;  %s500_s8 = sshll.u32 %s868_s18, 3 }
   0xe   : > { %284 = vmatpush.msra.mxu0 %v517_v2  ;;  %v262_v3 = vld [vmem:[%s858_s1 + $0x78] sm:$0xff]  ;;  %v261_v6 = vld [vmem:[%s858_s1 + $0x70] sm:$0xff]  ;;  %v260_v8 = vld [vmem:[%s858_s1 + $0x68] sm:$0xff]  ;;  %s235_s25 = scalar_lea.vmem %s857_s0, %s537_s29  ;;  %s242_s10 = scalar_lea.vmem %s862_s5, %s500_s8 }
   0xf   : > { %304 = vmatpush.msra.mxu1 %v262_v3  ;;  %346 = vmatpush.msra.mxu2 %v533_v1  ;;  %v531_v9 = vld [vmem:[%s858_s1 + $0x160] sm:$0xff]  ;;  %v530_v12 = vld [vmem:[%s858_s1 + $0x158] sm:$0xff]  ;;  %v529_v15 = vld [vmem:[%s858_s1 + $0x150] sm:$0xff] }
  0x10   : > { %285 = vmatpush.msra.mxu0 %v516_v4  ;;  %v514_v10 = vld [vmem:[%s858_s1 + $0xe0] sm:$0xff]  ;;  %v513_v13 = vld [vmem:[%s858_s1 + $0xd8] sm:$0xff]  ;;  %v512_v16 = vld [vmem:[%s858_s1 + $0xd0] sm:$0xff] }
  0x11   : > { %305 = vmatpush.msra.mxu1 %v261_v6  ;;  %347 = vmatpush.msra.mxu2 %v532_v5  ;;  %v259_v11 = vld [vmem:[%s858_s1 + $0x60] sm:$0xff]  ;;  %v258_v14 = vld [vmem:[%s858_s1 + $0x58] sm:$0xff]  ;;  %v257_v17 = vld [vmem:[%s858_s1 + $0x50] sm:$0xff] }
  0x12   : > { %286 = vmatpush.msra.mxu0 %v515_v7  ;;  %v528_v18 = vld [vmem:[%s858_s1 + $0x148] sm:$0xff]  ;;  %v527_v21 = vld [vmem:[%s858_s1 + $0x140] sm:$0xff]  ;;  %v526_v24 = vld [vmem:[%s858_s1 + $0x138] sm:$0xff] }
  0x13   : > { %306 = vmatpush.msra.mxu1 %v260_v8  ;;  %348 = vmatpush.msra.mxu2 %v531_v9  ;;  %v511_v19 = vld [vmem:[%s858_s1 + $0xc8] sm:$0xff]  ;;  %v510_v22 = vld [vmem:[%s858_s1 + $0xc0] sm:$0xff]  ;;  %v509_v25 = vld [vmem:[%s858_s1 + $0xb8] sm:$0xff] }
  0x14   : > { %287 = vmatpush.msra.mxu0 %v514_v10  ;;  %v256_v20 = vld [vmem:[%s858_s1 + $0x48] sm:$0xff]  ;;  %v255_v23 = vld [vmem:[%s858_s1 + $0x40] sm:$0xff]  ;;  %v254_v26 = vld [vmem:[%s858_s1 + $0x38] sm:$0xff] }
  0x15   : > { %307 = vmatpush.msra.mxu1 %v259_v11  ;;  %349 = vmatpush.msra.mxu2 %v530_v12  ;;  %v525_v27 = vld [vmem:[%s858_s1 + $0x130] sm:$0xff]  ;;  %v387_v30 = vld [vmem:[%s860_s3 + $0x78] sm:$0xff]  ;;  %v524_v32 = vld [vmem:[%s858_s1 + $0x128] sm:$0xff] }
  0x16   : > { %288 = vmatpush.msra.mxu0 %v513_v13  ;;  %v508_v28 = vld [vmem:[%s858_s1 + $0xb0] sm:$0xff]  ;;  %v507_v33 = vld [vmem:[%s858_s1 + $0xa8] sm:$0xff]  ;;  %392 = vmatpush.msra.mxu3 %v387_v30  ;;  %v523_v36 = vld [vmem:[%s858_s1 + $0x120] sm:$0xff] }
  0x17   : > { %308 = vmatpush.msra.mxu1 %v258_v14  ;;  %350 = vmatpush.msra.mxu2 %v529_v15  ;;  %v253_v29 = vld [vmem:[%s858_s1 + $0x30] sm:$0xff]  ;;  %v252_v34 = vld [vmem:[%s858_s1 + $0x28] sm:$0xff]  ;;  %v506_v37 = vld [vmem:[%s858_s1 + $0xa0] sm:$0xff] }
  0x18   : > { %289 = vmatpush.msra.mxu0 %v512_v16  ;;  %v386_v31 = vld [vmem:[%s860_s3 + $0x70] sm:$0xff]  ;;  %v385_v35 = vld [vmem:[%s860_s3 + $0x68] sm:$0xff]  ;;  %v251_v38 = vld [vmem:[%s858_s1 + $0x20] sm:$0xff] }
  0x19   : > { %309 = vmatpush.msra.mxu1 %v257_v17  ;;  %351 = vmatpush.msra.mxu2 %v528_v18  ;;  %v384_v39 = vld [vmem:[%s860_s3 + $0x60] sm:$0xff]  ;;  %v522_v40 = vld [vmem:[%s858_s1 + $0x118] sm:$0xff]  ;;  %v521_v44 = vld [vmem:[%s858_s1 + $0x110] sm:$0xff] }
  0x1a   : > { %290 = vmatpush.msra.mxu0 %v511_v19  ;;  %393 = vmatpush.msra.mxu3 %v386_v31  ;;  %v505_v41 = vld [vmem:[%s858_s1 + $0x98] sm:$0xff]  ;;  %v520_v45 = vld [vmem:[%s858_s1 + $0x108] sm:$0xff]  ;;  %v504_v46 = vld [vmem:[%s858_s1 + $0x90] sm:$0xff] }
  0x1b   : > { %310 = vmatpush.msra.mxu1 %v256_v20  ;;  %352 = vmatpush.msra.mxu2 %v527_v21  ;;  %v250_v42 = vld [vmem:[%s858_s1 + $0x18] sm:$0xff]  ;;  %v249_v47 = vld [vmem:[%s858_s1 + $0x10] sm:$0xff]  ;;  %v518_v48 = vld [vmem:[%s235_s25 + $0x2] sm:$0xff] }
  0x1c   : > { %291 = vmatpush.msra.mxu0 %v510_v22  ;;  %394 = vmatpush.msra.mxu3 %v385_v35  ;;  %v383_v43 = vld [vmem:[%s860_s3 + $0x58] sm:$0xff]  ;;  %v382_v49 = vld [vmem:[%s860_s3 + $0x50] sm:$0xff]  ;;  %v503_v50 = vld [vmem:[%s858_s1 + $0x88] sm:$0xff]  ;;  %v327_v56 = vmax.f32 %v518_v48, 0.0 }
  0x1d   : > { %311 = vmatpush.msra.mxu1 %v255_v23  ;;  %353 = vmatpush.msra.mxu2 %v526_v24  ;;  %v501_v51 = vld [vmem:[%s235_s25 + $0x1] sm:$0xff]  ;;  %v379_v62 = vld [vmem:[%s860_s3 + $0x38] sm:$0xff]  ;;  %v378_v63 = vld [vmem:[%s860_s3 + $0x30] sm:$0xff] }
  0x1e   : > { %292 = vmatpush.msra.mxu0 %v509_v25  ;;  %395 = vmatpush.msra.mxu3 %v384_v39  ;;  %v245_v52 = vld [vmem:[%s235_s25] sm:$0xff]  ;;  %v248_v53 = vld [vmem:[%s858_s1 + $0x8] sm:$0xff]  ;;  %v266_v59 = vmax.f32 %v501_v51, 0.0  ;;  %v375_v2 = vld [vmem:[%s860_s3 + $0x18] sm:$0xff] }
  0x1f   : > { %312 = vmatpush.msra.mxu1 %v254_v26  ;;  %354 = vmatpush.msra.mxu2 %v525_v27  ;;  %v381_v54 = vld [vmem:[%s860_s3 + $0x48] sm:$0xff]  ;;  %v519_v55 = vld [vmem:[%s858_s1 + $0x100] sm:$0xff]  ;;  %v246_v60 = vmax.f32 %v245_v52, 0.0  ;;  %v374_v3 = vld [vmem:[%s860_s3 + $0x10] sm:$0xff] }
  0x20   : > { %293 = vmatpush.msra.mxu0 %v508_v28  ;;  %396 = vmatpush.msra.mxu3 %v383_v43  ;;  %v502_v57 = vld [vmem:[%s858_s1 + $0x80] sm:$0xff]  ;;  %v377_v0 = vld [vmem:[%s860_s3 + $0x28] sm:$0xff] }
  0x21   : > { %313 = vmatpush.msra.mxu1 %v253_v29  ;;  %355 = vmatpush.msra.mxu2 %v524_v32  ;;  %v247_v58 = vld [vmem:[%s858_s1] sm:$0xff]  ;;  %v373_v4 = vld [vmem:[%s860_s3 + $0x8] sm:$0xff] }
  0x22   : > { %294 = vmatpush.msra.mxu0 %v507_v33  ;;  %397 = vmatpush.msra.mxu3 %v382_v49  ;;  %v380_v61 = vld [vmem:[%s860_s3 + $0x40] sm:$0xff] }
  0x23   : > { %314 = vmatpush.msra.mxu1 %v252_v34  ;;  %356 = vmatpush.msra.mxu2 %v523_v36  ;;  %v376_v1 = vld [vmem:[%s860_s3 + $0x20] sm:$0xff] }
  0x24   : > { %295 = vmatpush.msra.mxu0 %v506_v37  ;;  %398 = vmatpush.msra.mxu3 %v381_v54  ;;  %v372_v5 = vld [vmem:[%s860_s3] sm:$0xff] }
  0x25   : > { %315 = vmatpush.msra.mxu1 %v251_v38  ;;  %357 = vmatpush.msra.mxu2 %v522_v40  ;;  %v562_v9 = vld [vmem:[%s859_s2] ss:$0 sm:$0xff] }
  0x26   : > { %296 = vmatpush.msra.mxu0 %v505_v41  ;;  %399 = vmatpush.msra.mxu3 %v380_v61  ;;  %v563_v14 = vld [vmem:[%s861_s4] ss:$0 sm:$0xff] }
  0x27   : > { %316 = vmatpush.msra.mxu1 %v250_v42  ;;  %358 = vmatpush.msra.mxu2 %v521_v44 }
  0x28   : > { %297 = vmatpush.msra.mxu0 %v504_v46  ;;  %400 = vmatpush.msra.mxu3 %v379_v62 }
  0x29   : > { %317 = vmatpush.msra.mxu1 %v249_v47  ;;  %359 = vmatpush.msra.mxu2 %v520_v45 }
  0x2a   : > { %298 = vmatpush.msra.mxu0 %v503_v50  ;;  %401 = vmatpush.msra.mxu3 %v378_v63 }
  0x2b   : > { %318 = vmatpush.msra.mxu1 %v248_v53  ;;  %360 = vmatpush.msra.mxu2 %v519_v55 }
  0x2c   : > { %299 = vmatpush.msra.mxu0 %v502_v57  ;;  %361 = vmatmul.f32.vlgmr.msra.gmra.mxu2 %v327_v56 }
  0x2d   : > { %319 = vmatpush.msra.mxu1 %v247_v58  ;;  %300 = vmatmul.f32.vlgmr.msra.gmra.mxu0 %v266_v59 }
  0x2e   : > { %320 = vmatmul.f32.vlgmr.msra.gmra.mxu1 %v246_v60  ;;  %402 = vmatpush.msra.mxu3 %v377_v0 }
  0x30   : > { %403 = vmatpush.msra.mxu3 %v376_v1 }
  0x32   : > { %404 = vmatpush.msra.mxu3 %v375_v2 }
  0x34   : > { %405 = vmatpush.msra.mxu3 %v374_v3 }
  0x36   : > { %406 = vmatpush.msra.mxu3 %v373_v4 }
  0x38   : > { %407 = vmatpush.msra.mxu3 %v372_v5 }
  0xaa   : > { %v301_v6 = vpop.f32.mrf.mxu0 }
  0xab   : > { %v321_v7 = vpop.f32.mrf.mxu1 }
  0xac   : > { %v322_v8 = vadd.f32 %v321_v7, %v301_v6 }
  0xaf   : > { %v362_v10 = vpop.f32.mrf.mxu2 }
  0xb0   : > { %v365_v11 = vadd.f32 %v362_v10, %v322_v8 }
  0xb2   : > { %v370_v12 = vadd.f32 %v562_v9, %v365_v11 }
  0xb4   : > { %v371_v13 = vmax.f32 %v370_v12, 0.0 }
  0xb6   : > { %408 = vmatmul.f32.vlgmr.msra.gmra.mxu3 %v371_v13 }
 0x139   : > { %v409_v15 = vpop.f32.mrf.mxu3 }
 0x13a   : > { %v410_v16 = vadd.f32 %v563_v14, %v409_v15 }
 0x13c   : > { %v412_v17 = vadd.f32 %v501_v51, %v410_v16 }
 0x13e   : > { %413 = vst [vmem:[%s242_s10] sm:$0xff] %v412_v17 }
 0x13f PF: > { %s15_s20 = sadd.s32 1, %s586_s20   ;;  %s863_s18 = smov %s582_s19 }
 0x140   : > { %p12_p5 = scmp.ge.s32.totalorder %s15_s20, 4   ;;  %s864_s19 = smov %s866_s21 }
 0x142   :  { %14 = sbr.rel (!%p12_p5) target bundleno = 2 (0x2), region = 75 }

// kernel: calcium_vqvae_forward.20
= control target key start
LH: loop header
LB: loop body
LE: loop exit
PB: predicated region body
PF: predicated region fallthrough
CT: control target
= control target key end

     0   :  { %s381_s12 = smov 0   ;;  %s383_s13 = smov 0   ;;  %s469_s0 = inlined_call_operand.vmem [shape: f32[2,1,8,128], index: 0, kind: input, shape index: {}]   ;;  %s470_s1 = inlined_call_operand.vmem [shape: f32[1,128,128], index: 1, kind: input, shape index: {}]   ;;  %s471_s2 = inlined_call_operand.vmem [shape: f32[1,128], index: 2, kind: input, shape index: {}]   ;;  %s472_s3 = inlined_call_operand.vmem [shape: f32[2,8,128], index: 3, kind: output, shape index: {}]  }
   0x1   :  { %s385_s14 = smov 0  }
   0x2 LB: > { %s25_s15 = sadd.s32 1, %s355_s13  ;;  %p307_p0 = scmp.ge.s32.totalorder %s359_s14, 1  ;;  %s359_s14 = sphi %s385_s14, %s13_s14   ;;  %s355_s13 = sphi %s383_s13, %s474_s13   ;;  %s351_s12 = sphi %s381_s12, %s473_s12  }
   0x3   : > { %p27_p1 = scmp.ge.s32.totalorder %s25_s15, 2  ;;  %p150_p2 = scmp.lt.s32.totalorder %s359_s14, 3 }
   0x5   : > { %s476_s15 = smov (%p27_p1, %s25_s15), 0  ;;  %p151_p3 = pnand %p307_p0, %p150_p2 }
   0x6   : > { %p175_p4 = scmp.lt.s32.totalorder (!%p151_p3), %s351_s12, 1 }
   0x7   : > { %154 = sbr.rel (%p151_p3) target bundleno = 173 (0xad), region = 32 }
   0xc   : > { %v204_v0 = vld [vmem:[%s470_s1 + $0x78] sm:$0xff]  ;;  %v203_v1 = vld [vmem:[%s470_s1 + $0x70] sm:$0xff]  ;;  %v202_v2 = vld [vmem:[%s470_s1 + $0x68] sm:$0xff]  ;;  %s478_s12 = smov (!%p175_p4, %s351_s12), 1 }
   0xd   : > { %209 = vmatpush.msra.mxu0 %v204_v0  ;;  %v201_v3 = vld [vmem:[%s470_s1 + $0x60] sm:$0xff]  ;;  %v200_v4 = vld [vmem:[%s470_s1 + $0x58] sm:$0xff]  ;;  %v199_v5 = vld [vmem:[%s470_s1 + $0x50] sm:$0xff]  ;;  %s308_s19 = sshll.u32 %s478_s12, 3 }
   0xe   : > { %v198_v6 = vld [vmem:[%s470_s1 + $0x48] sm:$0xff]  ;;  %v197_v7 = vld [vmem:[%s470_s1 + $0x40] sm:$0xff]  ;;  %v196_v8 = vld [vmem:[%s470_s1 + $0x38] sm:$0xff]  ;;  %s178_s26 = scalar_lea.vmem %s469_s0, %s308_s19  ;;  %s185_s5 = scalar_lea.vmem %s472_s3, %s308_s19 }
   0xf   : > { %210 = vmatpush.msra.mxu0 %v203_v1  ;;  %v195_v9 = vld [vmem:[%s470_s1 + $0x30] sm:$0xff]  ;;  %v194_v10 = vld [vmem:[%s470_s1 + $0x28] sm:$0xff]  ;;  %v193_v11 = vld [vmem:[%s470_s1 + $0x20] sm:$0xff] }
  0x10   : > { %v192_v12 = vld [vmem:[%s470_s1 + $0x18] sm:$0xff]  ;;  %v191_v13 = vld [vmem:[%s470_s1 + $0x10] sm:$0xff]  ;;  %v190_v14 = vld [vmem:[%s470_s1 + $0x8] sm:$0xff] }
  0x11   : > { %211 = vmatpush.msra.mxu0 %v202_v2  ;;  %v189_v15 = vld [vmem:[%s470_s1] sm:$0xff] }
  0x12   : > { %v188_v16 = vld [vmem:[%s178_s26] sm:$0xff] }
  0x13   : > { %212 = vmatpush.msra.mxu0 %v201_v3  ;;  %v336_v17 = vld [vmem:[%s471_s2] ss:$0 sm:$0xff] }
  0x15   : > { %213 = vmatpush.msra.mxu0 %v200_v4 }
  0x17   : > { %214 = vmatpush.msra.mxu0 %v199_v5 }
  0x19   : > { %215 = vmatpush.msra.mxu0 %v198_v6 }
  0x1b   : > { %216 = vmatpush.msra.mxu0 %v197_v7 }
  0x1d   : > { %217 = vmatpush.msra.mxu0 %v196_v8 }
  0x1f   : > { %218 = vmatpush.msra.mxu0 %v195_v9 }
  0x21   : > { %219 = vmatpush.msra.mxu0 %v194_v10 }
  0x23   : > { %220 = vmatpush.msra.mxu0 %v193_v11 }
  0x25   : > { %221 = vmatpush.msra.mxu0 %v192_v12 }
  0x27   : > { %222 = vmatpush.msra.mxu0 %v191_v13 }
  0x29   : > { %223 = vmatpush.msra.mxu0 %v190_v14 }
  0x2b   : > { %224 = vmatpush.msra.mxu0 %v189_v15 }
  0x2c   : > { %225 = vmatmul.f32.vlgmr.msra.gmra.mxu0 %v188_v16 }
  0xa9   : > { %v226_v18 = vpop.f32.mrf.mxu0 }
  0xaa   : > { %v227_v19 = vadd.f32 %v336_v17, %v226_v18 }
  0xac   : > { %229 = vst [vmem:[%s185_s5] sm:$0xff] %v227_v19 }
  0xad PF: > { %s13_s14 = sadd.s32 1, %s359_s14   ;;  %s473_s12 = smov %s355_s13 }
  0xae   : > { %p10_p5 = scmp.ge.s32.totalorder %s13_s14, 4   ;;  %s474_s13 = smov %s476_s15 }
  0xb0   :  { %12 = sbr.rel (!%p10_p5) target bundleno = 2 (0x2), region = 63 }

// kernel: calcium_vqvae_forward.21
= control target key start
LH: loop header
LB: loop body
LE: loop exit
PB: predicated region body
PF: predicated region fallthrough
CT: control target
= control target key end

     0   :  { %v65_v25 = vlaneseq  ;;  %vm103_vm4 = vcmask 7168   ;;  %v167_v49 = vmov 1.0   ;;  %s262_s1 = inlined_call_operand.vmem [shape: f32[128,128], index: 1, kind: input, shape index: {}]   ;;  %s263_s0 = inlined_call_operand.vmem [shape: f32[16,128], index: 0, kind: input, shape index: {}]   ;;  %s264_s2 = inlined_call_operand.vmem [shape: f32[1,128], index: 2, kind: input, shape index: {}]   ;;  %s265_s3 = inlined_call_operand.vmem [shape: s32[16,1], index: 3, kind: output, shape index: {0}]   ;;  %s266_s4 = inlined_call_operand.vmem [shape: f32[16,128], index: 4, kind: output, shape index: {1}]  }
   0x1   :  { %v33_v0 = vld [vmem:[%s262_s1 + $0x78] sm:$0xff]  ;;  %v32_v1 = vld [vmem:[%s262_s1 + $0x70] sm:$0xff]  ;;  %v31_v2 = vld [vmem:[%s262_s1 + $0x68] sm:$0xff] }
   0x2   :  { %34 = vmatpush.xpose.msra.mxu0 %v33_v0  ;;  %149 = vmatpush.xpose.msra.mxu2 %v33_v0  ;;  %v30_v3 = vld [vmem:[%s262_s1 + $0x60] sm:$0xff]  ;;  %v29_v4 = vld [vmem:[%s262_s1 + $0x58] sm:$0xff]  ;;  %v28_v5 = vld [vmem:[%s262_s1 + $0x50] sm:$0xff]  ;;  %v66_v26 = vand.u32 127, %v65_v25 }
   0x3   :  { %112 = vmatpush.msra.mxu1 %v33_v0  ;;  %v27_v6 = vld [vmem:[%s262_s1 + $0x48] sm:$0xff]  ;;  %v26_v7 = vld [vmem:[%s262_s1 + $0x40] sm:$0xff]  ;;  %v25_v8 = vld [vmem:[%s262_s1 + $0x38] sm:$0xff] }
   0x4   :  { %v24_v9 = vld [vmem:[%s262_s1 + $0x30] sm:$0xff]  ;;  %v23_v10 = vld [vmem:[%s262_s1 + $0x28] sm:$0xff]  ;;  %v22_v11 = vld [vmem:[%s262_s1 + $0x20] sm:$0xff] }
   0x5   :  { %113 = vmatpush.msra.mxu1 %v32_v1  ;;  %v21_v12 = vld [vmem:[%s262_s1 + $0x18] sm:$0xff]  ;;  %v20_v13 = vld [vmem:[%s262_s1 + $0x10] sm:$0xff]  ;;  %v19_v14 = vld [vmem:[%s262_s1 + $0x8] sm:$0xff] }
   0x6   :  { %35 = vmatpush.xpose.msra.mxu0 %v32_v1  ;;  %150 = vmatpush.xpose.msra.mxu2 %v32_v1  ;;  %v18_v15 = vld [vmem:[%s262_s1] sm:$0xff]  ;;  %v17_v17 = vld [vmem:[%s263_s0 + $0x8] sm:$0xff] }
   0x7   :  { %114 = vmatpush.msra.mxu1 %v31_v2  ;;  %v16_v16 = vld [vmem:[%s263_s0] sm:$0xff] }
   0x8   :  { %v166_v18 = vld [vmem:[%s264_s2] ss:$0 sm:$0xff] }
   0x9   :  { %115 = vmatpush.msra.mxu1 %v30_v3 }
   0xa   :  { %36 = vmatpush.xpose.msra.mxu0 %v31_v2  ;;  %151 = vmatpush.xpose.msra.mxu2 %v31_v2 }
   0xb   :  { %116 = vmatpush.msra.mxu1 %v29_v4 }
   0xd   :  { %117 = vmatpush.msra.mxu1 %v28_v5 }
   0xe   :  { %37 = vmatpush.xpose.msra.mxu0 %v30_v3  ;;  %152 = vmatpush.xpose.msra.mxu2 %v30_v3 }
   0xf   :  { %118 = vmatpush.msra.mxu1 %v27_v6 }
  0x11   :  { %119 = vmatpush.msra.mxu1 %v26_v7 }
  0x12   :  { %38 = vmatpush.xpose.msra.mxu0 %v29_v4  ;;  %153 = vmatpush.xpose.msra.mxu2 %v29_v4 }
  0x13   :  { %120 = vmatpush.msra.mxu1 %v25_v8 }
  0x15   :  { %121 = vmatpush.msra.mxu1 %v24_v9 }
  0x16   :  { %39 = vmatpush.xpose.msra.mxu0 %v28_v5  ;;  %154 = vmatpush.xpose.msra.mxu2 %v28_v5 }
  0x17   :  { %122 = vmatpush.msra.mxu1 %v23_v10 }
  0x19   :  { %123 = vmatpush.msra.mxu1 %v22_v11 }
  0x1a   :  { %40 = vmatpush.xpose.msra.mxu0 %v27_v6  ;;  %155 = vmatpush.xpose.msra.mxu2 %v27_v6 }
  0x1b   :  { %124 = vmatpush.msra.mxu1 %v21_v12 }
  0x1d   :  { %125 = vmatpush.msra.mxu1 %v20_v13 }
  0x1e   :  { %41 = vmatpush.xpose.msra.mxu0 %v26_v7  ;;  %156 = vmatpush.xpose.msra.mxu2 %v26_v7 }
  0x1f   :  { %126 = vmatpush.msra.mxu1 %v19_v14 }
  0x21   :  { %127 = vmatpush.msra.mxu1 %v18_v15 }
  0x22   :  { %42 = vmatpush.xpose.msra.mxu0 %v25_v8  ;;  %157 = vmatpush.xpose.msra.mxu2 %v25_v8 }
  0x26   :  { %43 = vmatpush.xpose.msra.mxu0 %v24_v9  ;;  %158 = vmatpush.xpose.msra.mxu2 %v24_v9 }
  0x2a   :  { %44 = vmatpush.xpose.msra.mxu0 %v23_v10  ;;  %159 = vmatpush.xpose.msra.mxu2 %v23_v10 }
  0x2e   :  { %45 = vmatpush.xpose.msra.mxu0 %v22_v11  ;;  %160 = vmatpush.xpose.msra.mxu2 %v22_v11 }
  0x32   :  { %46 = vmatpush.xpose.msra.mxu0 %v21_v12  ;;  %161 = vmatpush.xpose.msra.mxu2 %v21_v12 }
  0x36   :  { %47 = vmatpush.xpose.msra.mxu0 %v20_v13  ;;  %162 = vmatpush.xpose.msra.mxu2 %v20_v13 }
  0x3a   :  { %48 = vmatpush.xpose.msra.mxu0 %v19_v14  ;;  %163 = vmatpush.xpose.msra.mxu2 %v19_v14 }
  0x3e   :  { %49 = vmatpush.xpose.msra.mxu0 %v18_v15  ;;  %164 = vmatpush.xpose.msra.mxu2 %v18_v15 }
  0x41   :  { %50 = vmatmul.f32.vlgmr.msra.gmra.mxu0 %v16_v16  ;;  %53 = vmatmul.f32.vlgmr.msra.gmra.mxu2 %v17_v17 }
  0xbe   :  { %v51_v19 = vpop.f32.mrf.mxu0 }
  0xbf   :  { %v58_v20 = vmul.f32 2.0, %v51_v19 }
  0xc1   :  { %v63_v21 = vsub.f32 %v166_v18, %v58_v20 }
  0xc3   :  { %67 = vmin.xlane.f32.xlu0 %v63_v21 }
  0xc4   :  { %v54_v22 = vpop.f32.mrf.mxu2 }
  0xc5   :  { %v59_v23 = vmul.f32 2.0, %v54_v22 }
  0xc7   :  { %v64_v24 = vsub.f32 %v166_v18, %v59_v23 }
  0xcb   :  { %69 = vmin.xlane.f32.xlu0 %v64_v24 }
 0x136   :  { %v68_v27 = vpop.xlane.xlu0 %67 }
 0x137   :  { %vm71_vm0 = vcmp.le.f32.partialorder %v63_v21, %v68_v27 }
 0x138   :  { %v73_v28 = vsel %vm71_vm0, %v66_v26, 128 }
 0x139   :  { %v76_v29 = vshra.s32 %v73_v28, 16  ;;  %v75_v35 = vand.u32 65535, %v73_v28 }
 0x13b   :  { %v78_v30 = vcvt.s32.f32 %v76_v29  ;;  %v77_v37 = vcvt.s32.f32 %v75_v35 }
 0x13d   :  { %79 = vmin.xlane.f32.xlu1 %v78_v30 }
 0x13e   :  { %v70_v31 = vpop.xlane.xlu0 %69 }
 0x13f   :  { %vm72_vm1 = vcmp.le.f32.partialorder %v64_v24, %v70_v31 }
 0x140   :  { %v74_v32 = vsel %vm72_vm1, %v66_v26, 128 }
 0x141   :  { %v90_v33 = vshra.s32 %v74_v32, 16  ;;  %v89_v39 = vand.u32 65535, %v74_v32 }
 0x143   :  { %v92_v34 = vcvt.s32.f32 %v90_v33  ;;  %v91_v41 = vcvt.s32.f32 %v89_v39 }
 0x145   :  { %93 = vmin.xlane.f32.xlu1 %v92_v34 }
 0x1b0   :  { %v80_v36 = vpop.xlane.xlu1 %79 }
 0x1b1   :  { %vm81_vm2 = vcmp.eq.f32.partialorder %v78_v30, %v80_v36  ;;  %v86_v43 = vcvt.f32.s32 %v80_v36 }
 0x1b2   :  { %v82_v38 = vsel %vm81_vm2, %v77_v37, inf }
 0x1b3   :  { %83 = vmin.xlane.f32.xlu2 %v82_v38  ;;  %v87_v45 = vshll.u32 %v86_v43, 16 }
 0x1b8   :  { %v94_v40 = vpop.xlane.xlu1 %93 }
 0x1b9   :  { %vm95_vm3 = vcmp.eq.f32.partialorder %v92_v34, %v94_v40  ;;  %v100_v48 = vcvt.f32.s32 %v94_v40 }
 0x1ba   :  { %v96_v42 = vsel %vm95_vm3, %v91_v41, inf }
 0x1bb   :  { %97 = vmin.xlane.f32.xlu2 %v96_v42  ;;  %v101_v51 = vshll.u32 %v100_v48, 16 }
 0x226   :  { %v84_v44 = vpop.xlane.xlu2 %83 }
 0x227   :  { %v85_v46 = vcvt.f32.s32 %v84_v44 }
 0x229   :  { %v88_v47 = vadd.s32 %v87_v45, %v85_v46 }
 0x22b   :  { %104 = vst.msk [vmem:[%s265_s3] sm:$0xff] %vm103_vm4, %v88_v47  ;;  %vm106_vm5 = vcmp.eq.s32.totalorder %v66_v26, %v88_v47 }
 0x22c   :  { %147 = vmatmul.msk.f32.vlgmr.msra.gmra.mxu1 %vm106_vm5, %v167_v49 }
 0x22e   :  { %v98_v50 = vpop.xlane.xlu2 %97 }
 0x22f   :  { %v99_v52 = vcvt.f32.s32 %v98_v50 }
 0x231   :  { %v102_v53 = vadd.s32 %v101_v51, %v99_v52 }
 0x233   :  { %105 = vst.msk [vmem:[%s265_s3 + $0x8] sm:$0xff] %vm103_vm4, %v102_v53  ;;  %vm107_vm6 = vcmp.eq.s32.totalorder %v66_v26, %v102_v53 }
 0x234   :  { %148 = vmatmul.msk.f32.gmra.mxu1 %vm107_vm6, %v167_v49 }
 0x2a9   :  { %v129_v54 = vpop.f32.mrf.mxu1 }
 0x2aa   :  { %135 = vst [vmem:[%s266_s4] sm:$0xff] %v129_v54 }
 0x2b1   :  { %v132_v55 = vpop.f32.mrf.mxu1 }
 0x2b2   :  { %136 = vst [vmem:[%s266_s4 + $0x8] sm:$0xff] %v132_v55 }

// kernel: calcium_vqvae_forward.25
= control target key start
LH: loop header
LB: loop body
LE: loop exit
PB: predicated region body
PF: predicated region fallthrough
CT: control target
= control target key end

     0   :  { %s448_s12 = smov 0   ;;  %s450_s13 = smov 0   ;;  %s588_s0 = inlined_call_operand.vmem [shape: f32[2,1,9,128], index: 0, kind: input, shape index: {}]   ;;  %s589_s1 = inlined_call_operand.vmem [shape: f32[2,128,128], index: 1, kind: input, shape index: {}]   ;;  %s590_s2 = inlined_call_operand.vmem [shape: f32[1,128], index: 2, kind: input, shape index: {}]   ;;  %s591_s3 = inlined_call_operand.vmem [shape: f32[2,8,128], index: 3, kind: output, shape index: {}]  }
   0x1   :  { %s452_s14 = smov 0  }
   0x2 LB: > { %s25_s15 = sadd.s32 1, %s422_s13  ;;  %p355_p0 = scmp.ge.s32.totalorder %s426_s14, 1  ;;  %s426_s14 = sphi %s452_s14, %s13_s14   ;;  %s422_s13 = sphi %s450_s13, %s593_s13   ;;  %s418_s12 = sphi %s448_s12, %s592_s12  }
   0x3   : > { %p27_p1 = scmp.ge.s32.totalorder %s25_s15, 2  ;;  %p151_p2 = scmp.lt.s32.totalorder %s426_s14, 3 }
   0x5   : > { %s595_s15 = smov (%p27_p1, %s25_s15), 0  ;;  %p152_p3 = pnand %p355_p0, %p151_p2 }
   0x6   : > { %p177_p4 = scmp.lt.s32.totalorder (!%p152_p3), %s418_s12, 1 }
   0x7   : > { %155 = sbr.rel (%p152_p3) target bundleno = 178 (0xb2), region = 32 }
   0xc   : > { %v375_v0 = vld [vmem:[%s589_s1 + $0xf8] sm:$0xff]  ;;  %v374_v2 = vld [vmem:[%s589_s1 + $0xf0] sm:$0xff]  ;;  %v373_v4 = vld [vmem:[%s589_s1 + $0xe8] sm:$0xff]  ;;  %s597_s12 = smov (!%p177_p4, %s418_s12), 1 }
   0xd   : > { %v207_v1 = vld [vmem:[%s589_s1 + $0x78] sm:$0xff]  ;;  %228 = vmatpush.msra.mxu0 %v375_v0  ;;  %v206_v3 = vld [vmem:[%s589_s1 + $0x70] sm:$0xff]  ;;  %v205_v5 = vld [vmem:[%s589_s1 + $0x68] sm:$0xff]  ;;  %s378_s22 = sshll.u32 %s597_s12, 4  ;;  %s358_s17 = sshll.u32 %s597_s12, 3 }
   0xe   : > { %248 = vmatpush.msra.mxu1 %v207_v1  ;;  %v372_v6 = vld [vmem:[%s589_s1 + $0xe0] sm:$0xff]  ;;  %v371_v8 = vld [vmem:[%s589_s1 + $0xd8] sm:$0xff]  ;;  %v370_v10 = vld [vmem:[%s589_s1 + $0xd0] sm:$0xff]  ;;  %s181_s6 = scalar_lea.vmem %s588_s0, %s378_s22  ;;  %s188_s20 = scalar_lea.vmem %s591_s3, %s358_s17 }
   0xf   : > { %229 = vmatpush.msra.mxu0 %v374_v2  ;;  %v204_v7 = vld [vmem:[%s589_s1 + $0x60] sm:$0xff]  ;;  %v203_v9 = vld [vmem:[%s589_s1 + $0x58] sm:$0xff]  ;;  %v202_v11 = vld [vmem:[%s589_s1 + $0x50] sm:$0xff] }
  0x10   : > { %249 = vmatpush.msra.mxu1 %v206_v3  ;;  %v369_v12 = vld [vmem:[%s589_s1 + $0xc8] sm:$0xff]  ;;  %v368_v14 = vld [vmem:[%s589_s1 + $0xc0] sm:$0xff]  ;;  %v367_v16 = vld [vmem:[%s589_s1 + $0xb8] sm:$0xff] }
  0x11   : > { %230 = vmatpush.msra.mxu0 %v373_v4  ;;  %v201_v13 = vld [vmem:[%s589_s1 + $0x48] sm:$0xff]  ;;  %v200_v15 = vld [vmem:[%s589_s1 + $0x40] sm:$0xff]  ;;  %v199_v17 = vld [vmem:[%s589_s1 + $0x38] sm:$0xff] }
  0x12   : > { %250 = vmatpush.msra.mxu1 %v205_v5  ;;  %v366_v18 = vld [vmem:[%s589_s1 + $0xb0] sm:$0xff]  ;;  %v365_v20 = vld [vmem:[%s589_s1 + $0xa8] sm:$0xff]  ;;  %v364_v22 = vld [vmem:[%s589_s1 + $0xa0] sm:$0xff] }
  0x13   : > { %231 = vmatpush.msra.mxu0 %v372_v6  ;;  %v198_v19 = vld [vmem:[%s589_s1 + $0x30] sm:$0xff]  ;;  %v197_v21 = vld [vmem:[%s589_s1 + $0x28] sm:$0xff]  ;;  %v196_v23 = vld [vmem:[%s589_s1 + $0x20] sm:$0xff] }
  0x14   : > { %251 = vmatpush.msra.mxu1 %v204_v7  ;;  %v363_v24 = vld [vmem:[%s589_s1 + $0x98] sm:$0xff]  ;;  %v362_v26 = vld [vmem:[%s589_s1 + $0x90] sm:$0xff]  ;;  %v361_v28 = vld [vmem:[%s589_s1 + $0x88] sm:$0xff] }
  0x15   : > { %232 = vmatpush.msra.mxu0 %v371_v8  ;;  %v195_v25 = vld [vmem:[%s589_s1 + $0x18] sm:$0xff]  ;;  %v194_v27 = vld [vmem:[%s589_s1 + $0x10] sm:$0xff]  ;;  %v193_v29 = vld [vmem:[%s589_s1 + $0x8] sm:$0xff] }
  0x16   : > { %252 = vmatpush.msra.mxu1 %v203_v9  ;;  %v360_v30 = vld [vmem:[%s589_s1 + $0x80] sm:$0xff] }
  0x17   : > { %233 = vmatpush.msra.mxu0 %v370_v10  ;;  %v192_v31 = vld [vmem:[%s589_s1] sm:$0xff] }
  0x18   : > { %253 = vmatpush.msra.mxu1 %v202_v11  ;;  %v359_v32 = vld [vmem:[%s181_s6 + $0x1] sm:$0xff]  ;;  %v403_v34 = vld [vmem:[%s590_s2] ss:$0 sm:$0xff] }
  0x19   : > { %234 = vmatpush.msra.mxu0 %v369_v12  ;;  %v191_v33 = vld [vmem:[%s181_s6] sm:$0xff] }
  0x1a   : > { %254 = vmatpush.msra.mxu1 %v201_v13 }
  0x1b   : > { %235 = vmatpush.msra.mxu0 %v368_v14 }
  0x1c   : > { %255 = vmatpush.msra.mxu1 %v200_v15 }
  0x1d   : > { %236 = vmatpush.msra.mxu0 %v367_v16 }
  0x1e   : > { %256 = vmatpush.msra.mxu1 %v199_v17 }
  0x1f   : > { %237 = vmatpush.msra.mxu0 %v366_v18 }
  0x20   : > { %257 = vmatpush.msra.mxu1 %v198_v19 }
  0x21   : > { %238 = vmatpush.msra.mxu0 %v365_v20 }
  0x22   : > { %258 = vmatpush.msra.mxu1 %v197_v21 }
  0x23   : > { %239 = vmatpush.msra.mxu0 %v364_v22 }
  0x24   : > { %259 = vmatpush.msra.mxu1 %v196_v23 }
  0x25   : > { %240 = vmatpush.msra.mxu0 %v363_v24 }
  0x26   : > { %260 = vmatpush.msra.mxu1 %v195_v25 }
  0x27   : > { %241 = vmatpush.msra.mxu0 %v362_v26 }
  0x28   : > { %261 = vmatpush.msra.mxu1 %v194_v27 }
  0x29   : > { %242 = vmatpush.msra.mxu0 %v361_v28 }
  0x2a   : > { %262 = vmatpush.msra.mxu1 %v193_v29 }
  0x2b   : > { %243 = vmatpush.msra.mxu0 %v360_v30 }
  0x2c   : > { %263 = vmatpush.msra.mxu1 %v192_v31  ;;  %244 = vmatmul.f32.vlgmr.msra.gmra.mxu0 %v359_v32 }
  0x2d   : > { %264 = vmatmul.f32.vlgmr.msra.gmra.mxu1 %v191_v33 }
  0xa9   : > { %v245_v35 = vpop.f32.mrf.mxu0 }
  0xaa   : > { %v265_v36 = vpop.f32.mrf.mxu1 }
  0xab   : > { %v266_v37 = vadd.f32 %v265_v36, %v245_v35 }
  0xad   : > { %v272_v38 = vadd.f32 %v403_v34, %v266_v37 }
  0xaf   : > { %v273_v39 = vmax.f32 %v272_v38, 0.0 }
  0xb1   : > { %274 = vst [vmem:[%s188_s20] sm:$0xff] %v273_v39 }
  0xb2 PF: > { %s13_s14 = sadd.s32 1, %s426_s14   ;;  %s592_s12 = smov %s422_s13 }
  0xb3   : > { %p10_p5 = scmp.ge.s32.totalorder %s13_s14, 4   ;;  %s593_s13 = smov %s595_s15 }
  0xb5   :  { %12 = sbr.rel (!%p10_p5) target bundleno = 2 (0x2), region = 65 }

// kernel: calcium_vqvae_forward.24
= control target key start
LH: loop header
LB: loop body
LE: loop exit
PB: predicated region body
PF: predicated region fallthrough
CT: control target
= control target key end

     0   :  { %s382_s12 = smov 0   ;;  %s384_s13 = smov 0   ;;  %s470_s0 = inlined_call_operand.vmem [shape: f32[2,1,8,128], index: 0, kind: input, shape index: {}]   ;;  %s471_s1 = inlined_call_operand.vmem [shape: f32[1,128,128], index: 1, kind: input, shape index: {}]   ;;  %s472_s2 = inlined_call_operand.vmem [shape: f32[1,128], index: 2, kind: input, shape index: {}]   ;;  %s473_s3 = inlined_call_operand.vmem [shape: f32[2,8,128], index: 3, kind: output, shape index: {}]  }
   0x1   :  { %s386_s14 = smov 0  }
   0x2 LB: > { %s25_s15 = sadd.s32 1, %s356_s13  ;;  %p308_p0 = scmp.ge.s32.totalorder %s360_s14, 1  ;;  %s360_s14 = sphi %s386_s14, %s13_s14   ;;  %s356_s13 = sphi %s384_s13, %s475_s13   ;;  %s352_s12 = sphi %s382_s12, %s474_s12  }
   0x3   : > { %p27_p1 = scmp.ge.s32.totalorder %s25_s15, 2  ;;  %p150_p2 = scmp.lt.s32.totalorder %s360_s14, 3 }
   0x5   : > { %s477_s15 = smov (%p27_p1, %s25_s15), 0  ;;  %p151_p3 = pnand %p308_p0, %p150_p2 }
   0x6   : > { %p175_p4 = scmp.lt.s32.totalorder (!%p151_p3), %s352_s12, 1 }
   0x7   : > { %154 = sbr.rel (%p151_p3) target bundleno = 175 (0xaf), region = 32 }
   0xc   : > { %v204_v0 = vld [vmem:[%s471_s1 + $0x78] sm:$0xff]  ;;  %v203_v1 = vld [vmem:[%s471_s1 + $0x70] sm:$0xff]  ;;  %v202_v2 = vld [vmem:[%s471_s1 + $0x68] sm:$0xff]  ;;  %s479_s12 = smov (!%p175_p4, %s352_s12), 1 }
   0xd   : > { %209 = vmatpush.msra.mxu0 %v204_v0  ;;  %v201_v3 = vld [vmem:[%s471_s1 + $0x60] sm:$0xff]  ;;  %v200_v4 = vld [vmem:[%s471_s1 + $0x58] sm:$0xff]  ;;  %v199_v5 = vld [vmem:[%s471_s1 + $0x50] sm:$0xff]  ;;  %s309_s19 = sshll.u32 %s479_s12, 3 }
   0xe   : > { %v198_v6 = vld [vmem:[%s471_s1 + $0x48] sm:$0xff]  ;;  %v197_v7 = vld [vmem:[%s471_s1 + $0x40] sm:$0xff]  ;;  %v196_v8 = vld [vmem:[%s471_s1 + $0x38] sm:$0xff]  ;;  %s178_s26 = scalar_lea.vmem %s470_s0, %s309_s19  ;;  %s185_s5 = scalar_lea.vmem %s473_s3, %s309_s19 }
   0xf   : > { %210 = vmatpush.msra.mxu0 %v203_v1  ;;  %v195_v9 = vld [vmem:[%s471_s1 + $0x30] sm:$0xff]  ;;  %v194_v10 = vld [vmem:[%s471_s1 + $0x28] sm:$0xff]  ;;  %v193_v11 = vld [vmem:[%s471_s1 + $0x20] sm:$0xff] }
  0x10   : > { %v192_v12 = vld [vmem:[%s471_s1 + $0x18] sm:$0xff]  ;;  %v191_v13 = vld [vmem:[%s471_s1 + $0x10] sm:$0xff]  ;;  %v190_v14 = vld [vmem:[%s471_s1 + $0x8] sm:$0xff] }
  0x11   : > { %211 = vmatpush.msra.mxu0 %v202_v2  ;;  %v189_v15 = vld [vmem:[%s471_s1] sm:$0xff] }
  0x12   : > { %v188_v16 = vld [vmem:[%s178_s26] sm:$0xff] }
  0x13   : > { %212 = vmatpush.msra.mxu0 %v201_v3  ;;  %v337_v17 = vld [vmem:[%s472_s2] ss:$0 sm:$0xff] }
  0x15   : > { %213 = vmatpush.msra.mxu0 %v200_v4 }
  0x17   : > { %214 = vmatpush.msra.mxu0 %v199_v5 }
  0x19   : > { %215 = vmatpush.msra.mxu0 %v198_v6 }
  0x1b   : > { %216 = vmatpush.msra.mxu0 %v197_v7 }
  0x1d   : > { %217 = vmatpush.msra.mxu0 %v196_v8 }
  0x1f   : > { %218 = vmatpush.msra.mxu0 %v195_v9 }
  0x21   : > { %219 = vmatpush.msra.mxu0 %v194_v10 }
  0x23   : > { %220 = vmatpush.msra.mxu0 %v193_v11 }
  0x25   : > { %221 = vmatpush.msra.mxu0 %v192_v12 }
  0x27   : > { %222 = vmatpush.msra.mxu0 %v191_v13 }
  0x29   : > { %223 = vmatpush.msra.mxu0 %v190_v14 }
  0x2b   : > { %224 = vmatpush.msra.mxu0 %v189_v15 }
  0x2c   : > { %225 = vmatmul.f32.vlgmr.msra.gmra.mxu0 %v188_v16 }
  0xa9   : > { %v226_v18 = vpop.f32.mrf.mxu0 }
  0xaa   : > { %v227_v19 = vadd.f32 %v337_v17, %v226_v18 }
  0xac   : > { %v229_v20 = vmax.f32 %v227_v19, 0.0 }
  0xae   : > { %230 = vst [vmem:[%s185_s5] sm:$0xff] %v229_v20 }
  0xaf PF: > { %s13_s14 = sadd.s32 1, %s360_s14   ;;  %s474_s12 = smov %s356_s13 }
  0xb0   : > { %p10_p5 = scmp.ge.s32.totalorder %s13_s14, 4   ;;  %s475_s13 = smov %s477_s15 }
  0xb2   :  { %12 = sbr.rel (!%p10_p5) target bundleno = 2 (0x2), region = 63 }

// kernel: calcium_vqvae_forward.27
= control target key start
LH: loop header
LB: loop body
LE: loop exit
PB: predicated region body
PF: predicated region fallthrough
CT: control target
= control target key end

     0   :  { %s508_s12 = smov 0   ;;  %s510_s13 = smov 0   ;;  %s648_s0 = inlined_call_operand.vmem [shape: f32[2,1,17,128], index: 0, kind: input, shape index: {}]   ;;  %s649_s1 = inlined_call_operand.vmem [shape: f32[2,128,128], index: 1, kind: input, shape index: {}]   ;;  %s650_s2 = inlined_call_operand.vmem [shape: f32[1,128], index: 2, kind: input, shape index: {}]   ;;  %s651_s3 = inlined_call_operand.vmem [shape: f32[2,16,128], index: 3, kind: output, shape index: {}]  }
   0x1   :  { %s512_s14 = smov 0  }
   0x2 LB: > { %s25_s15 = sadd.s32 1, %s482_s13  ;;  %p381_p0 = scmp.ge.s32.totalorder %s486_s14, 1  ;;  %s486_s14 = sphi %s512_s14, %s13_s14   ;;  %s482_s13 = sphi %s510_s13, %s653_s13   ;;  %s478_s12 = sphi %s508_s12, %s652_s12  }
   0x3   : > { %p27_p1 = scmp.ge.s32.totalorder %s25_s15, 2  ;;  %p151_p2 = scmp.lt.s32.totalorder %s486_s14, 3 }
   0x5   : > { %s655_s15 = smov (%p27_p1, %s25_s15), 0  ;;  %p152_p3 = pnand %p381_p0, %p151_p2 }
   0x6   : > { %p179_p4 = scmp.lt.s32.totalorder (!%p152_p3), %s478_s12, 1 }
   0x7   : > { %155 = sbr.rel (%p152_p3) target bundleno = 184 (0xb8), region = 32 }
   0xc   : > { %v402_v0 = vld [vmem:[%s649_s1 + $0xf8] sm:$0xff]  ;;  %v401_v2 = vld [vmem:[%s649_s1 + $0xf0] sm:$0xff]  ;;  %v400_v4 = vld [vmem:[%s649_s1 + $0xe8] sm:$0xff]  ;;  %s657_s12 = smov (!%p179_p4, %s478_s12), 1 }
   0xd   : > { %v213_v1 = vld [vmem:[%s649_s1 + $0x78] sm:$0xff]  ;;  %406 = vmatpush.msra.mxu2 %v402_v0  ;;  %v212_v3 = vld [vmem:[%s649_s1 + $0x70] sm:$0xff]  ;;  %v211_v5 = vld [vmem:[%s649_s1 + $0x68] sm:$0xff]  ;;  %235 = vmatpush.msra.mxu0 %v402_v0  ;;  %s438_s22 = smul.u32 24, %s657_s12  ;;  %s405_s17 = sshll.u32 %s657_s12, 4 }
   0xe   : > { %422 = vmatpush.msra.mxu3 %v213_v1  ;;  %258 = vmatpush.msra.mxu1 %v213_v1  ;;  %v399_v6 = vld [vmem:[%s649_s1 + $0xe0] sm:$0xff]  ;;  %v398_v8 = vld [vmem:[%s649_s1 + $0xd8] sm:$0xff]  ;;  %v397_v10 = vld [vmem:[%s649_s1 + $0xd0] sm:$0xff]  ;;  %s192_s20 = scalar_lea.vmem %s651_s3, %s405_s17 }
   0xf   : > { %407 = vmatpush.msra.mxu2 %v401_v2  ;;  %v210_v7 = vld [vmem:[%s649_s1 + $0x60] sm:$0xff]  ;;  %236 = vmatpush.msra.mxu0 %v401_v2  ;;  %v209_v9 = vld [vmem:[%s649_s1 + $0x58] sm:$0xff]  ;;  %v208_v11 = vld [vmem:[%s649_s1 + $0x50] sm:$0xff]  ;;  %s183_s6 = scalar_lea.vmem %s648_s0, %s438_s22 }
  0x10   : > { %423 = vmatpush.msra.mxu3 %v212_v3  ;;  %259 = vmatpush.msra.mxu1 %v212_v3  ;;  %v396_v12 = vld [vmem:[%s649_s1 + $0xc8] sm:$0xff]  ;;  %v395_v14 = vld [vmem:[%s649_s1 + $0xc0] sm:$0xff]  ;;  %v394_v16 = vld [vmem:[%s649_s1 + $0xb8] sm:$0xff] }
  0x11   : > { %408 = vmatpush.msra.mxu2 %v400_v4  ;;  %237 = vmatpush.msra.mxu0 %v400_v4  ;;  %v207_v13 = vld [vmem:[%s649_s1 + $0x48] sm:$0xff]  ;;  %v206_v15 = vld [vmem:[%s649_s1 + $0x40] sm:$0xff]  ;;  %v205_v17 = vld [vmem:[%s649_s1 + $0x38] sm:$0xff] }
  0x12   : > { %424 = vmatpush.msra.mxu3 %v211_v5  ;;  %260 = vmatpush.msra.mxu1 %v211_v5  ;;  %v393_v18 = vld [vmem:[%s649_s1 + $0xb0] sm:$0xff]  ;;  %v392_v20 = vld [vmem:[%s649_s1 + $0xa8] sm:$0xff]  ;;  %v391_v22 = vld [vmem:[%s649_s1 + $0xa0] sm:$0xff] }
  0x13   : > { %409 = vmatpush.msra.mxu2 %v399_v6  ;;  %238 = vmatpush.msra.mxu0 %v399_v6  ;;  %v204_v19 = vld [vmem:[%s649_s1 + $0x30] sm:$0xff]  ;;  %v203_v21 = vld [vmem:[%s649_s1 + $0x28] sm:$0xff]  ;;  %v202_v23 = vld [vmem:[%s649_s1 + $0x20] sm:$0xff] }
  0x14   : > { %425 = vmatpush.msra.mxu3 %v210_v7  ;;  %261 = vmatpush.msra.mxu1 %v210_v7  ;;  %v390_v24 = vld [vmem:[%s649_s1 + $0x98] sm:$0xff]  ;;  %v389_v26 = vld [vmem:[%s649_s1 + $0x90] sm:$0xff]  ;;  %v388_v28 = vld [vmem:[%s649_s1 + $0x88] sm:$0xff] }
  0x15   : > { %410 = vmatpush.msra.mxu2 %v398_v8  ;;  %239 = vmatpush.msra.mxu0 %v398_v8  ;;  %v201_v25 = vld [vmem:[%s649_s1 + $0x18] sm:$0xff]  ;;  %v200_v27 = vld [vmem:[%s649_s1 + $0x10] sm:$0xff]  ;;  %v199_v29 = vld [vmem:[%s649_s1 + $0x8] sm:$0xff] }
  0x16   : > { %426 = vmatpush.msra.mxu3 %v209_v9  ;;  %262 = vmatpush.msra.mxu1 %v209_v9  ;;  %v387_v30 = vld [vmem:[%s649_s1 + $0x80] sm:$0xff]  ;;  %v386_v32 = vld [vmem:[%s183_s6 + $0x9] sm:$0xff] }
  0x17   : > { %411 = vmatpush.msra.mxu2 %v397_v10  ;;  %240 = vmatpush.msra.mxu0 %v397_v10  ;;  %v198_v31 = vld [vmem:[%s649_s1] sm:$0xff]  ;;  %v197_v33 = vld [vmem:[%s183_s6 + $0x8] sm:$0xff] }
  0x18   : > { %427 = vmatpush.msra.mxu3 %v208_v11  ;;  %263 = vmatpush.msra.mxu1 %v208_v11  ;;  %v385_v34 = vld [vmem:[%s183_s6 + $0x1] sm:$0xff]  ;;  %v463_v36 = vld [vmem:[%s650_s2] ss:$0 sm:$0xff] }
  0x19   : > { %412 = vmatpush.msra.mxu2 %v396_v12  ;;  %241 = vmatpush.msra.mxu0 %v396_v12  ;;  %v196_v35 = vld [vmem:[%s183_s6] sm:$0xff] }
  0x1a   : > { %428 = vmatpush.msra.mxu3 %v207_v13  ;;  %264 = vmatpush.msra.mxu1 %v207_v13 }
  0x1b   : > { %413 = vmatpush.msra.mxu2 %v395_v14  ;;  %242 = vmatpush.msra.mxu0 %v395_v14 }
  0x1c   : > { %429 = vmatpush.msra.mxu3 %v206_v15  ;;  %265 = vmatpush.msra.mxu1 %v206_v15 }
  0x1d   : > { %414 = vmatpush.msra.mxu2 %v394_v16  ;;  %243 = vmatpush.msra.mxu0 %v394_v16 }
  0x1e   : > { %430 = vmatpush.msra.mxu3 %v205_v17  ;;  %266 = vmatpush.msra.mxu1 %v205_v17 }
  0x1f   : > { %415 = vmatpush.msra.mxu2 %v393_v18  ;;  %244 = vmatpush.msra.mxu0 %v393_v18 }
  0x20   : > { %431 = vmatpush.msra.mxu3 %v204_v19  ;;  %267 = vmatpush.msra.mxu1 %v204_v19 }
  0x21   : > { %416 = vmatpush.msra.mxu2 %v392_v20  ;;  %245 = vmatpush.msra.mxu0 %v392_v20 }
  0x22   : > { %432 = vmatpush.msra.mxu3 %v203_v21  ;;  %268 = vmatpush.msra.mxu1 %v203_v21 }
  0x23   : > { %417 = vmatpush.msra.mxu2 %v391_v22  ;;  %246 = vmatpush.msra.mxu0 %v391_v22 }
  0x24   : > { %433 = vmatpush.msra.mxu3 %v202_v23  ;;  %269 = vmatpush.msra.mxu1 %v202_v23 }
  0x25   : > { %418 = vmatpush.msra.mxu2 %v390_v24  ;;  %247 = vmatpush.msra.mxu0 %v390_v24 }
  0x26   : > { %434 = vmatpush.msra.mxu3 %v201_v25  ;;  %270 = vmatpush.msra.mxu1 %v201_v25 }
  0x27   : > { %419 = vmatpush.msra.mxu2 %v389_v26  ;;  %248 = vmatpush.msra.mxu0 %v389_v26 }
  0x28   : > { %435 = vmatpush.msra.mxu3 %v200_v27  ;;  %271 = vmatpush.msra.mxu1 %v200_v27 }
  0x29   : > { %420 = vmatpush.msra.mxu2 %v388_v28  ;;  %249 = vmatpush.msra.mxu0 %v388_v28 }
  0x2a   : > { %436 = vmatpush.msra.mxu3 %v199_v29  ;;  %272 = vmatpush.msra.mxu1 %v199_v29 }
  0x2b   : > { %421 = vmatpush.msra.mxu2 %v387_v30  ;;  %250 = vmatpush.msra.mxu0 %v387_v30 }
  0x2c   : > { %437 = vmatpush.msra.mxu3 %v198_v31  ;;  %254 = vmatmul.f32.vlgmr.msra.gmra.mxu2 %v386_v32 }
  0x2d   : > { %277 = vmatmul.f32.vlgmr.msra.gmra.mxu3 %v197_v33  ;;  %273 = vmatpush.msra.mxu1 %v198_v31 }
  0x2e   : > { %251 = vmatmul.f32.vlgmr.msra.gmra.mxu0 %v385_v34  ;;  %274 = vmatmul.f32.vlgmr.msra.gmra.mxu1 %v196_v35 }
  0xab   : > { %v252_v37 = vpop.f32.mrf.mxu0  ;;  %v275_v38 = vpop.f32.mrf.mxu1 }
  0xac   : > { %v276_v39 = vadd.f32 %v275_v38, %v252_v37 }
  0xae   : > { %v285_v40 = vadd.f32 %v463_v36, %v276_v39 }
  0xaf   : > { %v255_v41 = vpop.f32.mrf.mxu2 }
  0xb0   : > { %v278_v42 = vpop.f32.mrf.mxu3  ;;  %v287_v43 = vmax.f32 %v285_v40, 0.0 }
  0xb1   : > { %v279_v44 = vadd.f32 %v278_v42, %v255_v41 }
  0xb2   : > { %289 = vst [vmem:[%s192_s20] sm:$0xff] %v287_v43 }
  0xb3   : > { %v286_v45 = vadd.f32 %v463_v36, %v279_v44 }
  0xb5   : > { %v288_v46 = vmax.f32 %v286_v45, 0.0 }
  0xb7   : > { %290 = vst [vmem:[%s192_s20 + $0x8] sm:$0xff] %v288_v46 }
  0xb8 PF: > { %s13_s14 = sadd.s32 1, %s486_s14   ;;  %s652_s12 = smov %s482_s13 }
  0xb9   : > { %p10_p5 = scmp.ge.s32.totalorder %s13_s14, 4   ;;  %s653_s13 = smov %s655_s15 }
  0xbb   :  { %12 = sbr.rel (!%p10_p5) target bundleno = 2 (0x2), region = 65 }

// kernel: calcium_vqvae_forward.26
= control target key start
LH: loop header
LB: loop body
LE: loop exit
PB: predicated region body
PF: predicated region fallthrough
CT: control target
= control target key end

     0   :  { %s559_s12 = smov 0   ;;  %s561_s13 = smov 0   ;;  %s749_s0 = inlined_call_operand.vmem [shape: f32[2,1,18,128], index: 0, kind: input, shape index: {}]   ;;  %s750_s1 = inlined_call_operand.vmem [shape: f32[3,128,128], index: 1, kind: input, shape index: {}]   ;;  %s751_s2 = inlined_call_operand.vmem [shape: f32[1,128], index: 2, kind: input, shape index: {}]   ;;  %s752_s3 = inlined_call_operand.vmem [shape: f32[2,16,128], index: 3, kind: output, shape index: {}]  }
   0x1   :  { %s563_s14 = smov 0  }
   0x2 LB: > { %s25_s15 = sadd.s32 1, %s533_s13  ;;  %p430_p0 = scmp.ge.s32.totalorder %s537_s14, 1  ;;  %s537_s14 = sphi %s563_s14, %s13_s14   ;;  %s533_s13 = sphi %s561_s13, %s754_s13   ;;  %s529_s12 = sphi %s559_s12, %s753_s12  }
   0x3   : > { %p27_p1 = scmp.ge.s32.totalorder %s25_s15, 2  ;;  %p151_p2 = scmp.lt.s32.totalorder %s537_s14, 3 }
   0x5   : > { %s756_s15 = smov (%p27_p1, %s25_s15), 0  ;;  %p152_p3 = pnand %p430_p0, %p151_p2 }
   0x6   : > { %p179_p4 = scmp.lt.s32.totalorder (!%p152_p3), %s529_s12, 1 }
   0x7   : > { %155 = sbr.rel (%p152_p3) target bundleno = 191 (0xbf), region = 32 }
   0xc   : > { %v469_v0 = vld [vmem:[%s750_s1 + $0x178] sm:$0xff]  ;;  %v468_v1 = vld [vmem:[%s750_s1 + $0x170] sm:$0xff]  ;;  %v467_v5 = vld [vmem:[%s750_s1 + $0x168] sm:$0xff]  ;;  %s758_s12 = smov (!%p179_p4, %s529_s12), 1 }
   0xd   : > { %v451_v2 = vld [vmem:[%s750_s1 + $0xf8] sm:$0xff]  ;;  %302 = vmatpush.msra.mxu2 %v469_v0  ;;  %v450_v4 = vld [vmem:[%s750_s1 + $0xf0] sm:$0xff]  ;;  %v449_v7 = vld [vmem:[%s750_s1 + $0xe8] sm:$0xff]  ;;  %s489_s23 = smul.u32 24, %s758_s12  ;;  %s472_s26 = sshll.u32 %s758_s12, 4 }
   0xe   : > { %235 = vmatpush.msra.mxu0 %v451_v2  ;;  %v213_v3 = vld [vmem:[%s750_s1 + $0x78] sm:$0xff]  ;;  %473 = vmatpush.msra.mxu3 %v451_v2  ;;  %v212_v6 = vld [vmem:[%s750_s1 + $0x70] sm:$0xff]  ;;  %v211_v8 = vld [vmem:[%s750_s1 + $0x68] sm:$0xff]  ;;  %s192_s29 = scalar_lea.vmem %s752_s3, %s472_s26 }
   0xf   : > { %258 = vmatpush.msra.mxu1 %v213_v3  ;;  %303 = vmatpush.msra.mxu2 %v468_v1  ;;  %v466_v9 = vld [vmem:[%s750_s1 + $0x160] sm:$0xff]  ;;  %v465_v12 = vld [vmem:[%s750_s1 + $0x158] sm:$0xff]  ;;  %v464_v15 = vld [vmem:[%s750_s1 + $0x150] sm:$0xff]  ;;  %s183_s9 = scalar_lea.vmem %s749_s0, %s489_s23 }
  0x10   : > { %236 = vmatpush.msra.mxu0 %v450_v4  ;;  %474 = vmatpush.msra.mxu3 %v450_v4  ;;  %v448_v10 = vld [vmem:[%s750_s1 + $0xe0] sm:$0xff]  ;;  %v447_v13 = vld [vmem:[%s750_s1 + $0xd8] sm:$0xff]  ;;  %v446_v16 = vld [vmem:[%s750_s1 + $0xd0] sm:$0xff] }
  0x11   : > { %259 = vmatpush.msra.mxu1 %v212_v6  ;;  %304 = vmatpush.msra.mxu2 %v467_v5  ;;  %v210_v11 = vld [vmem:[%s750_s1 + $0x60] sm:$0xff]  ;;  %v209_v14 = vld [vmem:[%s750_s1 + $0x58] sm:$0xff]  ;;  %v208_v17 = vld [vmem:[%s750_s1 + $0x50] sm:$0xff] }
  0x12   : > { %237 = vmatpush.msra.mxu0 %v449_v7  ;;  %475 = vmatpush.msra.mxu3 %v449_v7  ;;  %v463_v18 = vld [vmem:[%s750_s1 + $0x148] sm:$0xff]  ;;  %v462_v21 = vld [vmem:[%s750_s1 + $0x140] sm:$0xff]  ;;  %v461_v24 = vld [vmem:[%s750_s1 + $0x138] sm:$0xff] }
  0x13   : > { %260 = vmatpush.msra.mxu1 %v211_v8  ;;  %305 = vmatpush.msra.mxu2 %v466_v9  ;;  %v445_v19 = vld [vmem:[%s750_s1 + $0xc8] sm:$0xff]  ;;  %v444_v22 = vld [vmem:[%s750_s1 + $0xc0] sm:$0xff]  ;;  %v443_v25 = vld [vmem:[%s750_s1 + $0xb8] sm:$0xff] }
  0x14   : > { %238 = vmatpush.msra.mxu0 %v448_v10  ;;  %476 = vmatpush.msra.mxu3 %v448_v10  ;;  %v207_v20 = vld [vmem:[%s750_s1 + $0x48] sm:$0xff]  ;;  %v206_v23 = vld [vmem:[%s750_s1 + $0x40] sm:$0xff]  ;;  %v205_v26 = vld [vmem:[%s750_s1 + $0x38] sm:$0xff] }
  0x15   : > { %261 = vmatpush.msra.mxu1 %v210_v11  ;;  %306 = vmatpush.msra.mxu2 %v465_v12  ;;  %v460_v27 = vld [vmem:[%s750_s1 + $0x130] sm:$0xff]  ;;  %v459_v30 = vld [vmem:[%s750_s1 + $0x128] sm:$0xff]  ;;  %v458_v33 = vld [vmem:[%s750_s1 + $0x120] sm:$0xff] }
  0x16   : > { %239 = vmatpush.msra.mxu0 %v447_v13  ;;  %477 = vmatpush.msra.mxu3 %v447_v13  ;;  %v442_v28 = vld [vmem:[%s750_s1 + $0xb0] sm:$0xff]  ;;  %v441_v31 = vld [vmem:[%s750_s1 + $0xa8] sm:$0xff]  ;;  %v440_v34 = vld [vmem:[%s750_s1 + $0xa0] sm:$0xff] }
  0x17   : > { %262 = vmatpush.msra.mxu1 %v209_v14  ;;  %307 = vmatpush.msra.mxu2 %v464_v15  ;;  %v204_v29 = vld [vmem:[%s750_s1 + $0x30] sm:$0xff]  ;;  %v203_v32 = vld [vmem:[%s750_s1 + $0x28] sm:$0xff]  ;;  %v202_v35 = vld [vmem:[%s750_s1 + $0x20] sm:$0xff] }
  0x18   : > { %240 = vmatpush.msra.mxu0 %v446_v16  ;;  %478 = vmatpush.msra.mxu3 %v446_v16  ;;  %v457_v36 = vld [vmem:[%s750_s1 + $0x118] sm:$0xff]  ;;  %v456_v39 = vld [vmem:[%s750_s1 + $0x110] sm:$0xff]  ;;  %v455_v42 = vld [vmem:[%s750_s1 + $0x108] sm:$0xff] }
  0x19   : > { %263 = vmatpush.msra.mxu1 %v208_v17  ;;  %308 = vmatpush.msra.mxu2 %v463_v18  ;;  %v439_v37 = vld [vmem:[%s750_s1 + $0x98] sm:$0xff]  ;;  %v438_v40 = vld [vmem:[%s750_s1 + $0x90] sm:$0xff]  ;;  %v437_v43 = vld [vmem:[%s750_s1 + $0x88] sm:$0xff] }
  0x1a   : > { %241 = vmatpush.msra.mxu0 %v445_v19  ;;  %479 = vmatpush.msra.mxu3 %v445_v19  ;;  %v201_v38 = vld [vmem:[%s750_s1 + $0x18] sm:$0xff]  ;;  %v200_v41 = vld [vmem:[%s750_s1 + $0x10] sm:$0xff]  ;;  %v199_v44 = vld [vmem:[%s750_s1 + $0x8] sm:$0xff] }
  0x1b   : > { %264 = vmatpush.msra.mxu1 %v207_v20  ;;  %309 = vmatpush.msra.mxu2 %v462_v21  ;;  %v454_v45 = vld [vmem:[%s750_s1 + $0x100] sm:$0xff]  ;;  %v435_v51 = vld [vmem:[%s183_s9 + $0x9] sm:$0xff] }
  0x1c   : > { %242 = vmatpush.msra.mxu0 %v444_v22  ;;  %480 = vmatpush.msra.mxu3 %v444_v22  ;;  %v436_v46 = vld [vmem:[%s750_s1 + $0x80] sm:$0xff]  ;;  %v453_v52 = vld [vmem:[%s183_s9 + $0xa] sm:$0xff] }
  0x1d   : > { %265 = vmatpush.msra.mxu1 %v206_v23  ;;  %310 = vmatpush.msra.mxu2 %v461_v24  ;;  %v452_v47 = vld [vmem:[%s183_s9 + $0x2] sm:$0xff]  ;;  %v514_v57 = vld [vmem:[%s751_s2] ss:$0 sm:$0xff] }
  0x1e   : > { %243 = vmatpush.msra.mxu0 %v443_v25  ;;  %481 = vmatpush.msra.mxu3 %v443_v25  ;;  %v198_v48 = vld [vmem:[%s750_s1] sm:$0xff]  ;;  %v197_v53 = vld [vmem:[%s183_s9 + $0x8] sm:$0xff] }
  0x1f   : > { %266 = vmatpush.msra.mxu1 %v205_v26  ;;  %311 = vmatpush.msra.mxu2 %v460_v27  ;;  %v434_v49 = vld [vmem:[%s183_s9 + $0x1] sm:$0xff] }
  0x20   : > { %244 = vmatpush.msra.mxu0 %v442_v28  ;;  %482 = vmatpush.msra.mxu3 %v442_v28  ;;  %v196_v50 = vld [vmem:[%s183_s9] sm:$0xff] }
  0x21   : > { %267 = vmatpush.msra.mxu1 %v204_v29  ;;  %312 = vmatpush.msra.mxu2 %v459_v30 }
  0x22   : > { %245 = vmatpush.msra.mxu0 %v441_v31  ;;  %483 = vmatpush.msra.mxu3 %v441_v31 }
  0x23   : > { %268 = vmatpush.msra.mxu1 %v203_v32  ;;  %313 = vmatpush.msra.mxu2 %v458_v33 }
  0x24   : > { %246 = vmatpush.msra.mxu0 %v440_v34  ;;  %484 = vmatpush.msra.mxu3 %v440_v34 }
  0x25   : > { %269 = vmatpush.msra.mxu1 %v202_v35  ;;  %314 = vmatpush.msra.mxu2 %v457_v36 }
  0x26   : > { %247 = vmatpush.msra.mxu0 %v439_v37  ;;  %485 = vmatpush.msra.mxu3 %v439_v37 }
  0x27   : > { %270 = vmatpush.msra.mxu1 %v201_v38  ;;  %315 = vmatpush.msra.mxu2 %v456_v39 }
  0x28   : > { %248 = vmatpush.msra.mxu0 %v438_v40  ;;  %486 = vmatpush.msra.mxu3 %v438_v40 }
  0x29   : > { %271 = vmatpush.msra.mxu1 %v200_v41  ;;  %316 = vmatpush.msra.mxu2 %v455_v42 }
  0x2a   : > { %249 = vmatpush.msra.mxu0 %v437_v43  ;;  %487 = vmatpush.msra.mxu3 %v437_v43 }
  0x2b   : > { %272 = vmatpush.msra.mxu1 %v199_v44  ;;  %317 = vmatpush.msra.mxu2 %v454_v45 }
  0x2c   : > { %250 = vmatpush.msra.mxu0 %v436_v46  ;;  %318 = vmatmul.f32.vlgmr.msra.gmra.mxu2 %v452_v47 }
  0x2d   : > { %273 = vmatpush.msra.mxu1 %v198_v48  ;;  %251 = vmatmul.f32.vlgmr.msra.gmra.mxu0 %v434_v49 }
  0x2e   : > { %274 = vmatmul.f32.vlgmr.msra.gmra.mxu1 %v196_v50  ;;  %488 = vmatpush.msra.mxu3 %v436_v46 }
  0x2f   : > { %254 = vmatmul.f32.vlgmr.msra.gmra.mxu3 %v435_v51 }
  0x34   : > { %321 = vmatmul.f32.gmra.mxu2 %v453_v52 }
  0x36   : > { %277 = vmatmul.f32.gmra.mxu1 %v197_v53 }
  0xaa   : > { %v252_v54 = vpop.f32.mrf.mxu0 }
  0xab   : > { %v275_v55 = vpop.f32.mrf.mxu1 }
  0xac   : > { %v276_v56 = vadd.f32 %v275_v55, %v252_v54 }
  0xaf   : > { %v319_v58 = vpop.f32.mrf.mxu2 }
  0xb0   : > { %v325_v59 = vadd.f32 %v319_v58, %v276_v56 }
  0xb2   : > { %v331_v60 = vadd.f32 %v514_v57, %v325_v59  ;;  %v255_v61 = vpop.f32.mrf.mxu3 }
  0xb3   : > { %v278_v62 = vpop.f32.mrf.mxu1 }
  0xb4   : > { %v333_v63 = vmax.f32 %v331_v60, 0.0  ;;  %v279_v0 = vadd.f32 %v278_v62, %v255_v61 }
  0xb6   : > { %335 = vst [vmem:[%s192_s29] sm:$0xff] %v333_v63 }
  0xb7   : > { %v322_v1 = vpop.f32.mrf.mxu2 }
  0xb8   : > { %v326_v2 = vadd.f32 %v322_v1, %v279_v0 }
  0xba   : > { %v332_v3 = vadd.f32 %v514_v57, %v326_v2 }
  0xbc   : > { %v334_v4 = vmax.f32 %v332_v3, 0.0 }
  0xbe   : > { %336 = vst [vmem:[%s192_s29 + $0x8] sm:$0xff] %v334_v4 }
  0xbf PF: > { %s13_s14 = sadd.s32 1, %s537_s14   ;;  %s753_s12 = smov %s533_s13 }
  0xc0   : > { %p10_p5 = scmp.ge.s32.totalorder %s13_s14, 4   ;;  %s754_s13 = smov %s756_s15 }
  0xc2   :  { %12 = sbr.rel (!%p10_p5) target bundleno = 2 (0x2), region = 67 }

// kernel: calcium_vqvae_forward.28
= control target key start
LH: loop header
LB: loop body
LE: loop exit
PB: predicated region body
PF: predicated region fallthrough
CT: control target
= control target key end

     0   :  { %s907_s12 = smov 0   ;;  %s909_s13 = smov 0   ;;  %s1319_s0 = inlined_call_operand.vmem [shape: f32[2,1,38,128], index: 0, kind: input, shape index: {}]   ;;  %s1320_s1 = inlined_call_operand.vmem [shape: f32[7,128,128], index: 1, kind: input, shape index: {}]   ;;  %s1321_s2 = inlined_call_operand.vmem [shape: f32[1,128], index: 2, kind: input, shape index: {}]   ;;  %s1322_s3 = inlined_call_operand.vmem [shape: f32[2,32,128], index: 3, kind: output, shape index: {}]  }
   0x1   :  { %s911_s14 = smov 0  }
   0x2 LB: > { %s25_s15 = sadd.s32 1, %s881_s13  ;;  %p694_p0 = scmp.ge.s32.totalorder %s885_s14, 1  ;;  %s885_s14 = sphi %s911_s14, %s13_s14   ;;  %s881_s13 = sphi %s909_s13, %s1324_s13   ;;  %s877_s12 = sphi %s907_s12, %s1323_s12  }
   0x3   : > { %p27_p1 = scmp.ge.s32.totalorder %s25_s15, 2  ;;  %p151_p2 = scmp.lt.s32.totalorder %s885_s14, 3 }
   0x5   : > { %s1326_s15 = smov (%p27_p1, %s25_s15), 0  ;;  %p152_p3 = pnand %p694_p0, %p151_p2 }
   0x6   : > { %p179_p4 = scmp.lt.s32.totalorder (!%p152_p3), %s877_s12, 1 }
   0x7   : > { %155 = sbr.rel (%p152_p3) target bundleno = 248 (0xf8), region = 32 }
   0xc   : > { %v717_v0 = vld [vmem:[%s1320_s1 + $0xf8] sm:$0xff]  ;;  %v716_v4 = vld [vmem:[%s1320_s1 + $0xf0] sm:$0xff]  ;;  %v715_v8 = vld [vmem:[%s1320_s1 + $0xe8] sm:$0xff]  ;;  %s1328_s12 = smov (!%p179_p4, %s877_s12), 1 }
   0xd   : > { %v215_v1 = vld [vmem:[%s1320_s1 + $0x78] sm:$0xff]  ;;  %239 = vmatpush.msra.mxu0 %v717_v0  ;;  %v214_v5 = vld [vmem:[%s1320_s1 + $0x70] sm:$0xff]  ;;  %v213_v9 = vld [vmem:[%s1320_s1 + $0x68] sm:$0xff]  ;;  %s837_s28 = smul.u32 40, %s1328_s12 }
   0xe   : > { %v737_v2 = vld [vmem:[%s1320_s1 + $0x178] sm:$0xff]  ;;  %268 = vmatpush.msra.mxu1 %v215_v1  ;;  %v736_v6 = vld [vmem:[%s1320_s1 + $0x170] sm:$0xff]  ;;  %v735_v10 = vld [vmem:[%s1320_s1 + $0x168] sm:$0xff] }
   0xf   : > { %v757_v3 = vld [vmem:[%s1320_s1 + $0x1f8] sm:$0xff]  ;;  %320 = vmatpush.msra.mxu2 %v737_v2  ;;  %v756_v7 = vld [vmem:[%s1320_s1 + $0x1f0] sm:$0xff]  ;;  %240 = vmatpush.msra.mxu0 %v716_v4  ;;  %v755_v11 = vld [vmem:[%s1320_s1 + $0x1e8] sm:$0xff]  ;;  %s1117_s24 = scalar_lea.vmem %s1319_s0, %s837_s28 }
  0x10   : > { %376 = vmatpush.msra.mxu3 %v757_v3  ;;  %269 = vmatpush.msra.mxu1 %v214_v5  ;;  %v714_v12 = vld [vmem:[%s1320_s1 + $0xe0] sm:$0xff]  ;;  %v713_v16 = vld [vmem:[%s1320_s1 + $0xd8] sm:$0xff]  ;;  %v712_v20 = vld [vmem:[%s1320_s1 + $0xd0] sm:$0xff] }
  0x11   : > { %321 = vmatpush.msra.mxu2 %v736_v6  ;;  %v212_v13 = vld [vmem:[%s1320_s1 + $0x60] sm:$0xff]  ;;  %241 = vmatpush.msra.mxu0 %v715_v8  ;;  %v211_v17 = vld [vmem:[%s1320_s1 + $0x58] sm:$0xff]  ;;  %v210_v21 = vld [vmem:[%s1320_s1 + $0x50] sm:$0xff] }
  0x12   : > { %377 = vmatpush.msra.mxu3 %v756_v7  ;;  %270 = vmatpush.msra.mxu1 %v213_v9  ;;  %v734_v14 = vld [vmem:[%s1320_s1 + $0x160] sm:$0xff]  ;;  %v733_v18 = vld [vmem:[%s1320_s1 + $0x158] sm:$0xff]  ;;  %v732_v22 = vld [vmem:[%s1320_s1 + $0x150] sm:$0xff] }
  0x13   : > { %v754_v15 = vld [vmem:[%s1320_s1 + $0x1e0] sm:$0xff]  ;;  %322 = vmatpush.msra.mxu2 %v735_v10  ;;  %242 = vmatpush.msra.mxu0 %v714_v12  ;;  %v753_v19 = vld [vmem:[%s1320_s1 + $0x1d8] sm:$0xff]  ;;  %v752_v23 = vld [vmem:[%s1320_s1 + $0x1d0] sm:$0xff] }
  0x14   : > { %378 = vmatpush.msra.mxu3 %v755_v11  ;;  %271 = vmatpush.msra.mxu1 %v212_v13  ;;  %v711_v24 = vld [vmem:[%s1320_s1 + $0xc8] sm:$0xff]  ;;  %v710_v28 = vld [vmem:[%s1320_s1 + $0xc0] sm:$0xff]  ;;  %v709_v32 = vld [vmem:[%s1320_s1 + $0xb8] sm:$0xff] }
  0x15   : > { %323 = vmatpush.msra.mxu2 %v734_v14  ;;  %243 = vmatpush.msra.mxu0 %v713_v16  ;;  %v209_v25 = vld [vmem:[%s1320_s1 + $0x48] sm:$0xff]  ;;  %v208_v29 = vld [vmem:[%s1320_s1 + $0x40] sm:$0xff]  ;;  %v207_v33 = vld [vmem:[%s1320_s1 + $0x38] sm:$0xff] }
  0x16   : > { %379 = vmatpush.msra.mxu3 %v754_v15  ;;  %272 = vmatpush.msra.mxu1 %v211_v17  ;;  %v731_v26 = vld [vmem:[%s1320_s1 + $0x148] sm:$0xff]  ;;  %v730_v30 = vld [vmem:[%s1320_s1 + $0x140] sm:$0xff]  ;;  %v729_v34 = vld [vmem:[%s1320_s1 + $0x138] sm:$0xff] }
  0x17   : > { %324 = vmatpush.msra.mxu2 %v733_v18  ;;  %244 = vmatpush.msra.mxu0 %v712_v20  ;;  %v751_v27 = vld [vmem:[%s1320_s1 + $0x1c8] sm:$0xff]  ;;  %v750_v31 = vld [vmem:[%s1320_s1 + $0x1c0] sm:$0xff]  ;;  %v749_v35 = vld [vmem:[%s1320_s1 + $0x1b8] sm:$0xff] }
  0x18   : > { %380 = vmatpush.msra.mxu3 %v753_v19  ;;  %273 = vmatpush.msra.mxu1 %v210_v21  ;;  %v708_v36 = vld [vmem:[%s1320_s1 + $0xb0] sm:$0xff]  ;;  %v707_v40 = vld [vmem:[%s1320_s1 + $0xa8] sm:$0xff]  ;;  %v706_v44 = vld [vmem:[%s1320_s1 + $0xa0] sm:$0xff] }
  0x19   : > { %325 = vmatpush.msra.mxu2 %v732_v22  ;;  %245 = vmatpush.msra.mxu0 %v711_v24  ;;  %v206_v37 = vld [vmem:[%s1320_s1 + $0x30] sm:$0xff]  ;;  %v205_v41 = vld [vmem:[%s1320_s1 + $0x28] sm:$0xff]  ;;  %v204_v45 = vld [vmem:[%s1320_s1 + $0x20] sm:$0xff] }
  0x1a   : > { %381 = vmatpush.msra.mxu3 %v752_v23  ;;  %274 = vmatpush.msra.mxu1 %v209_v25  ;;  %v728_v38 = vld [vmem:[%s1320_s1 + $0x130] sm:$0xff]  ;;  %v727_v42 = vld [vmem:[%s1320_s1 + $0x128] sm:$0xff]  ;;  %v726_v46 = vld [vmem:[%s1320_s1 + $0x120] sm:$0xff] }
  0x1b   : > { %326 = vmatpush.msra.mxu2 %v731_v26  ;;  %246 = vmatpush.msra.mxu0 %v710_v28  ;;  %v748_v39 = vld [vmem:[%s1320_s1 + $0x1b0] sm:$0xff]  ;;  %v747_v43 = vld [vmem:[%s1320_s1 + $0x1a8] sm:$0xff]  ;;  %v746_v47 = vld [vmem:[%s1320_s1 + $0x1a0] sm:$0xff] }
  0x1c   : > { %382 = vmatpush.msra.mxu3 %v751_v27  ;;  %275 = vmatpush.msra.mxu1 %v208_v29  ;;  %v705_v48 = vld [vmem:[%s1320_s1 + $0x98] sm:$0xff]  ;;  %v704_v52 = vld [vmem:[%s1320_s1 + $0x90] sm:$0xff]  ;;  %v703_v56 = vld [vmem:[%s1320_s1 + $0x88] sm:$0xff] }
  0x1d   : > { %327 = vmatpush.msra.mxu2 %v730_v30  ;;  %247 = vmatpush.msra.mxu0 %v709_v32  ;;  %v203_v49 = vld [vmem:[%s1320_s1 + $0x18] sm:$0xff]  ;;  %v202_v53 = vld [vmem:[%s1320_s1 + $0x10] sm:$0xff]  ;;  %v201_v57 = vld [vmem:[%s1320_s1 + $0x8] sm:$0xff] }
  0x1e   : > { %383 = vmatpush.msra.mxu3 %v750_v31  ;;  %276 = vmatpush.msra.mxu1 %v207_v33  ;;  %v725_v50 = vld [vmem:[%s1320_s1 + $0x118] sm:$0xff]  ;;  %v724_v54 = vld [vmem:[%s1320_s1 + $0x110] sm:$0xff]  ;;  %v723_v58 = vld [vmem:[%s1320_s1 + $0x108] sm:$0xff] }
  0x1f   : > { %328 = vmatpush.msra.mxu2 %v729_v34  ;;  %248 = vmatpush.msra.mxu0 %v708_v36  ;;  %v745_v51 = vld [vmem:[%s1320_s1 + $0x198] sm:$0xff]  ;;  %v744_v55 = vld [vmem:[%s1320_s1 + $0x190] sm:$0xff]  ;;  %v743_v59 = vld [vmem:[%s1320_s1 + $0x188] sm:$0xff] }
  0x20   : > { %384 = vmatpush.msra.mxu3 %v749_v35  ;;  %277 = vmatpush.msra.mxu1 %v206_v37  ;;  %v702_v60 = vld [vmem:[%s1320_s1 + $0x80] sm:$0xff]  ;;  %v817_v4 = vld [vmem:[%s1320_s1 + $0x378] sm:$0xff]  ;;  %v816_v7 = vld [vmem:[%s1320_s1 + $0x370] sm:$0xff] }
  0x21   : > { %329 = vmatpush.msra.mxu2 %v728_v38  ;;  %249 = vmatpush.msra.mxu0 %v707_v40  ;;  %v200_v61 = vld [vmem:[%s1320_s1] sm:$0xff]  ;;  %v777_v5 = vld [vmem:[%s1320_s1 + $0x278] sm:$0xff]  ;;  %v776_v8 = vld [vmem:[%s1320_s1 + $0x270] sm:$0xff] }
  0x22   : > { %385 = vmatpush.msra.mxu3 %v748_v39  ;;  %278 = vmatpush.msra.mxu1 %v205_v41  ;;  %v722_v62 = vld [vmem:[%s1320_s1 + $0x100] sm:$0xff]  ;;  %v797_v6 = vld [vmem:[%s1320_s1 + $0x2f8] sm:$0xff]  ;;  %v796_v9 = vld [vmem:[%s1320_s1 + $0x2f0] sm:$0xff] }
  0x23   : > { %330 = vmatpush.msra.mxu2 %v727_v42  ;;  %250 = vmatpush.msra.mxu0 %v706_v44  ;;  %v742_v63 = vld [vmem:[%s1320_s1 + $0x180] sm:$0xff]  ;;  %v815_v10 = vld [vmem:[%s1320_s1 + $0x368] sm:$0xff]  ;;  %v813_v20 = vld [vmem:[%s1320_s1 + $0x358] sm:$0xff] }
  0x24   : > { %386 = vmatpush.msra.mxu3 %v747_v43  ;;  %279 = vmatpush.msra.mxu1 %v204_v45  ;;  %v698_v0 = vld [vmem:[%s1117_s24 + $0x1] sm:$0xff]  ;;  %v699_v16 = vld [vmem:[%s1117_s24 + $0x9] sm:$0xff]  ;;  %v773_v21 = vld [vmem:[%s1320_s1 + $0x258] sm:$0xff] }
  0x25   : > { %331 = vmatpush.msra.mxu2 %v726_v46  ;;  %251 = vmatpush.msra.mxu0 %v705_v48  ;;  %v196_v1 = vld [vmem:[%s1117_s24] sm:$0xff]  ;;  %v775_v11 = vld [vmem:[%s1320_s1 + $0x268] sm:$0xff]  ;;  %v793_v22 = vld [vmem:[%s1320_s1 + $0x2d8] sm:$0xff] }
  0x26   : > { %387 = vmatpush.msra.mxu3 %v746_v47  ;;  %280 = vmatpush.msra.mxu1 %v203_v49  ;;  %v718_v2 = vld [vmem:[%s1117_s24 + $0x2] sm:$0xff]  ;;  %v719_v18 = vld [vmem:[%s1117_s24 + $0xa] sm:$0xff]  ;;  %v720_v34 = vld [vmem:[%s1117_s24 + $0x12] sm:$0xff] }
  0x27   : > { %332 = vmatpush.msra.mxu2 %v725_v50  ;;  %252 = vmatpush.msra.mxu0 %v704_v52  ;;  %v738_v3 = vld [vmem:[%s1117_s24 + $0x3] sm:$0xff]  ;;  %v739_v19 = vld [vmem:[%s1117_s24 + $0xb] sm:$0xff]  ;;  %v740_v35 = vld [vmem:[%s1117_s24 + $0x13] sm:$0xff] }
  0x28   : > { %388 = vmatpush.msra.mxu3 %v745_v51  ;;  %281 = vmatpush.msra.mxu1 %v202_v53  ;;  %v795_v12 = vld [vmem:[%s1320_s1 + $0x2e8] sm:$0xff]  ;;  %v814_v13 = vld [vmem:[%s1320_s1 + $0x360] sm:$0xff]  ;;  %v812_v23 = vld [vmem:[%s1320_s1 + $0x350] sm:$0xff] }
  0x29   : > { %333 = vmatpush.msra.mxu2 %v724_v54  ;;  %253 = vmatpush.msra.mxu0 %v703_v56  ;;  %v774_v14 = vld [vmem:[%s1320_s1 + $0x260] sm:$0xff]  ;;  %v197_v17 = vld [vmem:[%s1117_s24 + $0x8] sm:$0xff]  ;;  %v772_v24 = vld [vmem:[%s1320_s1 + $0x250] sm:$0xff] }
  0x2a   : > { %389 = vmatpush.msra.mxu3 %v744_v55  ;;  %282 = vmatpush.msra.mxu1 %v201_v57  ;;  %v794_v15 = vld [vmem:[%s1320_s1 + $0x2e0] sm:$0xff]  ;;  %v792_v25 = vld [vmem:[%s1320_s1 + $0x2d0] sm:$0xff]  ;;  %v811_v26 = vld [vmem:[%s1320_s1 + $0x348] sm:$0xff] }
  0x2b   : > { %334 = vmatpush.msra.mxu2 %v723_v58  ;;  %254 = vmatpush.msra.mxu0 %v702_v60  ;;  %v771_v27 = vld [vmem:[%s1320_s1 + $0x248] sm:$0xff]  ;;  %v810_v29 = vld [vmem:[%s1320_s1 + $0x340] sm:$0xff]  ;;  %v700_v32 = vld [vmem:[%s1117_s24 + $0x11] sm:$0xff] }
  0x2c   : > { %390 = vmatpush.msra.mxu3 %v743_v59  ;;  %283 = vmatpush.msra.mxu1 %v200_v61  ;;  %v791_v28 = vld [vmem:[%s1320_s1 + $0x2c8] sm:$0xff]  ;;  %v770_v30 = vld [vmem:[%s1320_s1 + $0x240] sm:$0xff]  ;;  %v198_v33 = vld [vmem:[%s1117_s24 + $0x10] sm:$0xff] }
  0x2d   : > { %335 = vmatpush.msra.mxu2 %v722_v62  ;;  %255 = vmatmul.f32.vlgmr.msra.gmra.mxu0 %v698_v0  ;;  %v790_v31 = vld [vmem:[%s1320_s1 + $0x2c0] sm:$0xff]  ;;  %v809_v36 = vld [vmem:[%s1320_s1 + $0x338] sm:$0xff]  ;;  %v808_v39 = vld [vmem:[%s1320_s1 + $0x330] sm:$0xff] }
  0x2e   : > { %391 = vmatpush.msra.mxu3 %v742_v63  ;;  %284 = vmatmul.f32.vlgmr.msra.gmra.mxu1 %v196_v1  ;;  %v769_v37 = vld [vmem:[%s1320_s1 + $0x238] sm:$0xff]  ;;  %v768_v40 = vld [vmem:[%s1320_s1 + $0x230] sm:$0xff]  ;;  %v807_v42 = vld [vmem:[%s1320_s1 + $0x328] sm:$0xff] }
  0x2f   : > { %336 = vmatmul.f32.vlgmr.msra.gmra.mxu2 %v718_v2  ;;  %392 = vmatmul.f32.vlgmr.msra.gmra.mxu3 %v738_v3  ;;  %v789_v38 = vld [vmem:[%s1320_s1 + $0x2b8] sm:$0xff]  ;;  %v788_v41 = vld [vmem:[%s1320_s1 + $0x2b0] sm:$0xff]  ;;  %v767_v43 = vld [vmem:[%s1320_s1 + $0x228] sm:$0xff] }
  0x30   : > { %544 = vmatpush.msrb.mxu2 %v817_v4  ;;  %432 = vmatpush.msrb.mxu0 %v777_v5  ;;  %v787_v44 = vld [vmem:[%s1320_s1 + $0x2a8] sm:$0xff]  ;;  %v806_v45 = vld [vmem:[%s1320_s1 + $0x320] sm:$0xff]  ;;  %v199_v49 = vld [vmem:[%s1117_s24 + $0x18] sm:$0xff] }
  0x31   : > { %821 = vmatpush.msrb.mxu3 %v777_v5  ;;  %488 = vmatpush.msrb.mxu1 %v797_v6  ;;  %v766_v46 = vld [vmem:[%s1320_s1 + $0x220] sm:$0xff]  ;;  %v805_v52 = vld [vmem:[%s1320_s1 + $0x318] sm:$0xff]  ;;  %v804_v55 = vld [vmem:[%s1320_s1 + $0x310] sm:$0xff] }
  0x32   : > { %545 = vmatpush.msrb.mxu2 %v816_v7  ;;  %433 = vmatpush.msrb.mxu0 %v776_v8  ;;  %v786_v47 = vld [vmem:[%s1320_s1 + $0x2a0] sm:$0xff]  ;;  %v765_v53 = vld [vmem:[%s1320_s1 + $0x218] sm:$0xff]  ;;  %v764_v56 = vld [vmem:[%s1320_s1 + $0x210] sm:$0xff] }
  0x33   : > { %822 = vmatpush.msrb.mxu3 %v776_v8  ;;  %489 = vmatpush.msrb.mxu1 %v796_v9  ;;  %v701_v48 = vld [vmem:[%s1117_s24 + $0x19] sm:$0xff]  ;;  %v784_v57 = vld [vmem:[%s1320_s1 + $0x290] sm:$0xff]  ;;  %v803_v58 = vld [vmem:[%s1320_s1 + $0x308] sm:$0xff] }
  0x34   : > { %546 = vmatpush.msrb.mxu2 %v815_v10  ;;  %434 = vmatpush.msrb.mxu0 %v775_v11  ;;  %v721_v50 = vld [vmem:[%s1117_s24 + $0x1a] sm:$0xff]  ;;  %v763_v59 = vld [vmem:[%s1320_s1 + $0x208] sm:$0xff] }
  0x35   : > { %823 = vmatpush.msrb.mxu3 %v775_v11  ;;  %490 = vmatpush.msrb.mxu1 %v795_v12  ;;  %v741_v51 = vld [vmem:[%s1117_s24 + $0x1b] sm:$0xff]  ;;  %v783_v60 = vld [vmem:[%s1320_s1 + $0x288] sm:$0xff] }
  0x36   : > { %547 = vmatpush.msrb.mxu2 %v814_v13  ;;  %435 = vmatpush.msrb.mxu0 %v774_v14  ;;  %v785_v54 = vld [vmem:[%s1320_s1 + $0x298] sm:$0xff]  ;;  %v802_v61 = vld [vmem:[%s1320_s1 + $0x300] sm:$0xff]  ;;  %v759_v1 = vld [vmem:[%s1117_s24 + $0xc] sm:$0xff] }
  0x37   : > { %824 = vmatpush.msrb.mxu3 %v774_v14  ;;  %491 = vmatpush.msrb.mxu1 %v794_v15  ;;  %v762_v62 = vld [vmem:[%s1320_s1 + $0x200] sm:$0xff]  ;;  %v760_v4 = vld [vmem:[%s1117_s24 + $0x14] sm:$0xff] }
  0x38   : > { %258 = vmatmul.f32.gmra.mxu0 %v699_v16  ;;  %287 = vmatmul.f32.gmra.mxu1 %v197_v17  ;;  %v782_v63 = vld [vmem:[%s1320_s1 + $0x280] sm:$0xff]  ;;  %v779_v5 = vld [vmem:[%s1117_s24 + $0xd] sm:$0xff]  ;;  %v780_v8 = vld [vmem:[%s1117_s24 + $0x15] sm:$0xff] }
  0x39   : > { %339 = vmatmul.f32.gmra.mxu2 %v719_v18  ;;  %395 = vmatmul.f32.gmra.mxu3 %v739_v19  ;;  %v758_v0 = vld [vmem:[%s1117_s24 + $0x4] sm:$0xff]  ;;  %v799_v6 = vld [vmem:[%s1117_s24 + $0xe] sm:$0xff]  ;;  %v761_v7 = vld [vmem:[%s1117_s24 + $0x1c] sm:$0xff] }
  0x3a   : > { %548 = vmatpush.msrb.mxu2 %v813_v20  ;;  %436 = vmatpush.msrb.mxu0 %v773_v21  ;;  %v778_v2 = vld [vmem:[%s1117_s24 + $0x5] sm:$0xff]  ;;  %v800_v9 = vld [vmem:[%s1117_s24 + $0x16] sm:$0xff] }
  0x3b   : > { %825 = vmatpush.msrb.mxu3 %v773_v21  ;;  %492 = vmatpush.msrb.mxu1 %v793_v22  ;;  %v798_v3 = vld [vmem:[%s1117_s24 + $0x6] sm:$0xff]  ;;  %v781_v10 = vld [vmem:[%s1117_s24 + $0x1d] sm:$0xff] }
  0x3c   : > { %549 = vmatpush.msrb.mxu2 %v812_v23  ;;  %437 = vmatpush.msrb.mxu0 %v772_v24  ;;  %v801_v11 = vld [vmem:[%s1117_s24 + $0x1e] sm:$0xff]  ;;  %s820_s24 = sshll.u32 %s1328_s12, 5 }
  0x3d   : > { %826 = vmatpush.msrb.mxu3 %v772_v24  ;;  %493 = vmatpush.msrb.mxu1 %v792_v25  ;;  %s192_s22 = scalar_lea.vmem %s1322_s3, %s820_s24 }
  0x3e   : > { %550 = vmatpush.msrb.mxu2 %v811_v26  ;;  %438 = vmatpush.msrb.mxu0 %v771_v27 }
  0x3f   : > { %827 = vmatpush.msrb.mxu3 %v771_v27  ;;  %494 = vmatpush.msrb.mxu1 %v791_v28 }
  0x40   : > { %551 = vmatpush.msrb.mxu2 %v810_v29  ;;  %439 = vmatpush.msrb.mxu0 %v770_v30 }
  0x41   : > { %828 = vmatpush.msrb.mxu3 %v770_v30  ;;  %495 = vmatpush.msrb.mxu1 %v790_v31 }
  0x42   : > { %261 = vmatmul.f32.gmra.mxu0 %v700_v32  ;;  %290 = vmatmul.f32.gmra.mxu1 %v198_v33 }
  0x43   : > { %342 = vmatmul.f32.gmra.mxu2 %v720_v34  ;;  %398 = vmatmul.f32.gmra.mxu3 %v740_v35 }
  0x44   : > { %552 = vmatpush.msrb.mxu2 %v809_v36  ;;  %440 = vmatpush.msrb.mxu0 %v769_v37 }
  0x45   : > { %829 = vmatpush.msrb.mxu3 %v769_v37  ;;  %496 = vmatpush.msrb.mxu1 %v789_v38  ;;  %v862_v38 = vld [vmem:[%s1321_s2] ss:$0 sm:$0xff] }
  0x46   : > { %553 = vmatpush.msrb.mxu2 %v808_v39  ;;  %441 = vmatpush.msrb.mxu0 %v768_v40 }
  0x47   : > { %830 = vmatpush.msrb.mxu3 %v768_v40  ;;  %497 = vmatpush.msrb.mxu1 %v788_v41 }
  0x48   : > { %554 = vmatpush.msrb.mxu2 %v807_v42  ;;  %442 = vmatpush.msrb.mxu0 %v767_v43 }
  0x49   : > { %831 = vmatpush.msrb.mxu3 %v767_v43  ;;  %498 = vmatpush.msrb.mxu1 %v787_v44 }
  0x4a   : > { %555 = vmatpush.msrb.mxu2 %v806_v45  ;;  %443 = vmatpush.msrb.mxu0 %v766_v46 }
  0x4b   : > { %832 = vmatpush.msrb.mxu3 %v766_v46  ;;  %499 = vmatpush.msrb.mxu1 %v786_v47 }
  0x4c   : > { %264 = vmatmul.f32.gmra.mxu0 %v701_v48  ;;  %293 = vmatmul.f32.gmra.mxu1 %v199_v49 }
  0x4d   : > { %345 = vmatmul.f32.gmra.mxu2 %v721_v50  ;;  %401 = vmatmul.f32.gmra.mxu3 %v741_v51 }
  0x4e   : > { %556 = vmatpush.msrb.mxu2 %v805_v52  ;;  %444 = vmatpush.msrb.mxu0 %v765_v53 }
  0x4f   : > { %833 = vmatpush.msrb.mxu3 %v765_v53  ;;  %500 = vmatpush.msrb.mxu1 %v785_v54 }
  0x50   : > { %557 = vmatpush.msrb.mxu2 %v804_v55  ;;  %445 = vmatpush.msrb.mxu0 %v764_v56 }
  0x51   : > { %834 = vmatpush.msrb.mxu3 %v764_v56  ;;  %501 = vmatpush.msrb.mxu1 %v784_v57 }
  0x52   : > { %558 = vmatpush.msrb.mxu2 %v803_v58  ;;  %446 = vmatpush.msrb.mxu0 %v763_v59 }
  0x53   : > { %835 = vmatpush.msrb.mxu3 %v763_v59  ;;  %502 = vmatpush.msrb.mxu1 %v783_v60 }
  0x54   : > { %559 = vmatpush.msrb.mxu2 %v802_v61  ;;  %447 = vmatpush.msrb.mxu0 %v762_v62 }
  0x55   : > { %836 = vmatpush.msrb.mxu3 %v762_v62  ;;  %503 = vmatpush.msrb.mxu1 %v782_v63 }
  0x56   : > { %448 = vmatmul.f32.vlgmr.msrb.gmra.mxu0 %v758_v0  ;;  %451 = vmatmul.f32.vlgmr.msrb.gmra.mxu3 %v759_v1 }
  0x57   : > { %504 = vmatmul.f32.vlgmr.msrb.gmra.mxu1 %v778_v2  ;;  %560 = vmatmul.f32.vlgmr.msrb.gmra.mxu2 %v798_v3 }
  0x5e   : > { %454 = vmatmul.f32.gmra.mxu3 %v760_v4 }
  0x5f   : > { %507 = vmatmul.f32.gmra.mxu1 %v779_v5  ;;  %563 = vmatmul.f32.gmra.mxu2 %v799_v6 }
  0x66   : > { %457 = vmatmul.f32.gmra.mxu3 %v761_v7 }
  0x67   : > { %510 = vmatmul.f32.gmra.mxu1 %v780_v8  ;;  %566 = vmatmul.f32.gmra.mxu2 %v800_v9 }
  0x6f   : > { %513 = vmatmul.f32.gmra.mxu1 %v781_v10  ;;  %569 = vmatmul.f32.gmra.mxu2 %v801_v11 }
  0xaa   : > { %v256_v12 = vpop.f32.mrf.mxu0 }
  0xab   : > { %v285_v13 = vpop.f32.mrf.mxu1 }
  0xac   : > { %v286_v26 = vadd.f32 %v285_v13, %v256_v12 }
  0xb2   : > { %v337_v14 = vpop.f32.mrf.mxu2  ;;  %v393_v15 = vpop.f32.mrf.mxu3 }
  0xb3   : > { %v349_v27 = vadd.f32 %v337_v14, %v286_v26 }
  0xb5   : > { %v259_v16 = vpop.f32.mrf.mxu0  ;;  %v288_v17 = vpop.f32.mrf.mxu1  ;;  %v405_v30 = vadd.f32 %v393_v15, %v349_v27 }
  0xb6   : > { %v289_v31 = vadd.f32 %v288_v17, %v259_v16 }
  0xbc   : > { %v340_v18 = vpop.f32.mrf.mxu2  ;;  %v396_v19 = vpop.f32.mrf.mxu3 }
  0xbd   : > { %v350_v35 = vadd.f32 %v340_v18, %v289_v31 }
  0xbf   : > { %v262_v20 = vpop.f32.mrf.mxu0  ;;  %v291_v21 = vpop.f32.mrf.mxu1  ;;  %v406_v40 = vadd.f32 %v396_v19, %v350_v35 }
  0xc0   : > { %v292_v41 = vadd.f32 %v291_v21, %v262_v20 }
  0xc6   : > { %v343_v22 = vpop.f32.mrf.mxu2  ;;  %v399_v23 = vpop.f32.mrf.mxu3 }
  0xc7   : > { %v351_v46 = vadd.f32 %v343_v22, %v292_v41 }
  0xc9   : > { %v265_v24 = vpop.f32.mrf.mxu0  ;;  %v294_v25 = vpop.f32.mrf.mxu1  ;;  %v407_v50 = vadd.f32 %v399_v23, %v351_v46 }
  0xca   : > { %v295_v51 = vadd.f32 %v294_v25, %v265_v24 }
  0xd0   : > { %v346_v28 = vpop.f32.mrf.mxu2  ;;  %v402_v29 = vpop.f32.mrf.mxu3 }
  0xd1   : > { %v352_v56 = vadd.f32 %v346_v28, %v295_v51 }
  0xd3   : > { %v449_v32 = vpop.f32.mrf.mxu0  ;;  %v408_v60 = vadd.f32 %v402_v29, %v352_v56 }
  0xd4   : > { %v505_v33 = vpop.f32.mrf.mxu1  ;;  %v461_v34 = vadd.f32 %v449_v32, %v405_v30 }
  0xd6   : > { %v517_v36 = vadd.f32 %v505_v33, %v461_v34 }
  0xd9   : > { %v452_v37 = vpop.f32.mrf.mxu3 }
  0xda   : > { %v561_v39 = vpop.f32.mrf.mxu2  ;;  %v462_v44 = vadd.f32 %v452_v37, %v406_v40 }
  0xdb   : > { %v573_v42 = vadd.f32 %v561_v39, %v517_v36 }
  0xdc   : > { %v508_v43 = vpop.f32.mrf.mxu1 }
  0xdd   : > { %v581_v45 = vadd.f32 %v862_v38, %v573_v42  ;;  %v518_v47 = vadd.f32 %v508_v43, %v462_v44 }
  0xdf   : > { %585 = vst [vmem:[%s192_s22] sm:$0xff] %v581_v45 }
  0xe1   : > { %v455_v48 = vpop.f32.mrf.mxu3 }
  0xe2   : > { %v564_v49 = vpop.f32.mrf.mxu2  ;;  %v463_v54 = vadd.f32 %v455_v48, %v407_v50 }
  0xe3   : > { %v574_v52 = vadd.f32 %v564_v49, %v518_v47 }
  0xe4   : > { %v511_v53 = vpop.f32.mrf.mxu1 }
  0xe5   : > { %v582_v55 = vadd.f32 %v862_v38, %v574_v52  ;;  %v519_v57 = vadd.f32 %v511_v53, %v463_v54 }
  0xe7   : > { %586 = vst [vmem:[%s192_s22 + $0x8] sm:$0xff] %v582_v55 }
  0xe9   : > { %v458_v58 = vpop.f32.mrf.mxu3 }
  0xea   : > { %v567_v59 = vpop.f32.mrf.mxu2  ;;  %v464_v62 = vadd.f32 %v458_v58, %v408_v60 }
  0xeb   : > { %v575_v61 = vadd.f32 %v567_v59, %v519_v57 }
  0xec   : > { %v514_v0 = vpop.f32.mrf.mxu1 }
  0xed   : > { %v583_v63 = vadd.f32 %v862_v38, %v575_v61  ;;  %v520_v1 = vadd.f32 %v514_v0, %v464_v62 }
  0xef   : > { %587 = vst [vmem:[%s192_s22 + $0x10] sm:$0xff] %v583_v63 }
  0xf2   : > { %v570_v2 = vpop.f32.mrf.mxu2 }
  0xf3   : > { %v576_v3 = vadd.f32 %v570_v2, %v520_v1 }
  0xf5   : > { %v584_v4 = vadd.f32 %v862_v38, %v576_v3 }
  0xf7   : > { %588 = vst [vmem:[%s192_s22 + $0x18] sm:$0xff] %v584_v4 }
  0xf8 PF: > { %s13_s14 = sadd.s32 1, %s885_s14   ;;  %s1323_s12 = smov %s881_s13 }
  0xf9   : > { %p10_p5 = scmp.ge.s32.totalorder %s13_s14, 4   ;;  %s1324_s13 = smov %s1326_s15 }
  0xfb   :  { %12 = sbr.rel (!%p10_p5) target bundleno = 2 (0x2), region = 75 }

// kernel: calcium_vqvae_forward.29
= control target key start
LH: loop header
LB: loop body
LE: loop exit
PB: predicated region body
PF: predicated region fallthrough
CT: control target
= control target key end

     0   :  { %v178_v2 = vmov 8.0   ;;  %s321_s0 = inlined_call_operand.vmem [shape: f32[2,8,128], index: 0, kind: input, shape index: {}]   ;;  %s322_s1 = inlined_call_operand.vmem [shape: f32[128,128], index: 1, kind: input, shape index: {}]   ;;  %s323_s2 = inlined_call_operand.vmem [shape: f32[1,128], index: 2, kind: input, shape index: {}]   ;;  %s324_s3 = inlined_call_operand.vmem [shape: f32[128,128], index: 3, kind: input, shape index: {}]   ;;  %s325_s4 = inlined_call_operand.vmem [shape: f32[1,128], index: 4, kind: input, shape index: {}]   ;;  %s326_s5 = inlined_call_operand.hbm [shape: f32[2,128], index: 5, kind: output, shape index: {}]  }
   0x1   :  { %v62_v0 = vld [vmem:[%s322_s1 + $0x78] sm:$0xff]  ;;  %v61_v1 = vld [vmem:[%s322_s1 + $0x70] sm:$0xff]  ;;  %150 = vrcp.f32 %v178_v2  ;;  %v60_v3 = vld [vmem:[%s322_s1 + $0x68] sm:$0xff] }
   0x2   :  { %67 = vmatpush.msra.mxu0 %v62_v0  ;;  %v59_v4 = vld [vmem:[%s322_s1 + $0x60] sm:$0xff]  ;;  %v145_v6 = vld [vmem:[%s321_s0 + $0x8] sm:$0xff]  ;;  %v58_v7 = vld [vmem:[%s322_s1 + $0x58] sm:$0xff] }
   0x3   :  { %v21_v5 = vld [vmem:[%s321_s0] sm:$0xff]  ;;  %v38_v9 = vrot.slane %v145_v6, 4  ;;  %v103_v10 = vld [vmem:[%s324_s3 + $0x78] sm:$0xff]  ;;  %v102_v11 = vld [vmem:[%s324_s3 + $0x70] sm:$0xff] }
   0x4   :  { %68 = vmatpush.msra.mxu0 %v61_v1  ;;  %v22_v8 = vrot.slane %v21_v5, 4  ;;  %108 = vmatpush.msra.mxu1 %v103_v10  ;;  %v57_v13 = vld [vmem:[%s322_s1 + $0x50] sm:$0xff]  ;;  %v101_v17 = vld [vmem:[%s324_s3 + $0x68] sm:$0xff]  ;;  %v100_v22 = vld [vmem:[%s324_s3 + $0x60] sm:$0xff] }
   0x5   :  { %v39_v16 = vadd.f32 %v145_v6, %v38_v9  ;;  %v56_v18 = vld [vmem:[%s322_s1 + $0x48] sm:$0xff] }
   0x6   :  { %69 = vmatpush.msra.mxu0 %v60_v3  ;;  %v23_v14 = vadd.f32 %v22_v8, %v21_v5  ;;  %109 = vmatpush.msra.mxu1 %v102_v11 }
   0x7   :  { %v151_v12 = vpop.eup %150  ;;  %v40_v21 = vrot.slane %v39_v16, 2 }
   0x8   :  { %70 = vmatpush.msra.mxu0 %v59_v4  ;;  %v29_v15 = vmul.f32 8.0, %v151_v12  ;;  %v24_v19 = vrot.slane %v23_v14, 2  ;;  %110 = vmatpush.msra.mxu1 %v101_v17 }
   0xa   :  { %71 = vmatpush.msra.mxu0 %v58_v7  ;;  %v30_v20 = vsub.f32 1.0, %v29_v15 }
   0xc   :  { %72 = vmatpush.msra.mxu0 %v57_v13 }
   0xd   :  { %10 = vsyncpa [#allocation3], 0  ;;  %v55_v23 = vld [vmem:[%s322_s1 + $0x40] sm:$0xff]  ;;  %v99_v24 = vld [vmem:[%s324_s3 + $0x58] sm:$0xff]  ;;  %v25_v25 = vadd.f32 %v24_v19, %v23_v14  ;;  %v41_v26 = vadd.f32 %v40_v21, %v39_v16  ;;  %111 = vmatpush.msra.mxu1 %v100_v22  ;;  %v31_v28 = vmul.f32 %v151_v12, %v30_v20  ;;  %vm33_vm0 = vweird.f32 %v151_v12  ;;  %s179_s12 = smov [#allocation2]   ;;  %s136_s15 = sshll.u32 %s326_s5, 4  ;;  %s137_s15 = int_to_ptr.hbm [resolvable:$true] %s136_s15 }
   0xe   :  { %73 = vmatpush.msra.mxu0 %v56_v18  ;;  %v54_v27 = vld [vmem:[%s322_s1 + $0x38] sm:$0xff]  ;;  %v98_v29 = vld [vmem:[%s324_s3 + $0x50] sm:$0xff]  ;;  %v97_v31 = vld [vmem:[%s324_s3 + $0x48] sm:$0xff]  ;;  %vm45_vm1 = vcmask 1040384   ;;  %s134_s0 = sshll.u32 %s179_s12, 4  ;;  %s135_s0 = int_to_ptr.vmem [resolvable:$true] %s134_s0 }
   0xf   :  { %112 = vmatpush.msra.mxu1 %v99_v24  ;;  %v53_v30 = vld [vmem:[%s322_s1 + $0x30] sm:$0xff]  ;;  %v26_v32 = vrot.slane %v25_v25, 1  ;;  %v42_v33 = vrot.slane %v41_v26, 1  ;;  %v52_v34 = vld [vmem:[%s322_s1 + $0x28] sm:$0xff]  ;;  %v32_v35 = vadd.f32 %v151_v12, %v31_v28  ;;  %v96_v36 = vld [vmem:[%s324_s3 + $0x40] sm:$0xff] }
  0x10   :  { %74 = vmatpush.msra.mxu0 %v55_v23  ;;  %v51_v37 = vld [vmem:[%s322_s1 + $0x20] sm:$0xff]  ;;  %v95_v38 = vld [vmem:[%s324_s3 + $0x38] sm:$0xff]  ;;  %v94_v43 = vld [vmem:[%s324_s3 + $0x30] sm:$0xff] }
  0x11   :  { %113 = vmatpush.msra.mxu1 %v98_v29  ;;  %v27_v39 = vadd.f32 %v26_v32, %v25_v25  ;;  %v43_v40 = vadd.f32 %v42_v33, %v41_v26  ;;  %v50_v41 = vld [vmem:[%s322_s1 + $0x18] sm:$0xff]  ;;  %v34_v42 = vsel %vm33_vm0, %v151_v12, %v32_v35  ;;  %v49_v44 = vld [vmem:[%s322_s1 + $0x10] sm:$0xff]  ;;  %v93_v45 = vld [vmem:[%s324_s3 + $0x28] sm:$0xff] }
  0x12   :  { %75 = vmatpush.msra.mxu0 %v54_v27  ;;  %v48_v48 = vld [vmem:[%s322_s1 + $0x8] sm:$0xff]  ;;  %v92_v49 = vld [vmem:[%s324_s3 + $0x20] sm:$0xff]  ;;  %v91_v51 = vld [vmem:[%s324_s3 + $0x18] sm:$0xff] }
  0x13   :  { %114 = vmatpush.msra.mxu1 %v97_v31  ;;  %v35_v46 = vmul.f32 %v34_v42, %v27_v39  ;;  %v44_v47 = vmul.f32 %v43_v40, %v34_v42  ;;  %v47_v50 = vld [vmem:[%s322_s1] sm:$0xff]  ;;  %v90_v53 = vld [vmem:[%s324_s3 + $0x10] sm:$0xff]  ;;  %v89_v54 = vld [vmem:[%s324_s3 + $0x8] sm:$0xff] }
  0x14   :  { %76 = vmatpush.msra.mxu0 %v53_v30  ;;  %v88_v55 = vld [vmem:[%s324_s3] sm:$0xff] }
  0x15   :  { %115 = vmatpush.msra.mxu1 %v96_v36  ;;  %v46_v52 = vsel %vm45_vm1, %v35_v46, %v44_v47  ;;  %v148_v56 = vld [vmem:[%s323_s2] ss:$0 sm:$0xff] }
  0x16   :  { %77 = vmatpush.msra.mxu0 %v52_v34  ;;  %v149_v60 = vld [vmem:[%s325_s4] ss:$0 sm:$0xff] }
  0x17   :  { %116 = vmatpush.msra.mxu1 %v95_v38 }
  0x18   :  { %78 = vmatpush.msra.mxu0 %v51_v37 }
  0x19   :  { %117 = vmatpush.msra.mxu1 %v94_v43 }
  0x1a   :  { %79 = vmatpush.msra.mxu0 %v50_v41 }
  0x1b   :  { %118 = vmatpush.msra.mxu1 %v93_v45 }
  0x1c   :  { %80 = vmatpush.msra.mxu0 %v49_v44 }
  0x1d   :  { %119 = vmatpush.msra.mxu1 %v92_v49 }
  0x1e   :  { %81 = vmatpush.msra.mxu0 %v48_v48 }
  0x1f   :  { %120 = vmatpush.msra.mxu1 %v91_v51 }
  0x20   :  { %82 = vmatpush.msra.mxu0 %v47_v50 }
  0x21   :  { %83 = vmatmul.f32.vlgmr.msra.gmra.mxu0 %v46_v52  ;;  %121 = vmatpush.msra.mxu1 %v90_v53 }
  0x23   :  { %122 = vmatpush.msra.mxu1 %v89_v54 }
  0x25   :  { %123 = vmatpush.msra.mxu1 %v88_v55 }
  0x9e   :  { %v84_v57 = vpop.f32.mrf.mxu0 }
  0x9f   :  { %v85_v58 = vadd.f32 %v148_v56, %v84_v57 }
  0xa1   :  { %v87_v59 = vmax.f32 %v85_v58, 0.0 }
  0xa3   :  { %124 = vmatmul.f32.vlgmr.msra.gmra.mxu1 %v87_v59 }
 0x120   :  { %v125_v61 = vpop.f32.mrf.mxu1 }
 0x121   :  { %v126_v62 = vadd.f32 %v149_v60, %v125_v61 }
 0x123   :  { %128 = vst [vmem:[#allocation2] sm:$0x3] %v126_v62 }
 0x124   :  { %139 = dma.vmem_to_hbm [thread:$0]  %s135_s0, 32, %s137_s15, [#allocation3]  }
 0x125   :  { %176 = dma.done.wait [#allocation3], 32  }
 0x126   :  { %177 = vsyncadd [#allocation3], 4294967264 }
 0x127   :  { %144 = vsyncpa [#allocation3], 1 }

</bundles_post_ra>
